<compile_context>
chip_gen: v7x
topology: tpu7x:2x2x1
jax: 0.10.0
libtpu: 0.0.40
codegen_flags: <defaults>
</compile_context>

<pallas_src>
import functools

import jax
import jax.numpy as jnp
import numpy as np
from jax.experimental import pallas as pl
from jax.experimental.pallas import tpu as pltpu

_EPS = 1e-5
_LANES = 128


def _round_up(x, m):
    return (x + m - 1) // m * m


def _vmem_limit_bytes():
    # v5e/v6e: 128 MiB physical VMEM -> 64 MiB budget; v7x: 64 MiB -> 32 MiB.
    try:
        cap = int(pltpu.get_tpu_info().vmem_capacity_bytes)
    except Exception:
        cap = 64 * 1024 * 1024
    return max(32 * 1024 * 1024, min(cap // 2, 96 * 1024 * 1024))


def _pick_block_batch(n, h, w, cp, vmem_limit):
    """Images per grid step: largest divisor of n whose conv-stage working set
    fits ~60% of the VMEM budget, preferring >= 2 grid steps (v7x megacore)."""
    m = h * w
    per_img = (
        2 * m * cp * 4                    # double-buffered f32 image block in
        + 2 * m * cp * 4                  # double-buffered f32 block out
        + (h + 2) * (w + 2) * cp * 2      # in-kernel padded bf16 copy
        + 9 * m * cp * 2                  # in-kernel im2col slab (bf16)
        + m * cp * 4                      # f32 matmul accumulator
    )
    fixed = 2 * 9 * cp * cp * 2           # double-buffered tap weights
    budget = int(vmem_limit * 0.6)
    fits = [b for b in range(1, n + 1)
            if n % b == 0 and fixed + b * per_img <= budget]
    if not fits:
        return 1
    two_step = [b for b in fits if n // b >= 2]
    return max(two_step) if two_step else max(fits)


# ---------------------------------------------------------------------------
# Kernels
# ---------------------------------------------------------------------------

def _pad_hw(x):
    """Zero spatial halo at value level: (b, h, w, cp) -> (b, h+2, w+2, cp)."""
    b, h, w, cp = x.shape
    zr = jnp.zeros((b, 1, w, cp), x.dtype)
    x = jnp.concatenate([zr, x, zr], axis=1)          # (b, h+2, w, cp)
    zc = jnp.zeros((b, h + 2, 1, cp), x.dtype)
    return jnp.concatenate([zc, x, zc], axis=2)       # (b, h+2, w+2, cp)


def _conv3x3_im2col(x_bf16, w_ref):
    """3x3 SAME conv of a (b, h, w, cp) bf16 block against a (9*cp, cp) bf16
    tap-major weight ref as ONE big-K MXU matmul.  Returns f32 (b*h*w, cp)."""
    b, h, w, cp = x_bf16.shape
    xp = _pad_hw(x_bf16)
    taps = [xp[:, dy:dy + h, dx:dx + w, :]            # tap k = dy*3 + dx
            for dy in range(3) for dx in range(3)]
    slab = jnp.concatenate(taps, axis=-1).reshape(b * h * w, 9 * cp)
    return jnp.dot(slab, w_ref[...], preferred_element_type=jnp.float32)


def _conv1_kernel(x_ref, w_ref, z1_ref, ssum_ref, ssq_ref):
    # x_ref:  (b, h, w, cp) f32 channel-padded NHWC input block
    # z1_ref: (b, h, w, cp) bf16 pre-BN conv1 output (unpadded)
    # ssum/ssq: (1, 1, cp) f32 per-block BN1 partial sums
    b, h, w, cp = x_ref.shape
    acc = _conv3x3_im2col(x_ref[...].astype(jnp.bfloat16), w_ref)
    z1_ref[...] = acc.reshape(b, h, w, cp).astype(z1_ref.dtype)
    ssum_ref[...] = jnp.sum(acc, axis=0, keepdims=True).reshape(1, 1, cp)
    ssq_ref[...] = jnp.sum(acc * acc, axis=0, keepdims=True).reshape(1, 1, cp)


def _conv2_kernel(z1_ref, mu_ref, rstd_ref, w_ref, z2_ref, ssum_ref, ssq_ref):
    # bn1 + relu in f32 on the bf16 z1 block; the conv-padding halo is rebuilt
    # AFTER relu (so bn(0) != 0 never leaks into the border), then conv2 as one
    # im2col matmul + BN2 partial sums.
    b, h, w, cp = z1_ref.shape
    y = jnp.maximum(
        (z1_ref[...].astype(jnp.float32) - mu_ref[...]) * rstd_ref[...], 0.0)
    acc = _conv3x3_im2col(y.astype(jnp.bfloat16), w_ref)
    z2_ref[...] = acc.reshape(b, h, w, cp)
    ssum_ref[...] = jnp.sum(acc, axis=0, keepdims=True).reshape(1, 1, cp)
    ssq_ref[...] = jnp.sum(acc * acc, axis=0, keepdims=True).reshape(1, 1, cp)


def _bn_relu_add_kernel(z2_ref, x_ref, mu_ref, rstd_ref, o_ref):
    # bn2 + relu + residual add, all f32 elementwise.
    y = jnp.maximum((z2_ref[...] - mu_ref[...]) * rstd_ref[...], 0.0)
    o_ref[...] = y + x_ref[...]


# ---------------------------------------------------------------------------
# Host-side glue
# ---------------------------------------------------------------------------

def _weights_to_taps(w_oihw, cp):
    # (c_out, c_in, 3, 3) -> (9*cp, cp) bf16, tap-major rows [k*cp + c_in, c_out].
    c_out, c_in = w_oihw.shape[0], w_oihw.shape[1]
    wt = jnp.transpose(w_oihw.astype(jnp.float32), (2, 3, 1, 0)).reshape(9, c_in, c_out)
    wt = jnp.pad(wt, ((0, 0), (0, cp - c_in), (0, cp - c_out)))
    return wt.reshape(9 * cp, cp).astype(jnp.bfloat16)


def _finalize_bn(ssum, ssq, count):
    # Global per-channel mean / inv-std from per-block partials (tiny arrays).
    s = jnp.sum(ssum, axis=0)                          # (1, cp)
    q = jnp.sum(ssq, axis=0)                           # (1, cp)
    mean = s / count
    var = jnp.maximum(q / count - mean * mean, 0.0)    # biased (train-mode) var
    return mean, jax.lax.rsqrt(var + _EPS)


@jax.jit
def residual_forward(x_nchw, w1_oihw, w2_oihw):
    """Pallas forward of Residual: relu(bn2(conv2(relu(bn1(conv1(x)))))) + x."""
    n, c, h, w = x_nchw.shape
    cp = _round_up(c, _LANES)            # lane-dense channel count
    m = h * w
    count = float(n * m)

    # Single wrapper-side layout pass: NCHW -> channel-padded f32 NHWC.  This
    # array feeds stage 1 (bf16 cast + spatial halo happen in-kernel) and is
    # reused as the stage-3 residual input.
    x_nhwc = jnp.pad(
        jnp.transpose(x_nchw, (0, 2, 3, 1)).astype(jnp.float32),
        ((0, 0), (0, 0), (0, 0), (0, cp - c)))

    w1m = _weights_to_taps(w1_oihw, cp)
    w2m = _weights_to_taps(w2_oihw, cp)

    vmem_limit = _vmem_limit_bytes()
    b = _pick_block_batch(n, h, w, cp, vmem_limit)
    nb = n // b

    img_spec = pl.BlockSpec((b, h, w, cp), lambda i: (i, 0, 0, 0))
    # TODO(synk): on v7x with large C, single-buffer the constant weight/vec
    # blocks (pipeline_mode=pl.Buffered(1)) to reclaim VMEM for bigger B.
    wt_spec = pl.BlockSpec((9 * cp, cp), lambda i: (0, 0))
    st_spec = pl.BlockSpec((1, 1, cp), lambda i: (i, 0, 0))
    vec_spec = pl.BlockSpec((1, cp), lambda i: (0, 0))

    cparams = pltpu.CompilerParams(
        dimension_semantics=("parallel",),
        vmem_limit_bytes=vmem_limit,
    )

    conv_flops = 2 * n * m * 9 * cp * cp
    act_f32 = n * m * cp * 4
    act_b16 = n * m * cp * 2
    wt_b16 = 9 * cp * cp * 2
    st_f32 = nb * cp * 4

    # Stage 1: conv1 (im2col, one big-K matmul) + per-block BN1 partial sums.
    z1, s1, q1 = pl.pallas_call(
        _conv1_kernel,
        grid=(nb,),
        in_specs=[img_spec, wt_spec],
        out_specs=[img_spec, st_spec, st_spec],
        out_shape=[
            jax.ShapeDtypeStruct((n, h, w, cp), jnp.bfloat16),
            jax.ShapeDtypeStruct((nb, 1, cp), jnp.float32),
            jax.ShapeDtypeStruct((nb, 1, cp), jnp.float32),
        ],
        compiler_params=cparams,
        cost_estimate=pl.CostEstimate(
            flops=conv_flops, transcendentals=0,
            bytes_accessed=act_f32 + wt_b16 + act_b16 + 2 * st_f32),
    )(x_nhwc, w1m)
    mu1, rstd1 = _finalize_bn(s1, q1, count)

    # Stage 2: bn1 + relu fused into conv2, + per-block BN2 partial sums.
    z2, s2, q2 = pl.pallas_call(
        _conv2_kernel,
        grid=(nb,),
        in_specs=[img_spec, vec_spec, vec_spec, wt_spec],
        out_specs=[img_spec, st_spec, st_spec],
        out_shape=[
            jax.ShapeDtypeStruct((n, h, w, cp), jnp.float32),
            jax.ShapeDtypeStruct((nb, 1, cp), jnp.float32),
            jax.ShapeDtypeStruct((nb, 1, cp), jnp.float32),
        ],
        compiler_params=cparams,
        cost_estimate=pl.CostEstimate(
            flops=conv_flops, transcendentals=0,
            bytes_accessed=act_b16 + wt_b16 + act_f32 + 2 * st_f32),
    )(z1, mu1, rstd1, w2m)
    mu2, rstd2 = _finalize_bn(s2, q2, count)

    # Stage 3: bn2 + relu + residual add.
    out = pl.pallas_call(
        _bn_relu_add_kernel,
        grid=(nb,),
        in_specs=[img_spec, img_spec, vec_spec, vec_spec],
        out_specs=img_spec,
        out_shape=jax.ShapeDtypeStruct((n, h, w, cp), jnp.float32),
        compiler_params=cparams,
        cost_estimate=pl.CostEstimate(
            flops=3 * n * m * cp, transcendentals=0,
            bytes_accessed=3 * act_f32),
    )(z2, x_nhwc, mu2, rstd2)

    # TODO(synk): BatchNorm running_mean/running_var momentum updates are a
    # training-time side effect that does not affect forward outputs; not modeled.
    # TODO(synk): for very large H*W, additionally tile rows (with a 1-row halo)
    # inside each image; whole images per grid step is ample for CIFAR maps.
    out = out[:, :, :, :c]
    return jnp.transpose(out, (0, 3, 1, 2))


# ---------------------------------------------------------------------------
# Reference + test
# ---------------------------------------------------------------------------

def _reference_forward(x_nchw, w1, w2):
    def conv_bn_relu(x, wgt):
        y = jax.lax.conv_general_dilated(
            x, wgt, window_strides=(1, 1), padding="SAME",
            dimension_numbers=("NCHW", "OIHW", "NCHW"),
            precision=jax.lax.Precision.HIGHEST)
        mean = jnp.mean(y, axis=(0, 2, 3), keepdims=True)
        var = jnp.mean(jnp.square(y - mean), axis=(0, 2, 3), keepdims=True)
        return jnp.maximum((y - mean) * jax.lax.rsqrt(var + _EPS), 0.0)

    return conv_bn_relu(conv_bn_relu(x_nchw, w1), w2) + x_nchw


if __name__ == "__main__":
    key = jax.random.PRNGKey(0)
    kx, k1, k2 = jax.random.split(key, 3)

    N, C, H, W = 2, 4, 16, 16          # x: NCHW, as in the PyTorch module
    x = jax.random.normal(kx, (N, C, H, W), dtype=jnp.float32)
    w1 = jax.random.normal(k1, (C, C, 3, 3), dtype=jnp.float32) * 0.1
    w2 = jax.random.normal(k2, (C, C, 3, 3), dtype=jnp.float32) * 0.1

    out = jax.block_until_ready(residual_forward(x, w1, w2))
    ref = jax.block_until_ready(_reference_forward(x, w1, w2))

    assert out.shape == (N, C, H, W) and out.dtype == jnp.float32
    np.testing.assert_allclose(np.asarray(out), np.asarray(ref), rtol=2e-2, atol=2e-2)

    print("KERNEL_OK")
</pallas_src>

<mosaic_0001>
module attributes {stable_mosaic.version = 11 : i64} {
  func.func @_conv1_kernel(%arg0: i32, %arg1: memref<1x16x16x128xf32, #tpu.memory_space<vmem>>, %arg2: memref<1152x128xbf16, #tpu.memory_space<vmem>>, %arg3: memref<1x16x16x128xbf16, #tpu.memory_space<vmem>>, %arg4: memref<1x1x128xf32, #tpu.memory_space<vmem>>, %arg5: memref<1x1x128xf32, #tpu.memory_space<vmem>>) attributes {dimension_semantics = [#tpu.dimension_semantics<parallel>], iteration_bounds = array<i64: 2>, scalar_prefetch = 0 : i64, scratch_operands = 0 : i64, tpu.core_type = #tpu.core_type<tc>, window_params = [{transform_indices = @transform_0, window_bounds = array<i64: 1, 16, 16, 128>}, {pipeline_mode = #tpu.pipeline_mode<synchronous>, transform_indices = @transform_1, window_bounds = array<i64: 1152, 128>}, {transform_indices = @transform_2, window_bounds = array<i64: 1, 16, 16, 128>}, {transform_indices = @transform_3, window_bounds = array<i64: 1, 1, 128>}, {transform_indices = @transform_4, window_bounds = array<i64: 1, 1, 128>}]} {
    %c0 = arith.constant 0 : index
    %c0_0 = arith.constant 0 : index
    %c0_1 = arith.constant 0 : index
    %c0_2 = arith.constant 0 : index
    %0 = vector.load %arg1[%c0, %c0_0, %c0_1, %c0_2] : memref<1x16x16x128xf32, #tpu.memory_space<vmem>>, vector<1x16x16x128xf32>
    %1 = arith.truncf %0 : vector<1x16x16x128xf32> to vector<1x16x16x128xbf16>
    %cst = arith.constant 0.000000e+00 : bf16
    %2 = vector.broadcast %cst : bf16 to vector<1x1x16x128xbf16>
    %3 = tpu.concatenate %2, %1, %2 in 1 : vector<1x1x16x128xbf16>, vector<1x16x16x128xbf16>, vector<1x1x16x128xbf16> -> vector<1x18x16x128xbf16>
    %cst_3 = arith.constant 0.000000e+00 : bf16
    %4 = vector.broadcast %cst_3 : bf16 to vector<1x18x1x128xbf16>
    %5 = tpu.concatenate %4, %3, %4 in 2 : vector<1x18x1x128xbf16>, vector<1x18x16x128xbf16>, vector<1x18x1x128xbf16> -> vector<1x18x18x128xbf16>
    %6 = vector.extract_strided_slice %5 {offsets = [0, 0, 0, 0], sizes = [1, 16, 16, 128], strides = [1, 1, 1, 1]} : vector<1x18x18x128xbf16> to vector<1x16x16x128xbf16>
    %7 = vector.extract_strided_slice %5 {offsets = [0, 0, 1, 0], sizes = [1, 16, 16, 128], strides = [1, 1, 1, 1]} : vector<1x18x18x128xbf16> to vector<1x16x16x128xbf16>
    %8 = vector.extract_strided_slice %5 {offsets = [0, 0, 2, 0], sizes = [1, 16, 16, 128], strides = [1, 1, 1, 1]} : vector<1x18x18x128xbf16> to vector<1x16x16x128xbf16>
    %9 = vector.extract_strided_slice %5 {offsets = [0, 1, 0, 0], sizes = [1, 16, 16, 128], strides = [1, 1, 1, 1]} : vector<1x18x18x128xbf16> to vector<1x16x16x128xbf16>
    %10 = vector.extract_strided_slice %5 {offsets = [0, 1, 1, 0], sizes = [1, 16, 16, 128], strides = [1, 1, 1, 1]} : vector<1x18x18x128xbf16> to vector<1x16x16x128xbf16>
    %11 = vector.extract_strided_slice %5 {offsets = [0, 1, 2, 0], sizes = [1, 16, 16, 128], strides = [1, 1, 1, 1]} : vector<1x18x18x128xbf16> to vector<1x16x16x128xbf16>
    %12 = vector.extract_strided_slice %5 {offsets = [0, 2, 0, 0], sizes = [1, 16, 16, 128], strides = [1, 1, 1, 1]} : vector<1x18x18x128xbf16> to vector<1x16x16x128xbf16>
    %13 = vector.extract_strided_slice %5 {offsets = [0, 2, 1, 0], sizes = [1, 16, 16, 128], strides = [1, 1, 1, 1]} : vector<1x18x18x128xbf16> to vector<1x16x16x128xbf16>
    %14 = vector.extract_strided_slice %5 {offsets = [0, 2, 2, 0], sizes = [1, 16, 16, 128], strides = [1, 1, 1, 1]} : vector<1x18x18x128xbf16> to vector<1x16x16x128xbf16>
    %15 = tpu.concatenate %6, %7, %8, %9, %10, %11, %12, %13, %14 in 3 : vector<1x16x16x128xbf16>, vector<1x16x16x128xbf16>, vector<1x16x16x128xbf16>, vector<1x16x16x128xbf16>, vector<1x16x16x128xbf16>, vector<1x16x16x128xbf16>, vector<1x16x16x128xbf16>, vector<1x16x16x128xbf16>, vector<1x16x16x128xbf16> -> vector<1x16x16x1152xbf16>
    %16 = vector.shape_cast %15 : vector<1x16x16x1152xbf16> to vector<256x1152xbf16>
    %c0_4 = arith.constant 0 : index
    %c0_5 = arith.constant 0 : index
    %17 = vector.load %arg2[%c0_4, %c0_5] : memref<1152x128xbf16, #tpu.memory_space<vmem>>, vector<1152x128xbf16>
    %cst_6 = arith.constant dense<0.000000e+00> : vector<256x128xf32>
    %18 = tpu.matmul %16, %17, %cst_6 {dimension_numbers = #tpu.dot_dimension_numbers<[1], [0], [0], [1], [0, 0, 1, 1], [], []>} : vector<256x1152xbf16>, vector<1152x128xbf16>, vector<256x128xf32> -> vector<256x128xf32>
    %19 = vector.shape_cast %18 : vector<256x128xf32> to vector<1x16x16x128xf32>
    %20 = arith.truncf %19 : vector<1x16x16x128xf32> to vector<1x16x16x128xbf16>
    %c0_7 = arith.constant 0 : index
    %c0_8 = arith.constant 0 : index
    %c0_9 = arith.constant 0 : index
    %c0_10 = arith.constant 0 : index
    %21 = vector.load %arg3[%c0_7, %c0_8, %c0_9, %c0_10] : memref<1x16x16x128xbf16, #tpu.memory_space<vmem>>, vector<1x16x16x128xbf16>
    tpu.vector_store %arg3[%c0_7, %c0_8, %c0_9, %c0_10], %20 {strides = array<i32>} : memref<1x16x16x128xbf16, #tpu.memory_space<vmem>>, vector<1x16x16x128xbf16>,
    %cst_11 = arith.constant dense<0.000000e+00> : vector<128xf32>
    %22 = vector.multi_reduction <add>, %18, %cst_11 [0] : vector<256x128xf32> to vector<128xf32>
    %23 = vector.shape_cast %22 : vector<128xf32> to vector<1x128xf32>
    %24 = vector.shape_cast %23 : vector<1x128xf32> to vector<1x1x128xf32>
    %c0_12 = arith.constant 0 : index
    %c0_13 = arith.constant 0 : index
    %c0_14 = arith.constant 0 : index
    %25 = vector.load %arg4[%c0_12, %c0_13, %c0_14] : memref<1x1x128xf32, #tpu.memory_space<vmem>>, vector<1x1x128xf32>
    tpu.vector_store %arg4[%c0_12, %c0_13, %c0_14], %24 {strides = array<i32>} : memref<1x1x128xf32, #tpu.memory_space<vmem>>, vector<1x1x128xf32>,
    %26 = arith.mulf %18, %18 : vector<256x128xf32>
    %cst_15 = arith.constant dense<0.000000e+00> : vector<128xf32>
    %27 = vector.multi_reduction <add>, %26, %cst_15 [0] : vector<256x128xf32> to vector<128xf32>
    %28 = vector.shape_cast %27 : vector<128xf32> to vector<1x128xf32>
    %29 = vector.shape_cast %28 : vector<1x128xf32> to vector<1x1x128xf32>
    %c0_16 = arith.constant 0 : index
    %c0_17 = arith.constant 0 : index
    %c0_18 = arith.constant 0 : index
    %30 = vector.load %arg5[%c0_16, %c0_17, %c0_18] : memref<1x1x128xf32, #tpu.memory_space<vmem>>, vector<1x1x128xf32>
    tpu.vector_store %arg5[%c0_16, %c0_17, %c0_18], %29 {strides = array<i32>} : memref<1x1x128xf32, #tpu.memory_space<vmem>>, vector<1x1x128xf32>,
    return
  }
  func.func @transform_0(%arg0: i32) -> (i32, i32, i32, i32) {
    %c0_i32 = arith.constant 0 : i32
    %c0_i32_0 = arith.constant 0 : i32
    %c0_i32_1 = arith.constant 0 : i32
    %c0_i32_2 = arith.constant 0 : i32
    return %arg0, %c0_i32, %c0_i32_0, %c0_i32_1 : i32, i32, i32, i32
  }
  func.func @transform_1(%arg0: i32) -> (i32, i32) {
    %c0_i32 = arith.constant 0 : i32
    %c0_i32_0 = arith.constant 0 : i32
    %c0_i32_1 = arith.constant 0 : i32
    return %c0_i32, %c0_i32_0 : i32, i32
  }
  func.func @transform_2(%arg0: i32) -> (i32, i32, i32, i32) {
    %c0_i32 = arith.constant 0 : i32
    %c0_i32_0 = arith.constant 0 : i32
    %c0_i32_1 = arith.constant 0 : i32
    %c0_i32_2 = arith.constant 0 : i32
    return %arg0, %c0_i32, %c0_i32_0, %c0_i32_1 : i32, i32, i32, i32
  }
  func.func @transform_3(%arg0: i32) -> (i32, i32, i32) {
    %c0_i32 = arith.constant 0 : i32
    %c0_i32_0 = arith.constant 0 : i32
    %c0_i32_1 = arith.constant 0 : i32
    return %arg0, %c0_i32, %c0_i32_0 : i32, i32, i32
  }
  func.func @transform_4(%arg0: i32) -> (i32, i32, i32) {
    %c0_i32 = arith.constant 0 : i32
    %c0_i32_0 = arith.constant 0 : i32
    %c0_i32_1 = arith.constant 0 : i32
    return %arg0, %c0_i32, %c0_i32_0 : i32, i32, i32
  }
}

module attributes {stable_mosaic.version = 11 : i64} {
  func.func @_bn_relu_add_kernel(%arg0: i32, %arg1: memref<1x16x16x128xf32, #tpu.memory_space<vmem>>, %arg2: memref<1x16x16x128xf32, #tpu.memory_space<vmem>>, %arg3: memref<1x128xf32, #tpu.memory_space<vmem>>, %arg4: memref<1x128xf32, #tpu.memory_space<vmem>>, %arg5: memref<1x16x16x128xf32, #tpu.memory_space<vmem>>) attributes {dimension_semantics = [#tpu.dimension_semantics<parallel>], iteration_bounds = array<i64: 2>, scalar_prefetch = 0 : i64, scratch_operands = 0 : i64, tpu.core_type = #tpu.core_type<tc>, window_params = [{transform_indices = @transform_0, window_bounds = array<i64: 1, 16, 16, 128>}, {transform_indices = @transform_1, window_bounds = array<i64: 1, 16, 16, 128>}, {pipeline_mode = #tpu.pipeline_mode<synchronous>, transform_indices = @transform_2, window_bounds = array<i64: 1, 128>}, {pipeline_mode = #tpu.pipeline_mode<synchronous>, transform_indices = @transform_3, window_bounds = array<i64: 1, 128>}, {transform_indices = @transform_4, window_bounds = array<i64: 1, 16, 16, 128>}]} {
    %c0 = arith.constant 0 : index
    %c0_0 = arith.constant 0 : index
    %c0_1 = arith.constant 0 : index
    %c0_2 = arith.constant 0 : index
    %0 = vector.load %arg1[%c0, %c0_0, %c0_1, %c0_2] : memref<1x16x16x128xf32, #tpu.memory_space<vmem>>, vector<1x16x16x128xf32>
    %c0_3 = arith.constant 0 : index
    %c0_4 = arith.constant 0 : index
    %1 = vector.load %arg3[%c0_3, %c0_4] : memref<1x128xf32, #tpu.memory_space<vmem>>, vector<1x128xf32>
    %2 = vector.shape_cast %1 : vector<1x128xf32> to vector<1x1x1x128xf32>
    %3 = vector.broadcast %2 : vector<1x1x1x128xf32> to vector<1x16x16x128xf32>
    %4 = arith.subf %0, %3 : vector<1x16x16x128xf32>
    %c0_5 = arith.constant 0 : index
    %c0_6 = arith.constant 0 : index
    %5 = vector.load %arg4[%c0_5, %c0_6] : memref<1x128xf32, #tpu.memory_space<vmem>>, vector<1x128xf32>
    %6 = vector.shape_cast %5 : vector<1x128xf32> to vector<1x1x1x128xf32>
    %7 = vector.broadcast %6 : vector<1x1x1x128xf32> to vector<1x16x16x128xf32>
    %8 = arith.mulf %4, %7 : vector<1x16x16x128xf32>
    %cst = arith.constant 0.000000e+00 : f32
    %9 = vector.broadcast %cst : f32 to vector<1x16x16x128xf32>
    %10 = arith.maximumf %8, %9 : vector<1x16x16x128xf32>
    %c0_7 = arith.constant 0 : index
    %c0_8 = arith.constant 0 : index
    %c0_9 = arith.constant 0 : index
    %c0_10 = arith.constant 0 : index
    %11 = vector.load %arg2[%c0_7, %c0_8, %c0_9, %c0_10] : memref<1x16x16x128xf32, #tpu.memory_space<vmem>>, vector<1x16x16x128xf32>
    %12 = arith.addf %10, %11 : vector<1x16x16x128xf32>
    %c0_11 = arith.constant 0 : index
    %c0_12 = arith.constant 0 : index
    %c0_13 = arith.constant 0 : index
    %c0_14 = arith.constant 0 : index
    %13 = vector.load %arg5[%c0_11, %c0_12, %c0_13, %c0_14] : memref<1x16x16x128xf32, #tpu.memory_space<vmem>>, vector<1x16x16x128xf32>
    tpu.vector_store %arg5[%c0_11, %c0_12, %c0_13, %c0_14], %12 {strides = array<i32>} : memref<1x16x16x128xf32, #tpu.memory_space<vmem>>, vector<1x16x16x128xf32>,
    return
  }
  func.func @transform_0(%arg0: i32) -> (i32, i32, i32, i32) {
    %c0_i32 = arith.constant 0 : i32
    %c0_i32_0 = arith.constant 0 : i32
    %c0_i32_1 = arith.constant 0 : i32
    %c0_i32_2 = arith.constant 0 : i32
    return %arg0, %c0_i32, %c0_i32_0, %c0_i32_1 : i32, i32, i32, i32
  }
  func.func @transform_1(%arg0: i32) -> (i32, i32, i32, i32) {
    %c0_i32 = arith.constant 0 : i32
    %c0_i32_0 = arith.constant 0 : i32
    %c0_i32_1 = arith.constant 0 : i32
    %c0_i32_2 = arith.constant 0 : i32
    return %arg0, %c0_i32, %c0_i32_0, %c0_i32_1 : i32, i32, i32, i32
  }
  func.func @transform_2(%arg0: i32) -> (i32, i32) {
    %c0_i32 = arith.constant 0 : i32
    %c0_i32_0 = arith.constant 0 : i32
    %c0_i32_1 = arith.constant 0 : i32
    return %c0_i32, %c0_i32_0 : i32, i32
  }
  func.func @transform_3(%arg0: i32) -> (i32, i32) {
    %c0_i32 = arith.constant 0 : i32
    %c0_i32_0 = arith.constant 0 : i32
    %c0_i32_1 = arith.constant 0 : i32
    return %c0_i32, %c0_i32_0 : i32, i32
  }
  func.func @transform_4(%arg0: i32) -> (i32, i32, i32, i32) {
    %c0_i32 = arith.constant 0 : i32
    %c0_i32_0 = arith.constant 0 : i32
    %c0_i32_1 = arith.constant 0 : i32
    %c0_i32_2 = arith.constant 0 : i32
    return %arg0, %c0_i32, %c0_i32_0, %c0_i32_1 : i32, i32, i32, i32
  }
}

module attributes {stable_mosaic.version = 11 : i64} {
  func.func @_conv2_kernel(%arg0: i32, %arg1: memref<1x16x16x128xbf16, #tpu.memory_space<vmem>>, %arg2: memref<1x128xf32, #tpu.memory_space<vmem>>, %arg3: memref<1x128xf32, #tpu.memory_space<vmem>>, %arg4: memref<1152x128xbf16, #tpu.memory_space<vmem>>, %arg5: memref<1x16x16x128xf32, #tpu.memory_space<vmem>>, %arg6: memref<1x1x128xf32, #tpu.memory_space<vmem>>, %arg7: memref<1x1x128xf32, #tpu.memory_space<vmem>>) attributes {dimension_semantics = [#tpu.dimension_semantics<parallel>], iteration_bounds = array<i64: 2>, scalar_prefetch = 0 : i64, scratch_operands = 0 : i64, tpu.core_type = #tpu.core_type<tc>, window_params = [{transform_indices = @transform_0, window_bounds = array<i64: 1, 16, 16, 128>}, {pipeline_mode = #tpu.pipeline_mode<synchronous>, transform_indices = @transform_1, window_bounds = array<i64: 1, 128>}, {pipeline_mode = #tpu.pipeline_mode<synchronous>, transform_indices = @transform_2, window_bounds = array<i64: 1, 128>}, {pipeline_mode = #tpu.pipeline_mode<synchronous>, transform_indices = @transform_3, window_bounds = array<i64: 1152, 128>}, {transform_indices = @transform_4, window_bounds = array<i64: 1, 16, 16, 128>}, {transform_indices = @transform_5, window_bounds = array<i64: 1, 1, 128>}, {transform_indices = @transform_6, window_bounds = array<i64: 1, 1, 128>}]} {
    %c0 = arith.constant 0 : index
    %c0_0 = arith.constant 0 : index
    %c0_1 = arith.constant 0 : index
    %c0_2 = arith.constant 0 : index
    %0 = vector.load %arg1[%c0, %c0_0, %c0_1, %c0_2] : memref<1x16x16x128xbf16, #tpu.memory_space<vmem>>, vector<1x16x16x128xbf16>
    %1 = arith.extf %0 : vector<1x16x16x128xbf16> to vector<1x16x16x128xf32>
    %c0_3 = arith.constant 0 : index
    %c0_4 = arith.constant 0 : index
    %2 = vector.load %arg2[%c0_3, %c0_4] : memref<1x128xf32, #tpu.memory_space<vmem>>, vector<1x128xf32>
    %3 = vector.shape_cast %2 : vector<1x128xf32> to vector<1x1x1x128xf32>
    %4 = vector.broadcast %3 : vector<1x1x1x128xf32> to vector<1x16x16x128xf32>
    %5 = arith.subf %1, %4 : vector<1x16x16x128xf32>
    %c0_5 = arith.constant 0 : index
    %c0_6 = arith.constant 0 : index
    %6 = vector.load %arg3[%c0_5, %c0_6] : memref<1x128xf32, #tpu.memory_space<vmem>>, vector<1x128xf32>
    %7 = vector.shape_cast %6 : vector<1x128xf32> to vector<1x1x1x128xf32>
    %8 = vector.broadcast %7 : vector<1x1x1x128xf32> to vector<1x16x16x128xf32>
    %9 = arith.mulf %5, %8 : vector<1x16x16x128xf32>
    %cst = arith.constant 0.000000e+00 : f32
    %10 = vector.broadcast %cst : f32 to vector<1x16x16x128xf32>
    %11 = arith.maximumf %9, %10 : vector<1x16x16x128xf32>
    %12 = arith.truncf %11 : vector<1x16x16x128xf32> to vector<1x16x16x128xbf16>
    %cst_7 = arith.constant 0.000000e+00 : bf16
    %13 = vector.broadcast %cst_7 : bf16 to vector<1x1x16x128xbf16>
    %14 = tpu.concatenate %13, %12, %13 in 1 : vector<1x1x16x128xbf16>, vector<1x16x16x128xbf16>, vector<1x1x16x128xbf16> -> vector<1x18x16x128xbf16>
    %cst_8 = arith.constant 0.000000e+00 : bf16
    %15 = vector.broadcast %cst_8 : bf16 to vector<1x18x1x128xbf16>
    %16 = tpu.concatenate %15, %14, %15 in 2 : vector<1x18x1x128xbf16>, vector<1x18x16x128xbf16>, vector<1x18x1x128xbf16> -> vector<1x18x18x128xbf16>
    %17 = vector.extract_strided_slice %16 {offsets = [0, 0, 0, 0], sizes = [1, 16, 16, 128], strides = [1, 1, 1, 1]} : vector<1x18x18x128xbf16> to vector<1x16x16x128xbf16>
    %18 = vector.extract_strided_slice %16 {offsets = [0, 0, 1, 0], sizes = [1, 16, 16, 128], strides = [1, 1, 1, 1]} : vector<1x18x18x128xbf16> to vector<1x16x16x128xbf16>
    %19 = vector.extract_strided_slice %16 {offsets = [0, 0, 2, 0], sizes = [1, 16, 16, 128], strides = [1, 1, 1, 1]} : vector<1x18x18x128xbf16> to vector<1x16x16x128xbf16>
    %20 = vector.extract_strided_slice %16 {offsets = [0, 1, 0, 0], sizes = [1, 16, 16, 128], strides = [1, 1, 1, 1]} : vector<1x18x18x128xbf16> to vector<1x16x16x128xbf16>
    %21 = vector.extract_strided_slice %16 {offsets = [0, 1, 1, 0], sizes = [1, 16, 16, 128], strides = [1, 1, 1, 1]} : vector<1x18x18x128xbf16> to vector<1x16x16x128xbf16>
    %22 = vector.extract_strided_slice %16 {offsets = [0, 1, 2, 0], sizes = [1, 16, 16, 128], strides = [1, 1, 1, 1]} : vector<1x18x18x128xbf16> to vector<1x16x16x128xbf16>
    %23 = vector.extract_strided_slice %16 {offsets = [0, 2, 0, 0], sizes = [1, 16, 16, 128], strides = [1, 1, 1, 1]} : vector<1x18x18x128xbf16> to vector<1x16x16x128xbf16>
    %24 = vector.extract_strided_slice %16 {offsets = [0, 2, 1, 0], sizes = [1, 16, 16, 128], strides = [1, 1, 1, 1]} : vector<1x18x18x128xbf16> to vector<1x16x16x128xbf16>
    %25 = vector.extract_strided_slice %16 {offsets = [0, 2, 2, 0], sizes = [1, 16, 16, 128], strides = [1, 1, 1, 1]} : vector<1x18x18x128xbf16> to vector<1x16x16x128xbf16>
    %26 = tpu.concatenate %17, %18, %19, %20, %21, %22, %23, %24, %25 in 3 : vector<1x16x16x128xbf16>, vector<1x16x16x128xbf16>, vector<1x16x16x128xbf16>, vector<1x16x16x128xbf16>, vector<1x16x16x128xbf16>, vector<1x16x16x128xbf16>, vector<1x16x16x128xbf16>, vector<1x16x16x128xbf16>, vector<1x16x16x128xbf16> -> vector<1x16x16x1152xbf16>
    %27 = vector.shape_cast %26 : vector<1x16x16x1152xbf16> to vector<256x1152xbf16>
    %c0_9 = arith.constant 0 : index
    %c0_10 = arith.constant 0 : index
    %28 = vector.load %arg4[%c0_9, %c0_10] : memref<1152x128xbf16, #tpu.memory_space<vmem>>, vector<1152x128xbf16>
    %cst_11 = arith.constant dense<0.000000e+00> : vector<256x128xf32>
    %29 = tpu.matmul %27, %28, %cst_11 {dimension_numbers = #tpu.dot_dimension_numbers<[1], [0], [0], [1], [0, 0, 1, 1], [], []>} : vector<256x1152xbf16>, vector<1152x128xbf16>, vector<256x128xf32> -> vector<256x128xf32>
    %30 = vector.shape_cast %29 : vector<256x128xf32> to vector<1x16x16x128xf32>
    %c0_12 = arith.constant 0 : index
    %c0_13 = arith.constant 0 : index
    %c0_14 = arith.constant 0 : index
    %c0_15 = arith.constant 0 : index
    %31 = vector.load %arg5[%c0_12, %c0_13, %c0_14, %c0_15] : memref<1x16x16x128xf32, #tpu.memory_space<vmem>>, vector<1x16x16x128xf32>
    tpu.vector_store %arg5[%c0_12, %c0_13, %c0_14, %c0_15], %30 {strides = array<i32>} : memref<1x16x16x128xf32, #tpu.memory_space<vmem>>, vector<1x16x16x128xf32>,
    %cst_16 = arith.constant dense<0.000000e+00> : vector<128xf32>
    %32 = vector.multi_reduction <add>, %29, %cst_16 [0] : vector<256x128xf32> to vector<128xf32>
    %33 = vector.shape_cast %32 : vector<128xf32> to vector<1x128xf32>
    %34 = vector.shape_cast %33 : vector<1x128xf32> to vector<1x1x128xf32>
    %c0_17 = arith.constant 0 : index
    %c0_18 = arith.constant 0 : index
    %c0_19 = arith.constant 0 : index
    %35 = vector.load %arg6[%c0_17, %c0_18, %c0_19] : memref<1x1x128xf32, #tpu.memory_space<vmem>>, vector<1x1x128xf32>
    tpu.vector_store %arg6[%c0_17, %c0_18, %c0_19], %34 {strides = array<i32>} : memref<1x1x128xf32, #tpu.memory_space<vmem>>, vector<1x1x128xf32>,
    %36 = arith.mulf %29, %29 : vector<256x128xf32>
    %cst_20 = arith.constant dense<0.000000e+00> : vector<128xf32>
    %37 = vector.multi_reduction <add>, %36, %cst_20 [0] : vector<256x128xf32> to vector<128xf32>
    %38 = vector.shape_cast %37 : vector<128xf32> to vector<1x128xf32>
    %39 = vector.shape_cast %38 : vector<1x128xf32> to vector<1x1x128xf32>
    %c0_21 = arith.constant 0 : index
    %c0_22 = arith.constant 0 : index
    %c0_23 = arith.constant 0 : index
    %40 = vector.load %arg7[%c0_21, %c0_22, %c0_23] : memref<1x1x128xf32, #tpu.memory_space<vmem>>, vector<1x1x128xf32>
    tpu.vector_store %arg7[%c0_21, %c0_22, %c0_23], %39 {strides = array<i32>} : memref<1x1x128xf32, #tpu.memory_space<vmem>>, vector<1x1x128xf32>,
    return
  }
  func.func @transform_0(%arg0: i32) -> (i32, i32, i32, i32) {
    %c0_i32 = arith.constant 0 : i32
    %c0_i32_0 = arith.constant 0 : i32
    %c0_i32_1 = arith.constant 0 : i32
    %c0_i32_2 = arith.constant 0 : i32
    return %arg0, %c0_i32, %c0_i32_0, %c0_i32_1 : i32, i32, i32, i32
  }
  func.func @transform_1(%arg0: i32) -> (i32, i32) {
    %c0_i32 = arith.constant 0 : i32
    %c0_i32_0 = arith.constant 0 : i32
    %c0_i32_1 = arith.constant 0 : i32
    return %c0_i32, %c0_i32_0 : i32, i32
  }
  func.func @transform_2(%arg0: i32) -> (i32, i32) {
    %c0_i32 = arith.constant 0 : i32
    %c0_i32_0 = arith.constant 0 : i32
    %c0_i32_1 = arith.constant 0 : i32
    return %c0_i32, %c0_i32_0 : i32, i32
  }
  func.func @transform_3(%arg0: i32) -> (i32, i32) {
    %c0_i32 = arith.constant 0 : i32
    %c0_i32_0 = arith.constant 0 : i32
    %c0_i32_1 = arith.constant 0 : i32
    return %c0_i32, %c0_i32_0 : i32, i32
  }
  func.func @transform_4(%arg0: i32) -> (i32, i32, i32, i32) {
    %c0_i32 = arith.constant 0 : i32
    %c0_i32_0 = arith.constant 0 : i32
    %c0_i32_1 = arith.constant 0 : i32
    %c0_i32_2 = arith.constant 0 : i32
    return %arg0, %c0_i32, %c0_i32_0, %c0_i32_1 : i32, i32, i32, i32
  }
  func.func @transform_5(%arg0: i32) -> (i32, i32, i32) {
    %c0_i32 = arith.constant 0 : i32
    %c0_i32_0 = arith.constant 0 : i32
    %c0_i32_1 = arith.constant 0 : i32
    return %arg0, %c0_i32, %c0_i32_0 : i32, i32, i32
  }
  func.func @transform_6(%arg0: i32) -> (i32, i32, i32) {
    %c0_i32 = arith.constant 0 : i32
    %c0_i32_0 = arith.constant 0 : i32
    %c0_i32_1 = arith.constant 0 : i32
    return %arg0, %c0_i32, %c0_i32_0 : i32, i32, i32
  }
}

</mosaic_0001>

<bundles_post_ra>
// kernel: residual_forward.5
= control target key start
LH: loop header
LB: loop body
LE: loop exit
PB: predicated region body
PF: predicated region fallthrough
CT: control target
= control target key end

     0   :  { %s582_s15 = smov 0   ;;  %s783_s0 = inlined_call_operand.vmem [shape: f32[2,16,16,128], index: 0, kind: input, shape index: {}]   ;;  %s784_s1 = inlined_call_operand.vmem [shape: f32[2,16,16,128], index: 1, kind: input, shape index: {}]   ;;  %s785_s2 = inlined_call_operand.vmem [shape: f32[1,128], index: 2, kind: input, shape index: {}]   ;;  %s786_s3 = inlined_call_operand.vmem [shape: f32[1,128], index: 3, kind: input, shape index: {}]   ;;  %s787_s4 = inlined_call_operand.vmem [shape: f32[2,16,16,128], index: 4, kind: output, shape index: {}]  }
   0x1 LB: > { %s523_s16 = sadd.s32 4294967295, %s555_s15   ;;  %p527_p0 = scmp.ge.s32.totalorder %s555_s15, 1  ;;  %s555_s15 = sphi %s582_s15, %s14_s15  }
   0x2   : > { %p172_p1 = scmp.lt.s32.totalorder %s555_s15, 3 }
   0x4   : > { %p173_p2 = pnand %p527_p0, %p172_p1 }
   0x5   : > { %p203_p3 = scmp.lt.s32.totalorder (!%p173_p2), %s523_s16, 1  ;;  %v595_v0 = vld [vmem:[%s785_s2] ss:$0 sm:$0xff] (!%p173_p2) }
   0x6   : > { %176 = sbr.rel (%p173_p2) target bundleno = 54 (0x36), region = 36  ;;  %v613_v2 = vld [vmem:[%s786_s3] ss:$0 sm:$0xff] (!%p173_p2) }
   0xd   : > { %s789_s16 = smov (!%p203_p3, %s523_s16), 1 }
   0xe   : > { %s590_s17 = sshll.u32 %s789_s16, 8 }
   0xf   : > { %s601_s22 = scalar_lea.vmem %s783_s0, %s590_s17  ;;  %s607_s25 = scalar_lea.vmem %s784_s1, %s590_s17 }
  0x10   : > { %v218_v1 = vld [vmem:[%s601_s22] sm:$0xff]  ;;  %v219_v3 = vld [vmem:[%s601_s22 + $0x8] sm:$0xff]  ;;  %v220_v6 = vld [vmem:[%s601_s22 + $0x10] sm:$0xff]  ;;  %s641_s30 = scalar_lea.vmem %s787_s4, %s590_s17 }
  0x11   : > { %v257_v4 = vsub.f32 %v218_v1, %v595_v0  ;;  %v258_v5 = vsub.f32 %v219_v3, %v595_v0  ;;  %v259_v7 = vsub.f32 %v220_v6, %v595_v0  ;;  %v221_v8 = vld [vmem:[%s601_s22 + $0x18] sm:$0xff]  ;;  %v222_v9 = vld [vmem:[%s601_s22 + $0x20] sm:$0xff]  ;;  %v223_v15 = vld [vmem:[%s601_s22 + $0x28] sm:$0xff] }
  0x12   : > { %v360_v11 = vld [vmem:[%s607_s25] sm:$0xff]  ;;  %v260_v13 = vsub.f32 %v221_v8, %v595_v0  ;;  %v261_v14 = vsub.f32 %v222_v9, %v595_v0  ;;  %v361_v16 = vld [vmem:[%s607_s25 + $0x8] sm:$0xff]  ;;  %v262_v18 = vsub.f32 %v223_v15, %v595_v0  ;;  %v224_v19 = vld [vmem:[%s601_s22 + $0x30] sm:$0xff] }
  0x13   : > { %v296_v10 = vmul.f32 %v613_v2, %v257_v4  ;;  %v297_v12 = vmul.f32 %v613_v2, %v258_v5  ;;  %v298_v17 = vmul.f32 %v613_v2, %v259_v7  ;;  %v225_v20 = vld [vmem:[%s601_s22 + $0x38] sm:$0xff]  ;;  %v362_v23 = vld [vmem:[%s607_s25 + $0x10] sm:$0xff]  ;;  %v364_v28 = vld [vmem:[%s607_s25 + $0x20] sm:$0xff]  ;;  %v263_v30 = vsub.f32 %v224_v19, %v595_v0 }
  0x14   : > { %v299_v24 = vmul.f32 %v613_v2, %v260_v13  ;;  %v363_v25 = vld [vmem:[%s607_s25 + $0x18] sm:$0xff]  ;;  %v300_v26 = vmul.f32 %v613_v2, %v261_v14  ;;  %v301_v29 = vmul.f32 %v613_v2, %v262_v18  ;;  %v264_v31 = vsub.f32 %v225_v20, %v595_v0  ;;  %v226_v32 = vld [vmem:[%s601_s22 + $0x40] sm:$0xff]  ;;  %v227_v33 = vld [vmem:[%s601_s22 + $0x48] sm:$0xff] }
  0x15   : > { %v328_v21 = vmax.f32 %v296_v10, 0.0  ;;  %v329_v22 = vmax.f32 %v297_v12, 0.0  ;;  %v330_v27 = vmax.f32 %v298_v17, 0.0  ;;  %v365_v38 = vld [vmem:[%s607_s25 + $0x28] sm:$0xff]  ;;  %v228_v39 = vld [vmem:[%s601_s22 + $0x50] sm:$0xff]  ;;  %v302_v42 = vmul.f32 %v613_v2, %v263_v30  ;;  %v229_v44 = vld [vmem:[%s601_s22 + $0x58] sm:$0xff] }
  0x16   : > { %v331_v36 = vmax.f32 %v299_v24, 0.0  ;;  %v332_v37 = vmax.f32 %v300_v26, 0.0  ;;  %v333_v41 = vmax.f32 %v301_v29, 0.0  ;;  %v303_v43 = vmul.f32 %v613_v2, %v264_v31  ;;  %v230_v45 = vld [vmem:[%s601_s22 + $0x60] sm:$0xff]  ;;  %v366_v48 = vld [vmem:[%s607_s25 + $0x30] sm:$0xff]  ;;  %v367_v49 = vld [vmem:[%s607_s25 + $0x38] sm:$0xff] }
  0x17   : > { %v392_v34 = vadd.f32 %v360_v11, %v328_v21  ;;  %v393_v35 = vadd.f32 %v361_v16, %v329_v22  ;;  %v394_v40 = vadd.f32 %v362_v23, %v330_v27  ;;  %v265_v50 = vsub.f32 %v226_v32, %v595_v0  ;;  %v231_v52 = vld [vmem:[%s601_s22 + $0x68] sm:$0xff]  ;;  %v232_v61 = vld [vmem:[%s601_s22 + $0x70] sm:$0xff]  ;;  %v233_v62 = vld [vmem:[%s601_s22 + $0x78] sm:$0xff] }
  0x18   : > { %v395_v46 = vadd.f32 %v363_v25, %v331_v36  ;;  %v396_v47 = vadd.f32 %v364_v28, %v332_v37  ;;  %v266_v51 = vsub.f32 %v227_v33, %v595_v0  ;;  %v397_v53 = vadd.f32 %v365_v38, %v333_v41  ;;  %v368_v3 = vld [vmem:[%s607_s25 + $0x40] sm:$0xff]  ;;  %v369_v4 = vld [vmem:[%s607_s25 + $0x48] sm:$0xff]  ;;  %v370_v9 = vld [vmem:[%s607_s25 + $0x50] sm:$0xff] }
  0x19   : > { %424 = vst [vmem:[%s641_s30] sm:$0xff] %v392_v34  ;;  %425 = vst [vmem:[%s641_s30 + $0x8] sm:$0xff] %v393_v35  ;;  %v334_v54 = vmax.f32 %v302_v42, 0.0  ;;  %v335_v55 = vmax.f32 %v303_v43, 0.0  ;;  %v267_v56 = vsub.f32 %v228_v39, %v595_v0  ;;  %v304_v57 = vmul.f32 %v613_v2, %v265_v50  ;;  %v371_v11 = vld [vmem:[%s607_s25 + $0x58] sm:$0xff]  ;;  %v372_v14 = vld [vmem:[%s607_s25 + $0x60] sm:$0xff] }
  0x1a   : > { %426 = vst [vmem:[%s641_s30 + $0x10] sm:$0xff] %v394_v40  ;;  %427 = vst [vmem:[%s641_s30 + $0x18] sm:$0xff] %v395_v46  ;;  %v305_v58 = vmul.f32 %v613_v2, %v266_v51  ;;  %v268_v59 = vsub.f32 %v229_v44, %v595_v0  ;;  %v269_v60 = vsub.f32 %v230_v45, %v595_v0  ;;  %v234_v18 = vld [vmem:[%s601_s22 + $0x80] sm:$0xff]  ;;  %v235_v19 = vld [vmem:[%s601_s22 + $0x88] sm:$0xff] }
  0x1b   : > { %428 = vst [vmem:[%s641_s30 + $0x20] sm:$0xff] %v396_v47  ;;  %429 = vst [vmem:[%s641_s30 + $0x28] sm:$0xff] %v397_v53  ;;  %v398_v63 = vadd.f32 %v366_v48, %v334_v54  ;;  %v399_v1 = vadd.f32 %v367_v49, %v335_v55  ;;  %v306_v5 = vmul.f32 %v613_v2, %v267_v56  ;;  %v336_v7 = vmax.f32 %v304_v57, 0.0  ;;  %v373_v24 = vld [vmem:[%s607_s25 + $0x68] sm:$0xff]  ;;  %v236_v25 = vld [vmem:[%s601_s22 + $0x90] sm:$0xff] }
  0x1c   : > { %v270_v6 = vsub.f32 %v231_v52, %v595_v0  ;;  %v337_v8 = vmax.f32 %v305_v58, 0.0  ;;  %v307_v10 = vmul.f32 %v613_v2, %v268_v59  ;;  %v308_v12 = vmul.f32 %v613_v2, %v269_v60  ;;  %v237_v30 = vld [vmem:[%s601_s22 + $0x98] sm:$0xff]  ;;  %v238_v31 = vld [vmem:[%s601_s22 + $0xa0] sm:$0xff]  ;;  %v374_v34 = vld [vmem:[%s607_s25 + $0x70] sm:$0xff] }
  0x1d   : > { %430 = vst [vmem:[%s641_s30 + $0x30] sm:$0xff] %v398_v63  ;;  %431 = vst [vmem:[%s641_s30 + $0x38] sm:$0xff] %v399_v1  ;;  %v338_v13 = vmax.f32 %v306_v5, 0.0  ;;  %v271_v16 = vsub.f32 %v232_v61, %v595_v0  ;;  %v272_v17 = vsub.f32 %v233_v62, %v595_v0  ;;  %v400_v20 = vadd.f32 %v368_v3, %v336_v7  ;;  %v375_v35 = vld [vmem:[%s607_s25 + $0x78] sm:$0xff]  ;;  %v239_v38 = vld [vmem:[%s601_s22 + $0xa8] sm:$0xff] }
  0x1e   : > { %v309_v15 = vmul.f32 %v613_v2, %v270_v6  ;;  %v401_v21 = vadd.f32 %v369_v4, %v337_v8  ;;  %v339_v22 = vmax.f32 %v307_v10, 0.0  ;;  %v340_v23 = vmax.f32 %v308_v12, 0.0  ;;  %v240_v47 = vld [vmem:[%s601_s22 + $0xb0] sm:$0xff]  ;;  %v241_v48 = vld [vmem:[%s601_s22 + $0xb8] sm:$0xff]  ;;  %v376_v51 = vld [vmem:[%s607_s25 + $0x80] sm:$0xff] }
  0x1f   : > { %v402_v26 = vadd.f32 %v370_v9, %v338_v13  ;;  %v310_v28 = vmul.f32 %v613_v2, %v271_v16  ;;  %v311_v29 = vmul.f32 %v613_v2, %v272_v17  ;;  %432 = vst [vmem:[%s641_s30 + $0x40] sm:$0xff] %v400_v20  ;;  %v273_v36 = vsub.f32 %v234_v18, %v595_v0  ;;  %v377_v52 = vld [vmem:[%s607_s25 + $0x88] sm:$0xff]  ;;  %v378_v57 = vld [vmem:[%s607_s25 + $0x90] sm:$0xff]  ;;  %v379_v59 = vld [vmem:[%s607_s25 + $0x98] sm:$0xff] }
  0x20   : > { %v341_v27 = vmax.f32 %v309_v15, 0.0  ;;  %433 = vst [vmem:[%s641_s30 + $0x48] sm:$0xff] %v401_v21  ;;  %v403_v32 = vadd.f32 %v371_v11, %v339_v22  ;;  %v404_v33 = vadd.f32 %v372_v14, %v340_v23  ;;  %v274_v37 = vsub.f32 %v235_v19, %v595_v0  ;;  %v380_v62 = vld [vmem:[%s607_s25 + $0xa0] sm:$0xff]  ;;  %v243_v5 = vld [vmem:[%s601_s22 + $0xc8] sm:$0xff]  ;;  %v244_v11 = vld [vmem:[%s601_s22 + $0xd0] sm:$0xff] }
  0x21   : > { %434 = vst [vmem:[%s641_s30 + $0x50] sm:$0xff] %v402_v26  ;;  %v342_v40 = vmax.f32 %v310_v28, 0.0  ;;  %v343_v41 = vmax.f32 %v311_v29, 0.0  ;;  %v275_v42 = vsub.f32 %v236_v25, %v595_v0  ;;  %v312_v43 = vmul.f32 %v613_v2, %v273_v36  ;;  %v242_v4 = vld [vmem:[%s601_s22 + $0xc0] sm:$0xff]  ;;  %v381_v10 = vld [vmem:[%s607_s25 + $0xa8] sm:$0xff]  ;;  %v245_v16 = vld [vmem:[%s601_s22 + $0xd8] sm:$0xff] }
  0x22   : > { %v405_v39 = vadd.f32 %v373_v24, %v341_v27  ;;  %435 = vst [vmem:[%s641_s30 + $0x58] sm:$0xff] %v403_v32  ;;  %436 = vst [vmem:[%s641_s30 + $0x60] sm:$0xff] %v404_v33  ;;  %v313_v44 = vmul.f32 %v613_v2, %v274_v37  ;;  %v276_v45 = vsub.f32 %v237_v30, %v595_v0  ;;  %v246_v17 = vld [vmem:[%s601_s22 + $0xe0] sm:$0xff]  ;;  %v382_v20 = vld [vmem:[%s607_s25 + $0xb0] sm:$0xff] }
  0x23   : > { %v277_v46 = vsub.f32 %v238_v31, %v595_v0  ;;  %v406_v49 = vadd.f32 %v374_v34, %v342_v40  ;;  %v407_v50 = vadd.f32 %v375_v35, %v343_v41  ;;  %v314_v53 = vmul.f32 %v613_v2, %v275_v42  ;;  %v383_v21 = vld [vmem:[%s607_s25 + $0xb8] sm:$0xff]  ;;  %v247_v24 = vld [vmem:[%s601_s22 + $0xe8] sm:$0xff]  ;;  %v248_v33 = vld [vmem:[%s601_s22 + $0xf0] sm:$0xff] }
  0x24   : > { %437 = vst [vmem:[%s641_s30 + $0x68] sm:$0xff] %v405_v39  ;;  %v278_v54 = vsub.f32 %v239_v38, %v595_v0  ;;  %v344_v55 = vmax.f32 %v312_v43, 0.0  ;;  %v345_v56 = vmax.f32 %v313_v44, 0.0  ;;  %v315_v58 = vmul.f32 %v613_v2, %v276_v45  ;;  %v249_v34 = vld [vmem:[%s601_s22 + $0xf8] sm:$0xff]  ;;  %v384_v37 = vld [vmem:[%s607_s25 + $0xc0] sm:$0xff]  ;;  %v385_v38 = vld [vmem:[%s607_s25 + $0xc8] sm:$0xff] }
  0x25   : > { %v316_v60 = vmul.f32 %v613_v2, %v277_v46  ;;  %438 = vst [vmem:[%s641_s30 + $0x70] sm:$0xff] %v406_v49  ;;  %439 = vst [vmem:[%s641_s30 + $0x78] sm:$0xff] %v407_v50  ;;  %v346_v61 = vmax.f32 %v314_v53, 0.0  ;;  %v279_v1 = vsub.f32 %v240_v47, %v595_v0  ;;  %v280_v3 = vsub.f32 %v241_v48, %v595_v0  ;;  %v386_v43 = vld [vmem:[%s607_s25 + $0xd0] sm:$0xff]  ;;  %v387_v47 = vld [vmem:[%s607_s25 + $0xd8] sm:$0xff] }
  0x26   : > { %v317_v63 = vmul.f32 %v613_v2, %v278_v54  ;;  %v408_v6 = vadd.f32 %v376_v51, %v344_v55  ;;  %v409_v7 = vadd.f32 %v377_v52, %v345_v56  ;;  %v347_v8 = vmax.f32 %v315_v58, 0.0  ;;  %v388_v48 = vld [vmem:[%s607_s25 + $0xe0] sm:$0xff]  ;;  %v389_v56 = vld [vmem:[%s607_s25 + $0xe8] sm:$0xff] }
  0x27   : > { %v348_v9 = vmax.f32 %v316_v60, 0.0  ;;  %v410_v12 = vadd.f32 %v378_v57, %v346_v61  ;;  %v318_v14 = vmul.f32 %v613_v2, %v279_v1  ;;  %v319_v15 = vmul.f32 %v613_v2, %v280_v3 }
  0x28   : > { %v349_v13 = vmax.f32 %v317_v63, 0.0  ;;  %440 = vst [vmem:[%s641_s30 + $0x80] sm:$0xff] %v408_v6  ;;  %441 = vst [vmem:[%s641_s30 + $0x88] sm:$0xff] %v409_v7  ;;  %v411_v18 = vadd.f32 %v379_v59, %v347_v8  ;;  %v281_v22 = vsub.f32 %v242_v4, %v595_v0  ;;  %v282_v23 = vsub.f32 %v243_v5, %v595_v0  ;;  %v391_v63 = vld [vmem:[%s607_s25 + $0xf8] sm:$0xff] }
  0x29   : > { %v412_v19 = vadd.f32 %v380_v62, %v348_v9  ;;  %442 = vst [vmem:[%s641_s30 + $0x90] sm:$0xff] %v410_v12  ;;  %v350_v26 = vmax.f32 %v318_v14, 0.0  ;;  %v351_v27 = vmax.f32 %v319_v15, 0.0  ;;  %v283_v28 = vsub.f32 %v244_v11, %v595_v0  ;;  %v390_v62 = vld [vmem:[%s607_s25 + $0xf0] sm:$0xff] }
  0x2a   : > { %v413_v25 = vadd.f32 %v381_v10, %v349_v13  ;;  %443 = vst [vmem:[%s641_s30 + $0x98] sm:$0xff] %v411_v18  ;;  %v320_v29 = vmul.f32 %v613_v2, %v281_v22  ;;  %v321_v30 = vmul.f32 %v613_v2, %v282_v23  ;;  %v284_v31 = vsub.f32 %v245_v16, %v595_v0 }
  0x2b   : > { %444 = vst [vmem:[%s641_s30 + $0xa0] sm:$0xff] %v412_v19  ;;  %v285_v32 = vsub.f32 %v246_v17, %v595_v0  ;;  %v414_v35 = vadd.f32 %v382_v20, %v350_v26  ;;  %v415_v36 = vadd.f32 %v383_v21, %v351_v27  ;;  %v322_v39 = vmul.f32 %v613_v2, %v283_v28 }
  0x2c   : > { %445 = vst [vmem:[%s641_s30 + $0xa8] sm:$0xff] %v413_v25  ;;  %v286_v40 = vsub.f32 %v247_v24, %v595_v0  ;;  %v352_v41 = vmax.f32 %v320_v29, 0.0  ;;  %v353_v42 = vmax.f32 %v321_v30, 0.0  ;;  %v323_v44 = vmul.f32 %v613_v2, %v284_v31 }
  0x2d   : > { %v324_v45 = vmul.f32 %v613_v2, %v285_v32  ;;  %446 = vst [vmem:[%s641_s30 + $0xb0] sm:$0xff] %v414_v35  ;;  %447 = vst [vmem:[%s641_s30 + $0xb8] sm:$0xff] %v415_v36  ;;  %v354_v46 = vmax.f32 %v322_v39, 0.0  ;;  %v287_v50 = vsub.f32 %v248_v33, %v595_v0  ;;  %v288_v51 = vsub.f32 %v249_v34, %v595_v0 }
  0x2e   : > { %v325_v49 = vmul.f32 %v613_v2, %v286_v40  ;;  %v416_v52 = vadd.f32 %v384_v37, %v352_v41  ;;  %v417_v53 = vadd.f32 %v385_v38, %v353_v42  ;;  %v355_v54 = vmax.f32 %v323_v44, 0.0 }
  0x2f   : > { %v356_v55 = vmax.f32 %v324_v45, 0.0  ;;  %v418_v57 = vadd.f32 %v386_v43, %v354_v46  ;;  %v326_v59 = vmul.f32 %v613_v2, %v287_v50  ;;  %v327_v60 = vmul.f32 %v613_v2, %v288_v51 }
  0x30   : > { %v357_v58 = vmax.f32 %v325_v49, 0.0  ;;  %448 = vst [vmem:[%s641_s30 + $0xc0] sm:$0xff] %v416_v52  ;;  %449 = vst [vmem:[%s641_s30 + $0xc8] sm:$0xff] %v417_v53  ;;  %v419_v0 = vadd.f32 %v387_v47, %v355_v54 }
  0x31   : > { %v420_v61 = vadd.f32 %v388_v48, %v356_v55  ;;  %450 = vst [vmem:[%s641_s30 + $0xd0] sm:$0xff] %v418_v57  ;;  %v358_v3 = vmax.f32 %v326_v59, 0.0  ;;  %v359_v4 = vmax.f32 %v327_v60, 0.0 }
  0x32   : > { %v421_v1 = vadd.f32 %v389_v56, %v357_v58  ;;  %451 = vst [vmem:[%s641_s30 + $0xd8] sm:$0xff] %v419_v0 }
  0x33   : > { %452 = vst [vmem:[%s641_s30 + $0xe0] sm:$0xff] %v420_v61  ;;  %v422_v5 = vadd.f32 %v390_v62, %v358_v3  ;;  %v423_v6 = vadd.f32 %v391_v63, %v359_v4 }
  0x34   : > { %453 = vst [vmem:[%s641_s30 + $0xe8] sm:$0xff] %v421_v1 }
  0x35   : > { %454 = vst [vmem:[%s641_s30 + $0xf0] sm:$0xff] %v422_v5  ;;  %455 = vst [vmem:[%s641_s30 + $0xf8] sm:$0xff] %v423_v6 }
  0x36 PF: > { %s14_s15 = sadd.s32 1, %s555_s15  }
  0x37   : > { %p11_p4 = scmp.ge.s32.totalorder %s14_s15, 4  }
  0x39   :  { %13 = sbr.rel (!%p11_p4) target bundleno = 1 (0x1), region = 69 }

// kernel: residual_forward.3
= control target key start
LH: loop header
LB: loop body
LE: loop exit
PB: predicated region body
PF: predicated region fallthrough
CT: control target
= control target key end

     0   :  { %s3428_s15 = smov 0   ;;  %s4556_s0 = inlined_call_operand.vmem [shape: f32[2,16,16,128], index: 0, kind: input, shape index: {}]   ;;  %s4557_s1 = inlined_call_operand.vmem [shape: bf16[1152,128], index: 1, kind: input, shape index: {}]   ;;  %s4558_s2 = inlined_call_operand.vmem [shape: bf16[2,16,16,128], index: 2, kind: output, shape index: {0}]   ;;  %s4559_s3 = inlined_call_operand.vmem [shape: f32[2,1,128], index: 3, kind: output, shape index: {1}]   ;;  %s4560_s4 = inlined_call_operand.vmem [shape: f32[2,1,128], index: 4, kind: output, shape index: {2}]  }
   0x1 LB: > { %s2533_s16 = sadd.s32 4294967295, %s3400_s15   ;;  %p2537_p0 = scmp.ge.s32.totalorder %s3400_s15, 1  ;;  %s3400_s15 = sphi %s3428_s15, %s15_s15  }
   0x2   : > { %p167_p1 = scmp.lt.s32.totalorder %s3400_s15, 3 }
   0x4   : > { %p168_p2 = pnand %p2537_p0, %p167_p1 }
   0x5   : > { %v3322_v0 = vld [vmem:[%s4557_s1 + $0x40] sm:$0xff] (!%p168_p2)   ;;  %v3324_v2 = vld [vmem:[%s4557_s1 + $0x48] sm:$0xff] (!%p168_p2)   ;;  %p199_p3 = scmp.lt.s32.totalorder (!%p168_p2), %s2533_s16, 1  ;;  %v3326_v4 = vld [vmem:[%s4557_s1 + $0x50] sm:$0xff] (!%p168_p2)   ;;  %v3402_v9 = vmov (!%p168_p2), 0   ;;  %vm417_vm0 = vcmask (!%p168_p2), 1040384  }
   0x6   : > { %171 = sbr.rel (%p168_p2) target bundleno = 557 (0x22d), region = 28  ;;  %v3323_v1 = vld [vmem:[%s4557_s1] sm:$0xff] (!%p168_p2)   ;;  %2777 = vmatprep.subr.bf16.mxu0 (!%p168_p2), %v3322_v0  ;;  %3297 = vmatprep.subr.bf16.mxu1 (!%p168_p2), %v3322_v0  ;;  %v3325_v3 = vld [vmem:[%s4557_s1 + $0x8] sm:$0xff] (!%p168_p2)   ;;  %v3327_v5 = vld [vmem:[%s4557_s1 + $0x10] sm:$0xff] (!%p168_p2)   ;;  %v267_v10 = vrot.slane (!%p168_p2), %v3402_v9, 7  ;;  %vm695_vm4 = vcmask (!%p168_p2), 1046528  }
   0x7   : > { %2778 = vmatpush3.bf16.msra.mxu0 (!%p168_p2), %v3323_v1  ;;  %3305 = vmatpush3.bf16.msra.mxu1 (!%p168_p2), %v3323_v1  ;;  %v3328_v6 = vld [vmem:[%s4557_s1 + $0x58] sm:$0xff] (!%p168_p2)   ;;  %v3330_v8 = vld [vmem:[%s4557_s1 + $0x60] sm:$0xff] (!%p168_p2)   ;;  %v3332_v12 = vld [vmem:[%s4557_s1 + $0x68] sm:$0xff] (!%p168_p2)   ;;  %vm418_vm1 = vsmask.f32 (!%p168_p2), 256 }
   0x8   : > { %2779 = vmatprep.subr.bf16.mxu0 (!%p168_p2), %v3324_v2  ;;  %3298 = vmatprep.subr.bf16.mxu1 (!%p168_p2), %v3324_v2  ;;  %v3329_v7 = vld [vmem:[%s4557_s1 + $0x18] sm:$0xff] (!%p168_p2)   ;;  %v3331_v11 = vld [vmem:[%s4557_s1 + $0x20] sm:$0xff] (!%p168_p2)   ;;  %vm3479_vm2 = vmand (!%p168_p2), %vm417_vm0, %vm418_vm1  ;;  %vm454_vm3 = vsmask.f32 (!%p168_p2), 7424 }
   0x9   : > { %v3333_v17 = vld [vmem:[%s4557_s1 + $0x28] sm:$0xff] (!%p168_p2)   ;;  %v3488_v18 = vsel (!%p168_p2), %vm3479_vm2, 0, %v267_v10  ;;  %v3492_v19 = vsel (!%p168_p2), %vm3479_vm2, %v267_v10, 0  ;;  %v3334_v20 = vld [vmem:[%s4557_s1 + $0x70] sm:$0xff] (!%p168_p2)   ;;  %v3336_v31 = vld [vmem:[%s4557_s1 + $0x78] sm:$0xff] (!%p168_p2)  }
   0xa   : > { %v456_v21 = vshrl.u32 (!%p168_p2), %v3488_v18, 16  ;;  %v458_v22 = vshll.u32 (!%p168_p2), %v3488_v18, 16  ;;  %v463_v23 = vshll.u32 (!%p168_p2), %v3492_v19, 16  ;;  %v3335_v28 = vld [vmem:[%s4557_s1 + $0x30] sm:$0xff] (!%p168_p2)   ;;  %v3337_v41 = vld [vmem:[%s4557_s1 + $0x38] sm:$0xff] (!%p168_p2)   ;;  %v3338_v46 = vld [vmem:[%s4557_s1 + $0xc0] sm:$0xff] (!%p168_p2)  }
   0xb   : > { %2780 = vmatpush3.bf16.msra.mxu0 (!%p168_p2), %v3325_v3  ;;  %3306 = vmatpush3.bf16.msra.mxu1 (!%p168_p2), %v3325_v3  ;;  %v3339_v48 = vld [vmem:[%s4557_s1 + $0x140] sm:$0xff] (!%p168_p2)   ;;  %v3342_v59 = vld [vmem:[%s4557_s1 + $0xc8] sm:$0xff] (!%p168_p2)  }
   0xc   : > { %2781 = vmatprep.subr.bf16.mxu0 (!%p168_p2), %v3326_v4  ;;  %3299 = vmatprep.subr.bf16.mxu1 (!%p168_p2), %v3326_v4  ;;  %v460_v26 = vrot.slane (!%p168_p2), %v458_v22, 1  ;;  %v465_v27 = vrot.slane (!%p168_p2), %v463_v23, 1  ;;  %v3340_v55 = vld [vmem:[%s4557_s1 + $0x80] sm:$0xff] (!%p168_p2)   ;;  %v3347_v62 = vld [vmem:[%s4557_s1 + $0x148] sm:$0xff] (!%p168_p2)  }
   0xd   : > { %s4564_s16 = smov (!%p199_p3, %s2533_s16), 1  ;;  %v3341_v56 = vld [vmem:[%s4557_s1 + $0x100] sm:$0xff]  }
   0xe   : > { %s2648_s5 = sshll.u32 %s4564_s16, 8  ;;  %v461_v30 = vor.u32 %v460_v26, %v456_v21  ;;  %s214_s8 = scalar_lea.vmem %s4560_s4, %s4564_s16 }
   0xf   : > { %2782 = vmatpush3.bf16.msra.mxu0 %v3327_v5  ;;  %3307 = vmatpush3.bf16.msra.mxu1 %v3327_v5  ;;  %s3469_s12 = scalar_lea.vmem %s4556_s0, %s2648_s5  ;;  %s211_s5 = scalar_lea.vmem %s4559_s3, %s4564_s16 }
  0x10   : > { %2783 = vmatprep.subr.bf16.mxu0 %v3328_v6  ;;  %3300 = vmatprep.subr.bf16.mxu1 %v3328_v6  ;;  %v238_v13 = vld [vmem:[%s3469_s12 + $0xb0] sm:$0xff]  ;;  %v239_v14 = vld [vmem:[%s3469_s12 + $0xb8] sm:$0xff]  ;;  %v216_v34 = vld [vmem:[%s3469_s12] sm:$0xff]  ;;  %v3513_v36 = vsel %vm454_vm3, %v461_v30, %v465_v27 }
  0x11   : > { %v259_v16 = vpack.c.bf16 %v239_v14, %v238_v13  ;;  %v217_v35 = vld [vmem:[%s3469_s12 + $0x8] sm:$0xff]  ;;  %v240_v39 = vld [vmem:[%s3469_s12 + $0xc0] sm:$0xff]  ;;  %1387 = vmatprep.mubr.bf16.mxu0 %v3513_v36  ;;  %v218_v5 = vld [vmem:[%s3469_s12 + $0x10] sm:$0xff] }
  0x12   : > { %v248_v38 = vpack.c.bf16 %v217_v35, %v216_v34  ;;  %v241_v40 = vld [vmem:[%s3469_s12 + $0xc8] sm:$0xff]  ;;  %v219_v6 = vld [vmem:[%s3469_s12 + $0x18] sm:$0xff]  ;;  %v220_v35 = vld [vmem:[%s3469_s12 + $0x20] sm:$0xff] }
  0x13   : > { %2784 = vmatpush3.bf16.msra.mxu0 %v3329_v7  ;;  %3308 = vmatpush3.bf16.msra.mxu1 %v3329_v7  ;;  %v349_v24 = vshrl.u32 %v259_v16, 16  ;;  %v352_v25 = vshll.u32 %v259_v16, 16  ;;  %v260_v43 = vpack.c.bf16 %v241_v40, %v240_v39  ;;  %v242_v7 = vld [vmem:[%s3469_s12 + $0xd0] sm:$0xff]  ;;  %v221_v40 = vld [vmem:[%s3469_s12 + $0x28] sm:$0xff] }
  0x14   : > { %2785 = vmatprep.subr.bf16.mxu0 %v3330_v8  ;;  %3301 = vmatprep.subr.bf16.mxu1 %v3330_v8  ;;  %v272_v47 = vshrl.u32 %v248_v38, 16  ;;  %v275_v49 = vshll.u32 %v248_v38, 16  ;;  %v3343_v8 = vld [vmem:[%s4557_s1 + $0x88] sm:$0xff]   ;;  %v3344_v16 = vld [vmem:[%s4557_s1 + $0xd0] sm:$0xff]  }
  0x15   : > { %v351_v29 = vrot.slane %v349_v24, 7  ;;  %v356_v50 = vshrl.u32 %v260_v43, 16  ;;  %v359_v51 = vshll.u32 %v260_v43, 16  ;;  %v245_v43 = vld [vmem:[%s3469_s12 + $0xe8] sm:$0xff] }
  0x16   : > { %v274_v54 = vrot.slane %v272_v47, 7 }
  0x17   : > { %2786 = vmatpush3.bf16.msra.mxu0 %v3331_v11  ;;  %3309 = vmatpush3.bf16.msra.mxu1 %v3331_v11  ;;  %v354_v32 = vor.u32 %v352_v25, %v351_v29  ;;  %v3508_v33 = vsel %vm3479_vm2, %v351_v29, 0  ;;  %v358_v57 = vrot.slane %v356_v50, 7  ;;  %v3345_v29 = vld [vmem:[%s4557_s1 + $0x90] sm:$0xff]  }
  0x18   : > { %2787 = vmatprep.subr.bf16.mxu0 %v3332_v12  ;;  %3302 = vmatprep.subr.bf16.mxu1 %v3332_v12  ;;  %v607_v37 = vshll.u32 %v3508_v33, 16  ;;  %v277_v60 = vor.u32 %v275_v49, %v274_v54  ;;  %v3545_v61 = vsel %vm3479_vm2, %v274_v54, 0  ;;  %v243_v12 = vld [vmem:[%s3469_s12 + $0xd8] sm:$0xff] }
  0x19   : > { %v3524_v42 = vsel %vm3479_vm2, 0, %v354_v32  ;;  %v475_v63 = vshll.u32 %v3545_v61, 16  ;;  %v361_v0 = vor.u32 %v359_v51, %v358_v57  ;;  %v3553_v1 = vsel %vm3479_vm2, %v358_v57, 0  ;;  %v3348_v49 = vld [vmem:[%s4557_s1 + $0x98] sm:$0xff]  }
  0x1a   : > { %v600_v44 = vshrl.u32 %v3524_v42, 16  ;;  %v602_v45 = vshll.u32 %v3524_v42, 16  ;;  %v609_v53 = vrot.slane %v607_v37, 1  ;;  %v3560_v3 = vsel %vm3479_vm2, 0, %v277_v60 }
  0x1b   : > { %2788 = vmatpush3.bf16.msra.mxu0 %v3333_v17  ;;  %3310 = vmatpush3.bf16.msra.mxu1 %v3333_v17  ;;  %v619_v4 = vshll.u32 %v3553_v1, 16  ;;  %v468_v9 = vshrl.u32 %v3560_v3, 16  ;;  %v470_v10 = vshll.u32 %v3560_v3, 16  ;;  %v3575_v11 = vsel %vm3479_vm2, 0, %v361_v0  ;;  %v3349_v17 = vld [vmem:[%s4557_s1 + $0x108] sm:$0xff]  }
  0x1c   : > { %2789 = vmatprep.subr.bf16.mxu0 %v3334_v20  ;;  %3303 = vmatprep.subr.bf16.mxu1 %v3334_v20  ;;  %v604_v52 = vrot.slane %v602_v45, 1  ;;  %v612_v13 = vshrl.u32 %v3575_v11, 16  ;;  %v614_v14 = vshll.u32 %v3575_v11, 16  ;;  %v249_v20 = vpack.c.bf16 %v219_v6, %v218_v5  ;;  %v3346_v45 = vld [vmem:[%s4557_s1 + $0xd8] sm:$0xff]  }
  0x1d   : > { %v472_v21 = vrot.slane %v470_v10, 1  ;;  %v477_v22 = vrot.slane %v475_v63, 1  ;;  %v261_v23 = vpack.c.bf16 %v243_v12, %v242_v7  ;;  %v621_v25 = vrot.slane %v619_v4, 1  ;;  %v3357_v12 = vld [vmem:[%s4557_s1 + $0x110] sm:$0xff]  }
  0x1e   : > { %v605_v58 = vor.u32 %v604_v52, %v600_v44  ;;  %v616_v24 = vrot.slane %v614_v14, 1  ;;  %v279_v26 = vshrl.u32 %v249_v20, 16  ;;  %v282_v27 = vshll.u32 %v249_v20, 16 }
  0x1f   : > { %2790 = vmatpush3.bf16.msra.mxu0 %v3335_v28  ;;  %3311 = vmatpush3.bf16.msra.mxu1 %v3335_v28  ;;  %v473_v28 = vor.u32 %v472_v21, %v468_v9  ;;  %v363_v30 = vshrl.u32 %v261_v23, 16  ;;  %v697_v37 = vrot.slane %v3492_v19, 1 }
  0x20   : > { %2791 = vmatprep.subr.bf16.mxu0 %v3336_v31  ;;  %3304 = vmatprep.subr.bf16.mxu1 %v3336_v31  ;;  %v3556_v2 = vsel %vm454_vm3, %v605_v58, %v609_v53  ;;  %v366_v31 = vshll.u32 %v261_v23, 16  ;;  %v617_v32 = vor.u32 %v616_v24, %v612_v13  ;;  %v281_v34 = vrot.slane %v279_v26, 7 }
  0x21   : > { %1483 = vmatprep.mubr.bf16.mxu1 %v3556_v2  ;;  %v3593_v38 = vsel %vm454_vm3, %v473_v28, %v477_v22  ;;  %v365_v39 = vrot.slane %v363_v30, 7  ;;  %v696_v22 = vrot.slane %v3488_v18, 1  ;;  %v223_v30 = vld [vmem:[%s3469_s12 + $0x38] sm:$0xff] }
  0x22   : > { %v3600_v44 = vsel %vm454_vm3, %v617_v32, %v621_v25  ;;  %v3607_v47 = vsel %vm3479_vm2, %v281_v34, 0  ;;  %v222_v25 = vld [vmem:[%s3469_s12 + $0x30] sm:$0xff]  ;;  %v3352_v32 = vld [vmem:[%s4557_s1 + $0xe8] sm:$0xff]  }
  0x23   : > { %2792 = vmatpush3.bf16.msra.mxu0 %v3337_v41  ;;  %3312 = vmatpush3.bf16.msra.mxu1 %v3337_v41  ;;  %v244_v41 = vld [vmem:[%s3469_s12 + $0xe0] sm:$0xff]  ;;  %v487_v50 = vshll.u32 %v3607_v47, 16  ;;  %v368_v51 = vor.u32 %v366_v31, %v365_v39  ;;  %v3617_v52 = vsel %vm3479_vm2, %v365_v39, 0  ;;  %v251_v39 = vpack.c.bf16 %v223_v30, %v222_v25 }
  0x24   : > { %2889 = vmatprep.subr.bf16.mxu1 %v3338_v46  ;;  %3001 = vmatprep.subr.bf16.mxu0 %v3339_v48  ;;  %v284_v46 = vor.u32 %v282_v27, %v281_v34  ;;  %v250_v48 = vpack.c.bf16 %v221_v40, %v220_v35  ;;  %v262_v53 = vpack.c.bf16 %v245_v43, %v244_v41  ;;  %v3351_v27 = vld [vmem:[%s4557_s1 + $0xa0] sm:$0xff]   ;;  %v3353_v40 = vld [vmem:[%s4557_s1 + $0xa8] sm:$0xff]  }
  0x25   : > { %v489_v63 = vrot.slane %v487_v50, 1  ;;  %v3635_v0 = vsel %vm3479_vm2, 0, %v368_v51  ;;  %v296_v50 = vshll.u32 %v251_v39, 16  ;;  %v3363_v51 = vld [vmem:[%s4557_s1 + $0x118] sm:$0xff]  }
  0x26   : > { %1388 = vmatmul.mubr.bf16.vlgmr.msra.gmra.mrb[0].mxu0 %v3488_v18  ;;  %1484 = vmatmul.mubr.bf16.vlgmr.msra.gmra.mrb[0].mxu1 %v3524_v42  ;;  %v3622_v54 = vsel %vm3479_vm2, 0, %v284_v46  ;;  %v286_v57 = vshrl.u32 %v250_v48, 16  ;;  %v289_v58 = vshll.u32 %v250_v48, 16  ;;  %v624_v4 = vshrl.u32 %v3635_v0, 16  ;;  %v3362_v46 = vld [vmem:[%s4557_s1 + $0x158] sm:$0xff]  }
  0x27   : > { %3002 = vmatpush3.bf16.msra.mxu0 %v3341_v56  ;;  %2890 = vmatpush3.bf16.msra.mxu1 %v3340_v55  ;;  %v631_v55 = vshll.u32 %v3617_v52, 16  ;;  %v3350_v56 = vld [vmem:[%s4557_s1 + $0xe0] sm:$0xff]   ;;  %v480_v60 = vshrl.u32 %v3622_v54, 16  ;;  %v626_v5 = vshll.u32 %v3635_v0, 16  ;;  %v370_v9 = vshrl.u32 %v262_v53, 16 }
  0x28   : > { %3003 = vmatprep.subr.bf16.mxu0 %v3347_v62  ;;  %2891 = vmatprep.subr.bf16.mxu1 %v3342_v59  ;;  %v3355_v59 = vld [vmem:[%s4557_s1 + $0x150] sm:$0xff]   ;;  %v482_v62 = vshll.u32 %v3622_v54, 16  ;;  %v288_v7 = vrot.slane %v286_v57, 7  ;;  %v373_v10 = vshll.u32 %v262_v53, 16 }
  0x29   : > { %1395 = vmatprep.mubr.bf16.mxu0 %v3593_v38  ;;  %1491 = vmatprep.mubr.bf16.mxu1 %v3600_v44  ;;  %v633_v6 = vrot.slane %v631_v55, 1  ;;  %v628_v13 = vrot.slane %v626_v5, 1  ;;  %v372_v21 = vrot.slane %v370_v9, 7  ;;  %v3354_v57 = vld [vmem:[%s4557_s1 + $0xf0] sm:$0xff]  }
  0x2a   : > { %v291_v14 = vor.u32 %v289_v58, %v288_v7  ;;  %v224_v58 = vld [vmem:[%s3469_s12 + $0x40] sm:$0xff] }
  0x2b   : > { %3004 = vmatpush3.bf16.msra.mxu0 %v3349_v17  ;;  %2892 = vmatpush3.bf16.msra.mxu1 %v3343_v8  ;;  %v484_v8 = vrot.slane %v482_v62, 1  ;;  %v629_v23 = vor.u32 %v628_v13, %v624_v4  ;;  %v375_v34 = vor.u32 %v373_v10, %v372_v21  ;;  %v3671_v35 = vsel %vm3479_vm2, %v372_v21, 0  ;;  %v3364_v13 = vld [vmem:[%s4557_s1 + $0x160] sm:$0xff]  }
  0x2c   : > { %2893 = vmatprep.subr.bf16.mxu1 %v3344_v16  ;;  %3005 = vmatprep.subr.bf16.mxu0 %v3355_v59  ;;  %v3644_v16 = vsel %vm3479_vm2, %v288_v7, 0  ;;  %v3650_v24 = vsel %vm3479_vm2, 0, %v291_v14  ;;  %v227_v7 = vld [vmem:[%s3469_s12 + $0x58] sm:$0xff]  ;;  %v700_v10 = vrot.slane %v3545_v61, 1 }
  0x2d   : > { %v485_v17 = vor.u32 %v484_v8, %v480_v60  ;;  %v499_v20 = vshll.u32 %v3644_v16, 16  ;;  %v492_v28 = vshrl.u32 %v3650_v24, 16  ;;  %v3664_v31 = vsel %vm454_vm3, %v629_v23, %v633_v6  ;;  %v225_v60 = vld [vmem:[%s3469_s12 + $0x48] sm:$0xff]  ;;  %v226_v6 = vld [vmem:[%s3469_s12 + $0x50] sm:$0xff]  ;;  %v3366_v23 = vld [vmem:[%s4557_s1 + $0x120] sm:$0xff]  }
  0x2e   : > { %1396 = vmatmul.mubr.bf16.gmra.mrb[4].mxu0 %v3560_v3  ;;  %1492 = vmatmul.mubr.bf16.gmra.mrb[4].mxu1 %v3575_v11  ;;  %v3685_v48 = vsel %vm3479_vm2, 0, %v375_v34  ;;  %v252_v5 = vpack.c.bf16 %v225_v60, %v224_v58  ;;  %v699_v60 = vrot.slane %v3560_v3, 1  ;;  %v3374_v61 = vld [vmem:[%s4557_s1 + $0x1d8] sm:$0xff]  }
  0x2f   : > { %2894 = vmatpush3.bf16.msra.mxu1 %v3345_v29  ;;  %3006 = vmatpush3.bf16.msra.mxu0 %v3357_v12  ;;  %v3654_v26 = vsel %vm454_vm3, %v485_v17, %v489_v63  ;;  %v494_v29 = vshll.u32 %v3650_v24, 16  ;;  %v501_v43 = vrot.slane %v499_v20, 1  ;;  %v636_v55 = vshrl.u32 %v3685_v48, 16  ;;  %v3356_v17 = vld [vmem:[%s4557_s1 + $0xb0] sm:$0xff]  }
  0x30   : > { %2895 = vmatprep.subr.bf16.mxu1 %v3346_v45  ;;  %1403 = vmatprep.mubr.bf16.mxu0 %v3654_v26  ;;  %v643_v45 = vshll.u32 %v3671_v35, 16  ;;  %v253_v12 = vpack.c.bf16 %v227_v7, %v226_v6  ;;  %v300_v21 = vshrl.u32 %v252_v5, 16 }
  0x31   : > { %1499 = vmatprep.mubr.bf16.mxu1 %v3664_v31  ;;  %v496_v41 = vrot.slane %v494_v29, 1  ;;  %3007 = vmatprep.subr.bf16.mxu0 %v3362_v46 }
  0x32   : > { %v645_v4 = vrot.slane %v643_v45, 1  ;;  %v310_v29 = vshll.u32 %v253_v12, 16 }
  0x33   : > { %2896 = vmatpush3.bf16.msra.mxu1 %v3348_v49  ;;  %v293_v49 = vshrl.u32 %v251_v39, 16  ;;  %v497_v53 = vor.u32 %v496_v41, %v492_v28  ;;  %3008 = vmatpush3.bf16.msra.mxu0 %v3363_v51  ;;  %v307_v28 = vshrl.u32 %v253_v12, 16  ;;  %v3359_v41 = vld [vmem:[%s4557_s1 + $0xb8] sm:$0xff]   ;;  %v229_v51 = vld [vmem:[%s3469_s12 + $0x68] sm:$0xff] }
  0x34   : > { %2897 = vmatprep.subr.bf16.mxu1 %v3350_v56  ;;  %v638_v56 = vshll.u32 %v3685_v48, 16  ;;  %3009 = vmatprep.subr.bf16.mxu0 %v3364_v13  ;;  %v231_v12 = vld [vmem:[%s3469_s12 + $0x78] sm:$0xff] }
  0x35   : > { %v295_v59 = vrot.slane %v293_v49, 7  ;;  %v3698_v62 = vsel %vm454_vm3, %v497_v53, %v501_v43  ;;  %v302_v43 = vrot.slane %v300_v21, 7  ;;  %v309_v45 = vrot.slane %v307_v28, 7  ;;  %v3361_v21 = vld [vmem:[%s4557_s1 + $0x180] sm:$0xff]  }
  0x36   : > { %1404 = vmatmul.mubr.bf16.gmra.mrb[8].mxu0 %v3622_v54  ;;  %1500 = vmatmul.mubr.bf16.gmra.mrb[8].mxu1 %v3635_v0  ;;  %v640_v63 = vrot.slane %v638_v56, 1 }
  0x37   : > { %2898 = vmatpush3.bf16.msra.mxu1 %v3351_v27  ;;  %1411 = vmatprep.mubr.bf16.mxu0 %v3698_v62  ;;  %v298_v8 = vor.u32 %v296_v50, %v295_v59  ;;  %v3705_v9 = vsel %vm3479_vm2, %v295_v59, 0  ;;  %v303_v27 = vshll.u32 %v252_v5, 16  ;;  %v3360_v50 = vld [vmem:[%s4557_s1 + $0x1c0] sm:$0xff]   ;;  %v312_v56 = vor.u32 %v310_v29, %v309_v45  ;;  %v3369_v5 = vld [vmem:[%s4557_s1 + $0x128] sm:$0xff]  }
  0x38   : > { %2899 = vmatprep.subr.bf16.mxu1 %v3352_v32  ;;  %v641_v14 = vor.u32 %v640_v63, %v636_v55  ;;  %v511_v20 = vshll.u32 %v3705_v9, 16  ;;  %v3358_v32 = vld [vmem:[%s4557_s1 + $0xf8] sm:$0xff]   ;;  %3010 = vmatpush3.bf16.msra.mxu0 %v3366_v23  ;;  %v3744_v55 = vsel %vm3479_vm2, %v302_v43, 0 }
  0x39   : > { %v3720_v25 = vsel %vm3479_vm2, 0, %v298_v8  ;;  %v305_v53 = vor.u32 %v303_v27, %v302_v43  ;;  %v523_v59 = vshll.u32 %v3744_v55, 16  ;;  %v3764_v7 = vsel %vm3479_vm2, 0, %v312_v56  ;;  %v230_v8 = vld [vmem:[%s3469_s12 + $0x70] sm:$0xff] }
  0x3a   : > { %v3723_v30 = vsel %vm454_vm3, %v641_v14, %v645_v4  ;;  %v504_v34 = vshrl.u32 %v3720_v25, 16  ;;  %v506_v39 = vshll.u32 %v3720_v25, 16  ;;  %v513_v49 = vrot.slane %v511_v20, 1  ;;  %v3368_v4 = vld [vmem:[%s4557_s1 + $0x168] sm:$0xff]  }
  0x3b   : > { %2900 = vmatpush3.bf16.msra.mxu1 %v3353_v40  ;;  %v228_v40 = vld [vmem:[%s3469_s12 + $0x60] sm:$0xff]  ;;  %1507 = vmatprep.mubr.bf16.mxu1 %v3723_v30  ;;  %v3760_v6 = vsel %vm3479_vm2, 0, %v305_v53  ;;  %v3780_v20 = vsel %vm695_vm4, %v696_v22, %v697_v37  ;;  %v528_v23 = vshrl.u32 %v3764_v7, 16  ;;  %v530_v27 = vshll.u32 %v3764_v7, 16  ;;  %v3365_v37 = vld [vmem:[%s4557_s1 + $0x1c8] sm:$0xff]  }
  0x3c   : > { %2901 = vmatprep.subr.bf16.mxu1 %v3354_v57  ;;  %v508_v46 = vrot.slane %v506_v39, 1  ;;  %v3748_v57 = vsel %vm3479_vm2, %v309_v45, 0  ;;  %v254_v63 = vpack.c.bf16 %v229_v51, %v228_v40  ;;  %v516_v13 = vshrl.u32 %v3760_v6, 16  ;;  %3011 = vmatprep.subr.bf16.mxu0 %v3368_v4  ;;  %v3367_v39 = vld [vmem:[%s4557_s1 + $0x188] sm:$0xff]   ;;  %v3370_v4 = vld [vmem:[%s4557_s1 + $0x1d0] sm:$0xff]  }
  0x3d   : > { %v518_v14 = vshll.u32 %v3760_v6, 16  ;;  %v525_v29 = vrot.slane %v523_v59, 1  ;;  %3012 = vmatpush3.bf16.msra.mxu0 %v3369_v5 }
  0x3e   : > { %1412 = vmatmul.mubr.bf16.gmra.mrb[12].mxu0 %v3650_v24  ;;  %1508 = vmatmul.mubr.bf16.gmra.mrb[12].mxu1 %v3685_v48  ;;  %v509_v58 = vor.u32 %v508_v46, %v504_v34  ;;  %v314_v28 = vshrl.u32 %v254_v63, 16  ;;  %v317_v22 = vshll.u32 %v254_v63, 16  ;;  %v532_v34 = vrot.slane %v530_v27, 1 }
  0x3f   : > { %2902 = vmatpush3.bf16.msra.mxu1 %v3356_v17  ;;  %1548 = vmatprep.mubr.bf16.mxu1 %v3560_v3  ;;  %v535_v17 = vshll.u32 %v3748_v57, 16  ;;  %v520_v19 = vrot.slane %v518_v14, 1  ;;  %v234_v14 = vld [vmem:[%s3469_s12 + $0x90] sm:$0xff] }
  0x40   : > { %2903 = vmatprep.subr.bf16.mxu1 %v3358_v32  ;;  %v3769_v3 = vsel %vm454_vm3, %v509_v58, %v513_v49  ;;  %v255_v32 = vpack.c.bf16 %v231_v12, %v230_v8  ;;  %v316_v40 = vrot.slane %v314_v28, 7  ;;  %v533_v51 = vor.u32 %v532_v34, %v528_v23  ;;  %v3372_v58 = vld [vmem:[%s4557_s1 + $0x170] sm:$0xff]  }
  0x41   : > { %1419 = vmatprep.mubr.bf16.mxu0 %v3769_v3  ;;  %v521_v43 = vor.u32 %v520_v19, %v516_v13  ;;  %v537_v45 = vrot.slane %v535_v17, 1  ;;  %v3373_v8 = vld [vmem:[%s4557_s1 + $0x130] sm:$0xff]   ;;  %3013 = vmatprep.subr.bf16.mxu0 %v3372_v58  ;;  %v235_v17 = vld [vmem:[%s3469_s12 + $0x98] sm:$0xff]  ;;  %v3830_v19 = vsel %vm695_vm4, %v699_v60, %v700_v10  ;;  %v702_v60 = vrot.slane %v3622_v54, 1  ;;  %v236_v58 = vld [vmem:[%s3469_s12 + $0xa0] sm:$0xff] }
  0x42   : > { %v321_v46 = vshrl.u32 %v255_v32, 16  ;;  %v324_v49 = vshll.u32 %v255_v32, 16  ;;  %v319_v53 = vor.u32 %v317_v22, %v316_v40  ;;  %v3800_v56 = vsel %vm3479_vm2, %v316_v40, 0  ;;  %3014 = vmatpush3.bf16.msra.mxu0 %v3373_v8  ;;  %v3376_v10 = vld [vmem:[%s4557_s1 + $0x178] sm:$0xff]  }
  0x43   : > { %2904 = vmatpush3.bf16.msra.mxu1 %v3359_v41  ;;  %v232_v41 = vld [vmem:[%s3469_s12 + $0x80] sm:$0xff]  ;;  %v3806_v59 = vsel %vm454_vm3, %v521_v43, %v525_v29  ;;  %v547_v13 = vshll.u32 %v3800_v56, 16  ;;  %v3371_v29 = vld [vmem:[%s4557_s1 + $0x190] sm:$0xff]   ;;  %v257_v40 = vpack.c.bf16 %v235_v17, %v234_v14  ;;  %3015 = vmatprep.subr.bf16.mxu0 %v3376_v10 }
  0x44   : > { %3113 = vmatprep.subr.bf16.mxu1 %v3360_v50  ;;  %v233_v50 = vld [vmem:[%s3469_s12 + $0x88] sm:$0xff]  ;;  %v323_v63 = vrot.slane %v321_v46, 7  ;;  %v3817_v12 = vsel %vm3479_vm2, 0, %v319_v53  ;;  %v3375_v53 = vld [vmem:[%s4557_s1 + $0x198] sm:$0xff]  }
  0x45   : > { %v256_v5 = vpack.c.bf16 %v233_v50, %v232_v41  ;;  %v540_v23 = vshrl.u32 %v3817_v12, 16  ;;  %v542_v27 = vshll.u32 %v3817_v12, 16  ;;  %v3377_v50 = vld [vmem:[%s4557_s1 + $0x138] sm:$0xff]  }
  0x46   : > { %1420 = vmatmul.mubr.bf16.gmra.mrb[16].mxu0 %v3720_v25  ;;  %1549 = vmatmul.mubr.bf16.vlgmr.msra.gmra.mrb[16].mxu1 %v3780_v20  ;;  %v326_v28 = vor.u32 %v324_v49, %v323_v63  ;;  %v3852_v46 = vsel %vm3479_vm2, %v323_v63, 0  ;;  %v237_v63 = vld [vmem:[%s3469_s12 + $0xa8] sm:$0xff] }
  0x47   : > { %3114 = vmatpush3.bf16.msra.mxu1 %v3361_v21  ;;  %1556 = vmatprep.mubr.bf16.mxu1 %v3622_v54  ;;  %v3823_v21 = vsel %vm454_vm3, %v533_v51, %v537_v45  ;;  %v331_v22 = vshll.u32 %v256_v5, 16  ;;  %v544_v32 = vrot.slane %v542_v27, 1  ;;  %v549_v45 = vrot.slane %v547_v13, 1 }
  0x48   : > { %3115 = vmatprep.subr.bf16.mxu1 %v3365_v37  ;;  %1427 = vmatprep.mubr.bf16.mxu0 %v3806_v59  ;;  %v328_v37 = vshrl.u32 %v256_v5, 16  ;;  %v3838_v34 = vsel %vm3479_vm2, 0, %v326_v28  ;;  %v335_v51 = vshrl.u32 %v257_v40, 16  ;;  %v559_v17 = vshll.u32 %v3852_v46, 16 }
  0x49   : > { %v545_v43 = vor.u32 %v544_v32, %v540_v23  ;;  %v554_v49 = vshll.u32 %v3838_v34, 16  ;;  %3016 = vmatpush3.bf16.msra.mxu0 %v3377_v50  ;;  %v552_v13 = vshrl.u32 %v3838_v34, 16  ;;  %v3878_v23 = vld [vmem:[%s4557_s1 + $0x200] sm:$0xff]   ;;  %v3381_v32 = vld [vmem:[%s4557_s1 + $0x1e8] sm:$0xff]  }
  0x4a   : > { %v330_v41 = vrot.slane %v328_v37, 7  ;;  %v337_v28 = vrot.slane %v335_v51, 7  ;;  %v258_v37 = vpack.c.bf16 %v237_v63, %v236_v58  ;;  %3249 = vmatprep.subr.bf16.mxu0 %v3878_v23  ;;  %v3383_v50 = vld [vmem:[%s4557_s1 + $0x1a8] sm:$0xff]  }
  0x4b   : > { %3116 = vmatpush3.bf16.msra.mxu1 %v3367_v39  ;;  %v703_v39 = vrot.slane %v3607_v47, 1  ;;  %v3871_v8 = vsel %vm454_vm3, %v545_v43, %v549_v45  ;;  %v556_v14 = vrot.slane %v554_v49, 1  ;;  %v706_v43 = vrot.slane %v3644_v16, 1 }
  0x4c   : > { %3117 = vmatprep.subr.bf16.mxu1 %v3370_v4  ;;  %v333_v47 = vor.u32 %v331_v22, %v330_v41  ;;  %v3378_v4 = vld [vmem:[%s4557_s1 + $0x1e0] sm:$0xff]   ;;  %v3896_v10 = vsel %vm3479_vm2, %v330_v41, 0  ;;  %v342_v49 = vshrl.u32 %v258_v37, 16 }
  0x4d   : > { %v3868_v5 = vsel %vm695_vm4, %v702_v60, %v703_v39  ;;  %v3380_v22 = vld [vmem:[%s4557_s1 + $0x1a0] sm:$0xff]   ;;  %v705_v39 = vrot.slane %v3650_v24, 1 }
  0x4e   : > { %1428 = vmatmul.mubr.bf16.gmra.mrb[20].mxu0 %v3760_v6  ;;  %1557 = vmatmul.mubr.bf16.gmra.mrb[20].mxu1 %v3830_v19  ;;  %v3882_v27 = vsel %vm3479_vm2, 0, %v333_v47  ;;  %v571_v47 = vshll.u32 %v3896_v10, 16  ;;  %v344_v63 = vrot.slane %v342_v49, 7 }
  0x4f   : > { %1435 = vmatprep.mubr.bf16.mxu0 %v3823_v21  ;;  %1564 = vmatprep.mubr.bf16.mxu1 %v3650_v24  ;;  %v566_v60 = vshll.u32 %v3882_v27, 16  ;;  %v564_v51 = vshrl.u32 %v3882_v27, 16  ;;  %v3911_v58 = vsel %vm695_vm4, %v705_v39, %v706_v43 }
  0x50   : > { %3118 = vmatpush3.bf16.msra.mxu1 %v3371_v29  ;;  %v338_v29 = vshll.u32 %v257_v40, 16  ;;  %v557_v40 = vor.u32 %v556_v14, %v552_v13  ;;  %v3384_v13 = vld [vmem:[%s4557_s1 + $0x1f0] sm:$0xff]  }
  0x51   : > { %3119 = vmatprep.subr.bf16.mxu1 %v3374_v61  ;;  %v561_v61 = vrot.slane %v559_v17, 1  ;;  %v3386_v14 = vld [vmem:[%s4557_s1 + $0x1b0] sm:$0xff]   ;;  %v708_v17 = vrot.slane %v3720_v25, 1 }
  0x52   : > { %v340_v45 = vor.u32 %v338_v29, %v337_v28  ;;  %v573_v29 = vrot.slane %v571_v47, 1 }
  0x53   : > { %v3907_v41 = vsel %vm454_vm3, %v557_v40, %v561_v61  ;;  %v709_v40 = vrot.slane %v3705_v9, 1 }
  0x54   : > { %3120 = vmatpush3.bf16.msra.mxu1 %v3375_v53  ;;  %v568_v53 = vrot.slane %v566_v60, 1  ;;  %v3915_v16 = vsel %vm3479_vm2, 0, %v340_v45  ;;  %v3387_v60 = vld [vmem:[%s4557_s1 + $0x1f8] sm:$0xff]  }
  0x55   : > { %3121 = vmatprep.subr.bf16.mxu1 %v3378_v4  ;;  %v345_v4 = vshll.u32 %v258_v37, 16  ;;  %v576_v45 = vshrl.u32 %v3915_v16, 16  ;;  %v3946_v9 = vsel %vm695_vm4, %v708_v17, %v709_v40 }
  0x56   : > { %1436 = vmatmul.mubr.bf16.gmra.mrb[24].mxu0 %v3764_v7  ;;  %1565 = vmatmul.mubr.bf16.gmra.mrb[24].mxu1 %v3868_v5  ;;  %v569_v37 = vor.u32 %v568_v53, %v564_v51 }
  0x57   : > { %1443 = vmatprep.mubr.bf16.mxu0 %v3871_v8  ;;  %1572 = vmatprep.mubr.bf16.mxu1 %v3720_v25  ;;  %v347_v61 = vor.u32 %v345_v4, %v344_v63  ;;  %v711_v4 = vrot.slane %v3760_v6, 1 }
  0x58   : > { %3122 = vmatpush3.bf16.msra.mxu1 %v3380_v22  ;;  %v3929_v22 = vsel %vm3479_vm2, %v337_v28, 0  ;;  %v3389_v28 = vld [vmem:[%s4557_s1 + $0x1b8] sm:$0xff]   ;;  %v3942_v43 = vsel %vm454_vm3, %v569_v37, %v573_v29 }
  0x59   : > { %3123 = vmatprep.subr.bf16.mxu1 %v3381_v32  ;;  %v578_v32 = vshll.u32 %v3915_v16, 16  ;;  %v583_v39 = vshll.u32 %v3929_v22, 16 }
  0x5b   : > { %v580_v49 = vrot.slane %v578_v32, 1  ;;  %v585_v51 = vrot.slane %v583_v39, 1 }
  0x5c   : > { %3124 = vmatpush3.bf16.msra.mxu1 %v3383_v50  ;;  %v3950_v50 = vsel %vm3479_vm2, 0, %v347_v61  ;;  %v714_v61 = vrot.slane %v3764_v7, 1 }
  0x5d   : > { %3125 = vmatprep.subr.bf16.mxu1 %v3384_v13  ;;  %v581_v47 = vor.u32 %v580_v49, %v576_v45  ;;  %v590_v53 = vshll.u32 %v3950_v50, 16  ;;  %v712_v13 = vrot.slane %v3744_v55, 1  ;;  %v588_v29 = vshrl.u32 %v3950_v50, 16 }
  0x5e   : > { %1444 = vmatmul.mubr.bf16.gmra.mrb[28].mxu0 %v3817_v12  ;;  %1573 = vmatmul.mubr.bf16.gmra.mrb[28].mxu1 %v3911_v58  ;;  %v717_v45 = vrot.slane %v3817_v12, 1  ;;  %v718_v49 = vrot.slane %v3800_v56, 1 }
  0x5f   : > { %1451 = vmatprep.mubr.bf16.mxu0 %v3907_v41  ;;  %1580 = vmatprep.mubr.bf16.mxu1 %v3760_v6  ;;  %v3964_v17 = vsel %vm454_vm3, %v581_v47, %v585_v51  ;;  %v592_v37 = vrot.slane %v590_v53, 1  ;;  %v3969_v40 = vsel %vm695_vm4, %v711_v4, %v712_v13  ;;  %v720_v47 = vrot.slane %v3838_v34, 1  ;;  %v3382_v53 = vld [vmem:[%s4557_s1 + $0x208] sm:$0xff]  }
  0x60   : > { %3126 = vmatpush3.bf16.msra.mxu1 %v3386_v14  ;;  %v3961_v14 = vsel %vm3479_vm2, %v344_v63, 0  ;;  %v721_v51 = vrot.slane %v3852_v46, 1  ;;  %v723_v46 = vrot.slane %v3882_v27, 1  ;;  %v724_v4 = vrot.slane %v3896_v10, 1  ;;  %v3390_v10 = vld [vmem:[%s4557_s1 + $0x220] sm:$0xff]  }
  0x61   : > { %3127 = vmatprep.subr.bf16.mxu1 %v3387_v60  ;;  %v595_v32 = vshll.u32 %v3961_v14, 16  ;;  %v593_v55 = vor.u32 %v592_v37, %v588_v29  ;;  %v715_v60 = vrot.slane %v3748_v57, 1  ;;  %v3990_v57 = vsel %vm695_vm4, %v717_v45, %v718_v49  ;;  %v3391_v37 = vld [vmem:[%s4557_s1 + $0x228] sm:$0xff]   ;;  %v246_v49 = vld [vmem:[%s3469_s12 + $0xf0] sm:$0xff] }
  0x62   : > { %v4002_v56 = vsel %vm695_vm4, %v720_v47, %v721_v51  ;;  %v726_v13 = vrot.slane %v3915_v16, 1  ;;  %v727_v29 = vrot.slane %v3929_v22, 1  ;;  %v3392_v22 = vld [vmem:[%s4557_s1 + $0x230] sm:$0xff]   ;;  %v733_v45 = vrot.slane %v3508_v33, 1  ;;  %v247_v47 = vld [vmem:[%s3469_s12 + $0xf8] sm:$0xff]  ;;  %s2649_s12 = sshll.u32 %s4564_s16, 7 }
  0x63   : > { %v597_v63 = vrot.slane %v595_v32, 1  ;;  %s4480_s28 = scalar_lea.vmem %s4558_s2, %s2649_s12 }
  0x64   : > { %3128 = vmatpush3.bf16.msra.mxu1 %v3389_v28  ;;  %v3981_v28 = vsel %vm695_vm4, %v714_v61, %v715_v60  ;;  %v4033_v32 = vsel %vm695_vm4, %v726_v13, %v727_v29  ;;  %v3393_v61 = vld [vmem:[%s4557_s1 + $0x238] sm:$0xff]   ;;  %v738_v13 = vrot.slane %v3635_v0, 1  ;;  %v739_v29 = vrot.slane %v3617_v52, 1 }
  0x65   : > { %v3978_v39 = vsel %vm454_vm3, %v593_v55, %v597_v63  ;;  %v729_v55 = vrot.slane %v3950_v50, 1  ;;  %v730_v63 = vrot.slane %v3961_v14, 1  ;;  %v732_v14 = vrot.slane %v3524_v42, 1 }
  0x66   : > { %1452 = vmatmul.mubr.bf16.gmra.mrb[32].mxu0 %v3838_v34  ;;  %1581 = vmatmul.mubr.bf16.gmra.mrb[32].mxu1 %v3946_v9  ;;  %v742_v52 = vrot.slane %v3671_v35, 1 }
  0x67   : > { %1459 = vmatprep.mubr.bf16.mxu0 %v3942_v43  ;;  %1588 = vmatprep.mubr.bf16.mxu1 %v3764_v7  ;;  %v4048_v60 = vsel %vm695_vm4, %v729_v55, %v730_v63  ;;  %v4059_v51 = vsel %vm695_vm4, %v732_v14, %v733_v45  ;;  %v741_v55 = vrot.slane %v3685_v48, 1 }
  0x69   : > { %v4090_v63 = vsel %vm695_vm4, %v741_v55, %v742_v52 }
  0x6e   : > { %1460 = vmatmul.mubr.bf16.gmra.mrb[36].mxu0 %v3882_v27  ;;  %1589 = vmatmul.mubr.bf16.gmra.mrb[36].mxu1 %v3969_v40 }
  0x6f   : > { %1467 = vmatprep.mubr.bf16.mxu0 %v3964_v17  ;;  %1596 = vmatprep.mubr.bf16.mxu1 %v3817_v12 }
  0x76   : > { %1468 = vmatmul.mubr.bf16.gmra.mrb[40].mxu0 %v3915_v16  ;;  %1597 = vmatmul.mubr.bf16.gmra.mrb[40].mxu1 %v3981_v28 }
  0x77   : > { %1475 = vmatprep.mubr.bf16.mxu0 %v3978_v39  ;;  %1604 = vmatprep.mubr.bf16.mxu1 %v3838_v34 }
  0x7e   : > { %1476 = vmatmul.mubr.bf16.gmra.mrb[44].mxu0 %v3950_v50  ;;  %1605 = vmatmul.mubr.bf16.gmra.mrb[44].mxu1 %v3990_v57 }
  0x7f   : > { %1709 = vmatprep.mubr.bf16.mxu0 %v3830_v19  ;;  %1612 = vmatprep.mubr.bf16.mxu1 %v3882_v27  ;;  %v3385_v19 = vld [vmem:[%s4557_s1 + $0x210] sm:$0xff]  }
  0x86   : > { %1710 = vmatmul.mubr.bf16.vlgmr.msra.gmra.mrb[48].mxu0 %v3593_v38  ;;  %1613 = vmatmul.mubr.bf16.gmra.mrb[48].mxu1 %v4002_v56  ;;  %v3388_v38 = vld [vmem:[%s4557_s1 + $0x218] sm:$0xff]  }
  0x87   : > { %3250 = vmatpush3.bf16.msra.mxu0 %v3878_v23  ;;  %1717 = vmatprep.mubr.bf16.mxu0 %v3868_v5  ;;  %v4018_v23 = vsel %vm695_vm4, %v723_v46, %v724_v4  ;;  %v736_v46 = vrot.slane %v3553_v1, 1  ;;  %v4077_v1 = vsel %vm695_vm4, %v738_v13, %v739_v29 }
  0x88   : > { %3251 = vmatprep.subr.bf16.mxu0 %v3382_v53  ;;  %1620 = vmatprep.mubr.bf16.mxu1 %v3915_v16 }
  0x8b   : > { %3252 = vmatpush3.bf16.msra.mxu0 %v3382_v53  ;;  %v263_v53 = vpack.c.bf16 %v247_v47, %v246_v49 }
  0x8c   : > { %3253 = vmatprep.subr.bf16.mxu0 %v3385_v19 }
  0x8d   : > { %v377_v33 = vshrl.u32 %v263_v53, 16 }
  0x8e   : > { %1718 = vmatmul.mubr.bf16.gmra.mrb[52].mxu0 %v3654_v26  ;;  %1621 = vmatmul.mubr.bf16.gmra.mrb[52].mxu1 %v4018_v23 }
  0x8f   : > { %1725 = vmatprep.mubr.bf16.mxu0 %v3911_v58  ;;  %3254 = vmatpush3.bf16.msra.mxu0 %v3385_v19  ;;  %v735_v19 = vrot.slane %v3575_v11, 1 }
  0x90   : > { %3255 = vmatprep.subr.bf16.mxu0 %v3388_v38  ;;  %1628 = vmatprep.mubr.bf16.mxu1 %v3950_v50 }
  0x91   : > { %v4068_v4 = vsel %vm695_vm4, %v735_v19, %v736_v46 }
  0x93   : > { %3256 = vmatpush3.bf16.msra.mxu0 %v3388_v38  ;;  %v379_v38 = vrot.slane %v377_v33, 7 }
  0x94   : > { %3257 = vmatprep.subr.bf16.mxu0 %v3390_v10 }
  0x96   : > { %1726 = vmatmul.mubr.bf16.gmra.mrb[56].mxu0 %v3698_v62  ;;  %1629 = vmatmul.mubr.bf16.gmra.mrb[56].mxu1 %v4033_v32 }
  0x97   : > { %1733 = vmatprep.mubr.bf16.mxu0 %v3946_v9  ;;  %3258 = vmatpush3.bf16.msra.mxu0 %v3390_v10  ;;  %v380_v10 = vshll.u32 %v263_v53, 16 }
  0x98   : > { %3259 = vmatprep.subr.bf16.mxu0 %v3391_v37  ;;  %1636 = vmatprep.mubr.bf16.mxu1 %v3524_v42 }
  0x9b   : > { %3260 = vmatpush3.bf16.msra.mxu0 %v3391_v37  ;;  %v382_v37 = vor.u32 %v380_v10, %v379_v38 }
  0x9c   : > { %3261 = vmatprep.subr.bf16.mxu0 %v3392_v22 }
  0x9e   : > { %1734 = vmatmul.mubr.bf16.gmra.mrb[60].mxu0 %v3769_v3  ;;  %1637 = vmatmul.mubr.bf16.gmra.mrb[60].mxu1 %v4048_v60 }
  0x9f   : > { %1741 = vmatprep.mubr.bf16.mxu0 %v3969_v40  ;;  %3262 = vmatpush3.bf16.msra.mxu0 %v3392_v22  ;;  %v4082_v22 = vsel %vm3479_vm2, 0, %v382_v37 }
  0xa0   : > { %3263 = vmatprep.subr.bf16.mxu0 %v3393_v61  ;;  %1644 = vmatprep.mubr.bf16.mxu1 %v3575_v11 }
  0xa3   : > { %3264 = vmatpush3.bf16.msra.mxu0 %v3393_v61 }
  0xa6   : > { %1742 = vmatmul.mubr.bf16.gmra.mrb[64].mxu0 %v3806_v59  ;;  %1645 = vmatmul.mubr.bf16.gmra.mrb[64].mxu1 %v4059_v51 }
  0xa7   : > { %1749 = vmatprep.mubr.bf16.mxu0 %v3981_v28  ;;  %1652 = vmatprep.mubr.bf16.mxu1 %v3635_v0 }
  0xae   : > { %1750 = vmatmul.mubr.bf16.gmra.mrb[68].mxu0 %v3823_v21  ;;  %1653 = vmatmul.mubr.bf16.gmra.mrb[68].mxu1 %v4068_v4 }
  0xaf   : > { %1757 = vmatprep.mubr.bf16.mxu0 %v3990_v57  ;;  %1660 = vmatprep.mubr.bf16.mxu1 %v3685_v48 }
  0xb6   : > { %1758 = vmatmul.mubr.bf16.gmra.mrb[72].mxu0 %v3871_v8  ;;  %1661 = vmatmul.mubr.bf16.gmra.mrb[72].mxu1 %v4077_v1 }
  0xb7   : > { %1765 = vmatprep.mubr.bf16.mxu0 %v4002_v56  ;;  %1668 = vmatprep.mubr.bf16.mxu1 %v4082_v22 }
  0xbe   : > { %1766 = vmatmul.mubr.bf16.gmra.mrb[76].mxu0 %v3907_v41  ;;  %1669 = vmatmul.mubr.bf16.gmra.mrb[76].mxu1 %v4090_v63 }
  0xbf   : > { %1773 = vmatprep.mubr.bf16.mxu0 %v4018_v23  ;;  %1870 = vmatprep.mubr.bf16.mxu1 %v3654_v26  ;;  %v775_v26 = vrot.slane %v4082_v22, 1 }
  0xc6   : > { %1774 = vmatmul.mubr.bf16.gmra.mrb[80].mxu0 %v3942_v43  ;;  %1871 = vmatmul.mubr.bf16.vlgmr.msra.gmra.mrb[80].mxu1 %v3622_v54  ;;  %v453_v54 = vsel %vm3479_vm2, %v379_v38, 0 }
  0xc7   : > { %1781 = vmatprep.mubr.bf16.mxu0 %v4033_v32  ;;  %1878 = vmatprep.mubr.bf16.mxu1 %v3698_v62  ;;  %v776_v35 = vrot.slane %v453_v54, 1  ;;  %v761_v62 = vshrl.u32 %v4082_v22, 16 }
  0xc9   : > { %v4126_v15 = vsel %vm695_vm4, %v775_v26, %v776_v35 }
  0xce   : > { %1782 = vmatmul.mubr.bf16.gmra.mrb[84].mxu0 %v3964_v17  ;;  %1879 = vmatmul.mubr.bf16.gmra.mrb[84].mxu1 %v3650_v24  ;;  %v763_v24 = vshll.u32 %v4082_v22, 16 }
  0xcf   : > { %1789 = vmatprep.mubr.bf16.mxu0 %v4048_v60  ;;  %1886 = vmatprep.mubr.bf16.mxu1 %v3769_v3 }
  0xd6   : > { %1790 = vmatmul.mubr.bf16.gmra.mrb[88].mxu0 %v3978_v39  ;;  %1887 = vmatmul.mubr.bf16.gmra.mrb[88].mxu1 %v3720_v25  ;;  %v765_v25 = vrot.slane %v763_v24, 1 }
  0xd7   : > { %1797 = vmatprep.mubr.bf16.mxu0 %v4059_v51  ;;  %1894 = vmatprep.mubr.bf16.mxu1 %v3806_v59 }
  0xd8   : > { %v766_v3 = vor.u32 %v765_v25, %v761_v62 }
  0xde   : > { %1798 = vmatmul.mubr.bf16.gmra.mrb[92].mxu0 %v3556_v2  ;;  %1895 = vmatmul.mubr.bf16.gmra.mrb[92].mxu1 %v3760_v6  ;;  %v768_v6 = vshll.u32 %v453_v54, 16 }
  0xdf   : > { %1805 = vmatprep.mubr.bf16.mxu0 %v4068_v4  ;;  %1902 = vmatprep.mubr.bf16.mxu1 %v3823_v21 }
  0xe0   : > { %v770_v59 = vrot.slane %v768_v6, 1 }
  0xe2   : > { %v4139_v19 = vsel %vm454_vm3, %v766_v3, %v770_v59 }
  0xe6   : > { %1806 = vmatmul.mubr.bf16.gmra.mrb[96].mxu0 %v3600_v44  ;;  %1903 = vmatmul.mubr.bf16.gmra.mrb[96].mxu1 %v3764_v7 }
  0xe7   : > { %1813 = vmatprep.mubr.bf16.mxu0 %v4077_v1  ;;  %1910 = vmatprep.mubr.bf16.mxu1 %v3871_v8 }
  0xee   : > { %1814 = vmatmul.mubr.bf16.gmra.mrb[100].mxu0 %v3664_v31  ;;  %1911 = vmatmul.mubr.bf16.gmra.mrb[100].mxu1 %v3817_v12 }
  0xef   : > { %1821 = vmatprep.mubr.bf16.mxu0 %v4090_v63  ;;  %1918 = vmatprep.mubr.bf16.mxu1 %v3907_v41 }
  0xf6   : > { %1822 = vmatmul.mubr.bf16.gmra.mrb[104].mxu0 %v3723_v30  ;;  %1919 = vmatmul.mubr.bf16.gmra.mrb[104].mxu1 %v3838_v34 }
  0xf7   : > { %1829 = vmatprep.mubr.bf16.mxu0 %v4126_v15  ;;  %1926 = vmatprep.mubr.bf16.mxu1 %v3942_v43 }
  0xf9   : > { %v2793_v7 = vpop.f32.mrb[0].mxu0  ;;  %v2865_v12 = vpop.f32.mrb[0].mxu1 }
  0xfa   : > { %v2794_v21 = vpop.f32.mrb[1].mxu0  ;;  %v2866_v41 = vpop.f32.mrb[1].mxu1 }
  0xfb   : > { %v4131_v8 = vadd.f32 %v2794_v21, %v2793_v7  ;;  %v2796_v61 = vpop.f32.mrb[2].mxu0  ;;  %v4134_v14 = vadd.f32 %v2866_v41, %v2865_v12  ;;  %v2868_v45 = vpop.f32.mrb[2].mxu1 }
  0xfc   : > { %v2797_v49 = vpop.f32.mrb[3].mxu0  ;;  %v2869_v53 = vpop.f32.mrb[3].mxu1 }
  0xfd   : > { %v4136_v47 = vadd.f32 %v2797_v49, %v2796_v61  ;;  %v4141_v46 = vadd.f32 %v2869_v53, %v2868_v45 }
  0xfe   : > { %1830 = vmatmul.mubr.bf16.gmra.mrb[108].mxu0 %v4139_v19  ;;  %1927 = vmatmul.mubr.bf16.gmra.mrb[108].mxu1 %v3882_v27 }
  0xff   : > { %3265 = vmatprep.mubr.bf16.mxu0 %v3868_v5  ;;  %1934 = vmatprep.mubr.bf16.mxu1 %v3964_v17 }
 0x101   : > { %v2799_v34 = vpop.f32.mrb[4].mxu0  ;;  %v2871_v43 = vpop.f32.mrb[4].mxu1 }
 0x102   : > { %v2800_v33 = vpop.f32.mrb[5].mxu0  ;;  %v2872_v10 = vpop.f32.mrb[5].mxu1 }
 0x103   : > { %v4146_v38 = vadd.f32 %v2800_v33, %v2799_v34  ;;  %v2802_v13 = vpop.f32.mrb[6].mxu0  ;;  %v4149_v29 = vadd.f32 %v2872_v10, %v2871_v43  ;;  %v2874_v37 = vpop.f32.mrb[6].mxu1 }
 0x104   : > { %v2803_v55 = vpop.f32.mrb[7].mxu0  ;;  %v2875_v54 = vpop.f32.mrb[7].mxu1 }
 0x105   : > { %v4151_v52 = vadd.f32 %v2803_v55, %v2802_v13  ;;  %v4153_v24 = vadd.f32 %v2875_v54, %v2874_v37 }
 0x106   : > { %3266 = vmatmul.mubr.bf16.vlgmr.msra.gmra.mrb[112].mxu0 %v3911_v58  ;;  %1935 = vmatmul.mubr.bf16.gmra.mrb[112].mxu1 %v3915_v16 }
 0x107   : > { %3269 = vmatprep.mubr.bf16.mxu0 %v3946_v9  ;;  %1942 = vmatprep.mubr.bf16.mxu1 %v3978_v39 }
 0x109   : > { %v2805_v5 = vpop.f32.mrb[8].mxu0  ;;  %v2877_v27 = vpop.f32.mrb[8].mxu1 }
 0x10a   : > { %v2806_v17 = vpop.f32.mrb[9].mxu0  ;;  %v2878_v35 = vpop.f32.mrb[9].mxu1 }
 0x10b   : > { %v4159_v26 = vadd.f32 %v2806_v17, %v2805_v5  ;;  %v2808_v62 = vpop.f32.mrb[10].mxu0  ;;  %v4161_v25 = vadd.f32 %v2878_v35, %v2877_v27  ;;  %v2880_v6 = vpop.f32.mrb[10].mxu1 }
 0x10c   : > { %v2809_v7 = vpop.f32.mrb[11].mxu0  ;;  %v2881_v58 = vpop.f32.mrb[11].mxu1 }
 0x10d   : > { %v4163_v3 = vadd.f32 %v2809_v7, %v2808_v62  ;;  %v4165_v59 = vadd.f32 %v2881_v58, %v2880_v6 }
 0x10e   : > { %3270 = vmatmul.mubr.bf16.gmra.mrb[116].mxu0 %v3969_v40  ;;  %1943 = vmatmul.mubr.bf16.gmra.mrb[116].mxu1 %v3950_v50 }
 0x10f   : > { %3273 = vmatprep.mubr.bf16.mxu0 %v3981_v28  ;;  %1950 = vmatprep.mubr.bf16.mxu1 %v3556_v2 }
 0x111   : > { %v2811_v16 = vpop.f32.mrb[12].mxu0  ;;  %v2883_v39 = vpop.f32.mrb[12].mxu1 }
 0x112   : > { %v2812_v9 = vpop.f32.mrb[13].mxu0  ;;  %v2884_v41 = vpop.f32.mrb[13].mxu1 }
 0x113   : > { %v4171_v12 = vadd.f32 %v2812_v9, %v2811_v16  ;;  %v2814_v21 = vpop.f32.mrb[14].mxu0  ;;  %v4173_v45 = vadd.f32 %v2884_v41, %v2883_v39  ;;  %v2886_v49 = vpop.f32.mrb[14].mxu1 }
 0x114   : > { %v2815_v61 = vpop.f32.mrb[15].mxu0  ;;  %v2887_v40 = vpop.f32.mrb[15].mxu1 }
 0x115   : > { %v4175_v53 = vadd.f32 %v2815_v61, %v2814_v21  ;;  %v4178_v28 = vadd.f32 %v2887_v40, %v2886_v49 }
 0x116   : > { %3274 = vmatmul.mubr.bf16.gmra.mrb[120].mxu0 %v3990_v57  ;;  %1951 = vmatmul.mubr.bf16.gmra.mrb[120].mxu1 %v3524_v42 }
 0x117   : > { %3277 = vmatprep.mubr.bf16.mxu0 %v4002_v56  ;;  %1958 = vmatprep.mubr.bf16.mxu1 %v3600_v44 }
 0x119   : > { %v2817_v2 = vpop.f32.mrb[16].mxu0  ;;  %v2905_v34 = vpop.f32.mrb[16].mxu1 }
 0x11a   : > { %v2818_v50 = vpop.f32.mrb[17].mxu0  ;;  %v2906_v10 = vpop.f32.mrb[17].mxu1 }
 0x11b   : > { %v4183_v43 = vadd.f32 %v2818_v50, %v2817_v2  ;;  %v2820_v33 = vpop.f32.mrb[18].mxu0  ;;  %v2907_v37 = vadd.f32 %v2906_v10, %v2905_v34  ;;  %v2908_v55 = vpop.f32.mrb[18].mxu1 }
 0x11c   : > { %v2821_v13 = vpop.f32.mrb[19].mxu0  ;;  %v2909_v57 = vpop.f32.mrb[19].mxu1 }
 0x11d   : > { %v4185_v54 = vadd.f32 %v2821_v13, %v2820_v33  ;;  %v4189_v56 = vadd.f32 %v2907_v37, %v4131_v8  ;;  %v2910_v42 = vadd.f32 %v2909_v57, %v2908_v55 }
 0x11e   : > { %3278 = vmatmul.mubr.bf16.gmra.mrb[124].mxu0 %v4018_v23  ;;  %1959 = vmatmul.mubr.bf16.gmra.mrb[124].mxu1 %v3575_v11 }
 0x11f   : > { %3281 = vmatprep.mubr.bf16.mxu0 %v4033_v32  ;;  %v4194_v44 = vadd.f32 %v2910_v42, %v4136_v47  ;;  %1966 = vmatprep.mubr.bf16.mxu1 %v3664_v31 }
 0x121   : > { %v2823_v5 = vpop.f32.mrb[20].mxu0  ;;  %v2911_v17 = vpop.f32.mrb[20].mxu1 }
 0x122   : > { %v2824_v27 = vpop.f32.mrb[21].mxu0  ;;  %v2912_v23 = vpop.f32.mrb[21].mxu1 }
 0x123   : > { %v4197_v35 = vadd.f32 %v2824_v27, %v2823_v5  ;;  %v2826_v62 = vpop.f32.mrb[22].mxu0  ;;  %v2913_v8 = vadd.f32 %v2912_v23, %v2911_v17  ;;  %v2914_v7 = vpop.f32.mrb[22].mxu1 }
 0x124   : > { %v2827_v6 = vpop.f32.mrb[23].mxu0  ;;  %v2915_v32 = vpop.f32.mrb[23].mxu1 }
 0x125   : > { %v4199_v58 = vadd.f32 %v2827_v6, %v2826_v62  ;;  %v4203_v11 = vadd.f32 %v2913_v8, %v4146_v38  ;;  %v2916_v47 = vadd.f32 %v2915_v32, %v2914_v7 }
 0x126   : > { %3282 = vmatmul.mubr.bf16.gmra.mrb[128].mxu0 %v4048_v60  ;;  %1967 = vmatmul.mubr.bf16.gmra.mrb[128].mxu1 %v3635_v0 }
 0x127   : > { %3285 = vmatprep.mubr.bf16.mxu0 %v4059_v51  ;;  %v4208_v31 = vadd.f32 %v2916_v47, %v4151_v52  ;;  %1974 = vmatprep.mubr.bf16.mxu1 %v3723_v30 }
 0x129   : > { %v2829_v16 = vpop.f32.mrb[24].mxu0  ;;  %v2917_v39 = vpop.f32.mrb[24].mxu1 }
 0x12a   : > { %v2830_v9 = vpop.f32.mrb[25].mxu0  ;;  %v2918_v60 = vpop.f32.mrb[25].mxu1 }
 0x12b   : > { %v4211_v21 = vadd.f32 %v2830_v9, %v2829_v16  ;;  %v2832_v41 = vpop.f32.mrb[26].mxu0  ;;  %v2919_v38 = vadd.f32 %v2918_v60, %v2917_v39  ;;  %v2920_v49 = vpop.f32.mrb[26].mxu1 }
 0x12c   : > { %v2833_v61 = vpop.f32.mrb[27].mxu0  ;;  %v2921_v51 = vpop.f32.mrb[27].mxu1 }
 0x12d   : > { %v4213_v40 = vadd.f32 %v2833_v61, %v2832_v41  ;;  %v4217_v0 = vadd.f32 %v2919_v38, %v4159_v26  ;;  %v2922_v52 = vadd.f32 %v2921_v51, %v2920_v49 }
 0x12e   : > { %3286 = vmatmul.mubr.bf16.gmra.mrb[132].mxu0 %v4068_v4  ;;  %1975 = vmatmul.mubr.bf16.gmra.mrb[132].mxu1 %v3685_v48 }
 0x12f   : > { %3289 = vmatprep.mubr.bf16.mxu0 %v4077_v1  ;;  %v4222_v30 = vadd.f32 %v2922_v52, %v4163_v3  ;;  %1982 = vmatprep.mubr.bf16.mxu1 %v4139_v19 }
 0x131   : > { %v2835_v2 = vpop.f32.mrb[28].mxu0  ;;  %v2923_v34 = vpop.f32.mrb[28].mxu1 }
 0x132   : > { %v2836_v50 = vpop.f32.mrb[29].mxu0  ;;  %v2924_v4 = vpop.f32.mrb[29].mxu1 }
 0x133   : > { %v4225_v33 = vadd.f32 %v2836_v50, %v2835_v2  ;;  %v2838_v10 = vpop.f32.mrb[30].mxu0  ;;  %v2925_v26 = vadd.f32 %v2924_v4, %v2923_v34  ;;  %v2926_v37 = vpop.f32.mrb[30].mxu1 }
 0x134   : > { %v2839_v13 = vpop.f32.mrb[31].mxu0  ;;  %v2927_v1 = vpop.f32.mrb[31].mxu1 }
 0x135   : > { %v4227_v55 = vadd.f32 %v2839_v13, %v2838_v10  ;;  %v4231_v48 = vadd.f32 %v2925_v26, %v4171_v12  ;;  %v2928_v3 = vadd.f32 %v2927_v1, %v2926_v37 }
 0x136   : > { %3290 = vmatmul.mubr.bf16.gmra.mrb[136].mxu0 %v4090_v63  ;;  %1983 = vmatmul.mubr.bf16.gmra.mrb[136].mxu1 %v4082_v22 }
 0x137   : > { %3293 = vmatprep.mubr.bf16.mxu0 %v4126_v15  ;;  %v4236_v19 = vadd.f32 %v2928_v3, %v4175_v53  ;;  %1990 = vmatprep.mubr.bf16.mxu1 %v3513_v36 }
 0x139   : > { %v2841_v57 = vpop.f32.mrb[32].mxu0  ;;  %v2929_v5 = vpop.f32.mrb[32].mxu1 }
 0x13a   : > { %v2842_v42 = vpop.f32.mrb[33].mxu0  ;;  %v2930_v63 = vpop.f32.mrb[33].mxu1 }
 0x13b   : > { %v4239_v27 = vadd.f32 %v2842_v42, %v2841_v57  ;;  %v2844_v17 = vpop.f32.mrb[34].mxu0  ;;  %v2931_v12 = vadd.f32 %v2930_v63, %v2929_v5  ;;  %v2932_v23 = vpop.f32.mrb[34].mxu1 }
 0x13c   : > { %v2845_v62 = vpop.f32.mrb[35].mxu0  ;;  %v2933_v15 = vpop.f32.mrb[35].mxu1 }
 0x13d   : > { %v4241_v6 = vadd.f32 %v2845_v62, %v2844_v17  ;;  %v4245_v22 = vadd.f32 %v2931_v12, %v4183_v43  ;;  %v2934_v53 = vadd.f32 %v2933_v15, %v2932_v23 }
 0x13e   : > { %3294 = vmatmul.mubr.bf16.gmra.mrb[140].mxu0 %v3780_v20  ;;  %1991 = vmatmul.mubr.bf16.gmra.mrb[140].mxu1 %v3488_v18 }
 0x13f   : > { %v4249_v36 = vadd.f32 %v2934_v53, %v4185_v54 }
 0x141   : > { %v2847_v8 = vpop.f32.mrb[36].mxu0  ;;  %v2935_v32 = vpop.f32.mrb[36].mxu1 }
 0x142   : > { %v2848_v7 = vpop.f32.mrb[37].mxu0  ;;  %v2936_v9 = vpop.f32.mrb[37].mxu1 }
 0x143   : > { %v4251_v47 = vadd.f32 %v2848_v7, %v2847_v8  ;;  %v2850_v16 = vpop.f32.mrb[38].mxu0  ;;  %v2937_v41 = vadd.f32 %v2936_v9, %v2935_v32  ;;  %v2938_v60 = vpop.f32.mrb[38].mxu1 }
 0x144   : > { %v2851_v39 = vpop.f32.mrb[39].mxu0  ;;  %v2939_v43 = vpop.f32.mrb[39].mxu1 }
 0x145   : > { %v4253_v20 = vadd.f32 %v2851_v39, %v2850_v16  ;;  %v4256_v61 = vadd.f32 %v2937_v41, %v4197_v35  ;;  %v2940_v18 = vadd.f32 %v2939_v43, %v2938_v60 }
 0x147   : > { %v4259_v54 = vadd.f32 %v2940_v18, %v4199_v58 }
 0x149   : > { %v2853_v38 = vpop.f32.mrb[40].mxu0  ;;  %v2941_v51 = vpop.f32.mrb[40].mxu1 }
 0x14a   : > { %v2854_v49 = vpop.f32.mrb[41].mxu0  ;;  %v2942_v50 = vpop.f32.mrb[41].mxu1 }
 0x14b   : > { %v4261_v52 = vadd.f32 %v2854_v49, %v2853_v38  ;;  %v2856_v2 = vpop.f32.mrb[42].mxu0  ;;  %v2943_v10 = vadd.f32 %v2942_v50, %v2941_v51  ;;  %v2944_v4 = vpop.f32.mrb[42].mxu1 }
 0x14c   : > { %v2857_v34 = vpop.f32.mrb[43].mxu0  ;;  %v2945_v26 = vpop.f32.mrb[43].mxu1 }
 0x14d   : > { %v4263_v13 = vadd.f32 %v2857_v34, %v2856_v2  ;;  %v4266_v35 = vadd.f32 %v2943_v10, %v4211_v21  ;;  %v2946_v37 = vadd.f32 %v2945_v26, %v2944_v4 }
 0x14f   : > { %v4269_v58 = vadd.f32 %v2946_v37, %v4213_v40 }
 0x151   : > { %v2859_v1 = vpop.f32.mrb[44].mxu0  ;;  %v2947_v57 = vpop.f32.mrb[44].mxu1 }
 0x152   : > { %v2860_v3 = vpop.f32.mrb[45].mxu0  ;;  %v2948_v17 = vpop.f32.mrb[45].mxu1 }
 0x153   : > { %v4271_v42 = vadd.f32 %v2860_v3, %v2859_v1  ;;  %v2862_v5 = vpop.f32.mrb[46].mxu0  ;;  %v2949_v62 = vadd.f32 %v2948_v17, %v2947_v57  ;;  %v2950_v12 = vpop.f32.mrb[46].mxu1 }
 0x154   : > { %v2863_v63 = vpop.f32.mrb[47].mxu0  ;;  %v2951_v15 = vpop.f32.mrb[47].mxu1 }
 0x155   : > { %v4273_v23 = vadd.f32 %v2863_v63, %v2862_v5  ;;  %v4276_v21 = vadd.f32 %v2949_v62, %v4225_v33  ;;  %v2952_v53 = vadd.f32 %v2951_v15, %v2950_v12 }
 0x157   : > { %v4279_v40 = vadd.f32 %v2952_v53, %v4227_v55 }
 0x159   : > { %v3017_v8 = vpop.f32.mrb[48].mxu0  ;;  %v2953_v32 = vpop.f32.mrb[48].mxu1 }
 0x15a   : > { %v3018_v7 = vpop.f32.mrb[49].mxu0  ;;  %v2954_v39 = vpop.f32.mrb[49].mxu1 }
 0x15b   : > { %v3019_v16 = vadd.f32 %v3018_v7, %v3017_v8  ;;  %v3020_v9 = vpop.f32.mrb[50].mxu0  ;;  %v2955_v60 = vadd.f32 %v2954_v39, %v2953_v32  ;;  %v2956_v18 = vpop.f32.mrb[50].mxu1 }
 0x15c   : > { %v3021_v41 = vpop.f32.mrb[51].mxu0  ;;  %v2957_v49 = vpop.f32.mrb[51].mxu1 }
 0x15d   : > { %v4282_v43 = vadd.f32 %v3019_v16, %v4189_v56  ;;  %v3022_v38 = vadd.f32 %v3021_v41, %v3020_v9  ;;  %v4285_v33 = vadd.f32 %v2955_v60, %v4239_v27  ;;  %v2958_v51 = vadd.f32 %v2957_v49, %v2956_v18 }
 0x15f   : > { %v4288_v55 = vadd.f32 %v3022_v38, %v4194_v44  ;;  %v4291_v2 = vadd.f32 %v2958_v51, %v4241_v6 }
 0x161   : > { %v3023_v50 = vpop.f32.mrb[52].mxu0  ;;  %v2959_v10 = vpop.f32.mrb[52].mxu1 }
 0x162   : > { %v3024_v34 = vpop.f32.mrb[53].mxu0  ;;  %v2960_v56 = vpop.f32.mrb[53].mxu1 }
 0x163   : > { %v3025_v4 = vadd.f32 %v3024_v34, %v3023_v50  ;;  %v3026_v26 = vpop.f32.mrb[54].mxu0  ;;  %v2961_v1 = vadd.f32 %v2960_v56, %v2959_v10  ;;  %v2962_v27 = vpop.f32.mrb[54].mxu1 }
 0x164   : > { %v3027_v37 = vpop.f32.mrb[55].mxu0  ;;  %v2963_v5 = vpop.f32.mrb[55].mxu1 }
 0x165   : > { %v4294_v3 = vadd.f32 %v3025_v4, %v4203_v11  ;;  %v3028_v57 = vadd.f32 %v3027_v37, %v3026_v26  ;;  %v4297_v44 = vadd.f32 %v2961_v1, %v4251_v47  ;;  %v2964_v17 = vadd.f32 %v2963_v5, %v2962_v27 }
 0x167   : > { %v4300_v6 = vadd.f32 %v3028_v57, %v4208_v31  ;;  %v4303_v63 = vadd.f32 %v2964_v17, %v4253_v20 }
 0x169   : > { %v3029_v62 = vpop.f32.mrb[56].mxu0  ;;  %v2965_v15 = vpop.f32.mrb[56].mxu1 }
 0x16a   : > { %v3030_v12 = vpop.f32.mrb[57].mxu0  ;;  %v2966_v11 = vpop.f32.mrb[57].mxu1 }
 0x16b   : > { %v3031_v53 = vadd.f32 %v3030_v12, %v3029_v62  ;;  %v3032_v8 = vpop.f32.mrb[58].mxu0  ;;  %v2967_v32 = vadd.f32 %v2966_v11, %v2965_v15  ;;  %v2968_v47 = vpop.f32.mrb[58].mxu1 }
 0x16c   : > { %v3033_v7 = vpop.f32.mrb[59].mxu0  ;;  %v2969_v39 = vpop.f32.mrb[59].mxu1 }
 0x16d   : > { %v4306_v16 = vadd.f32 %v3031_v53, %v4217_v0  ;;  %v3034_v9 = vadd.f32 %v3033_v7, %v3032_v8  ;;  %v4309_v31 = vadd.f32 %v2967_v32, %v4261_v52  ;;  %v2970_v41 = vadd.f32 %v2969_v39, %v2968_v47 }
 0x16f   : > { %v4312_v20 = vadd.f32 %v3034_v9, %v4222_v30  ;;  %v4315_v60 = vadd.f32 %v2970_v41, %v4263_v13 }
 0x171   : > { %v3035_v18 = vpop.f32.mrb[60].mxu0  ;;  %v2971_v49 = vpop.f32.mrb[60].mxu1 }
 0x172   : > { %v3036_v38 = vpop.f32.mrb[61].mxu0  ;;  %v2972_v0 = vpop.f32.mrb[61].mxu1 }
 0x173   : > { %v3037_v51 = vadd.f32 %v3036_v38, %v3035_v18  ;;  %v3038_v50 = vpop.f32.mrb[62].mxu0  ;;  %v2973_v10 = vadd.f32 %v2972_v0, %v2971_v49  ;;  %v2974_v52 = vpop.f32.mrb[62].mxu1 }
 0x174   : > { %v3039_v34 = vpop.f32.mrb[63].mxu0  ;;  %v2975_v56 = vpop.f32.mrb[63].mxu1 }
 0x175   : > { %v4318_v4 = vadd.f32 %v3037_v51, %v4231_v48  ;;  %v3040_v26 = vadd.f32 %v3039_v34, %v3038_v50  ;;  %v4321_v30 = vadd.f32 %v2973_v10, %v4271_v42  ;;  %v2976_v37 = vadd.f32 %v2975_v56, %v2974_v52 }
 0x177   : > { %v4324_v13 = vadd.f32 %v3040_v26, %v4236_v19  ;;  %v4327_v1 = vadd.f32 %v2976_v37, %v4273_v23 }
 0x179   : > { %v3041_v27 = vpop.f32.mrb[64].mxu0  ;;  %v2977_v5 = vpop.f32.mrb[64].mxu1 }
 0x17a   : > { %v3042_v57 = vpop.f32.mrb[65].mxu0  ;;  %v2978_v48 = vpop.f32.mrb[65].mxu1 }
 0x17b   : > { %v3043_v17 = vadd.f32 %v3042_v57, %v3041_v27  ;;  %v3044_v62 = vpop.f32.mrb[66].mxu0  ;;  %v2979_v15 = vadd.f32 %v2978_v48, %v2977_v5  ;;  %v2980_v42 = vpop.f32.mrb[66].mxu1 }
 0x17c   : > { %v3045_v12 = vpop.f32.mrb[67].mxu0  ;;  %v2981_v11 = vpop.f32.mrb[67].mxu1 }
 0x17d   : > { %v4330_v53 = vadd.f32 %v3043_v17, %v4245_v22  ;;  %v3046_v8 = vadd.f32 %v3045_v12, %v3044_v62  ;;  %v4333_v19 = vadd.f32 %v2979_v15, %v4134_v14  ;;  %v2982_v7 = vadd.f32 %v2981_v11, %v2980_v42 }
 0x17f   : > { %v4336_v23 = vadd.f32 %v3046_v8, %v4249_v36  ;;  %v4339_v32 = vadd.f32 %v2982_v7, %v4141_v46 }
 0x181   : > { %v3047_v47 = vpop.f32.mrb[68].mxu0  ;;  %v2983_v39 = vpop.f32.mrb[68].mxu1 }
 0x182   : > { %v3048_v9 = vpop.f32.mrb[69].mxu0  ;;  %v2984_v22 = vpop.f32.mrb[69].mxu1 }
 0x183   : > { %v3049_v41 = vadd.f32 %v3048_v9, %v3047_v47  ;;  %v3050_v18 = vpop.f32.mrb[70].mxu0  ;;  %v2985_v49 = vadd.f32 %v2984_v22, %v2983_v39  ;;  %v2986_v14 = vpop.f32.mrb[70].mxu1 }
 0x184   : > { %v3051_v38 = vpop.f32.mrb[71].mxu0  ;;  %v2987_v0 = vpop.f32.mrb[71].mxu1 }
 0x185   : > { %v4342_v51 = vadd.f32 %v3049_v41, %v4256_v61  ;;  %v3052_v50 = vadd.f32 %v3051_v38, %v3050_v18  ;;  %v4345_v36 = vadd.f32 %v2985_v49, %v4149_v29  ;;  %v2988_v34 = vadd.f32 %v2987_v0, %v2986_v14 }
 0x187   : > { %v4348_v46 = vadd.f32 %v3052_v50, %v4259_v54  ;;  %v4351_v10 = vadd.f32 %v2988_v34, %v4153_v24 }
 0x189   : > { %v3053_v52 = vpop.f32.mrb[72].mxu0  ;;  %v2989_v56 = vpop.f32.mrb[72].mxu1 }
 0x18a   : > { %v3054_v26 = vpop.f32.mrb[73].mxu0  ;;  %v2990_v61 = vpop.f32.mrb[73].mxu1 }
 0x18b   : > { %v3055_v37 = vadd.f32 %v3054_v26, %v3053_v52  ;;  %v3056_v27 = vpop.f32.mrb[74].mxu0  ;;  %v2991_v5 = vadd.f32 %v2990_v61, %v2989_v56  ;;  %v2992_v29 = vpop.f32.mrb[74].mxu1 }
 0x18c   : > { %v3057_v57 = vpop.f32.mrb[75].mxu0  ;;  %v2993_v48 = vpop.f32.mrb[75].mxu1 }
 0x18d   : > { %v4354_v17 = vadd.f32 %v3055_v37, %v4266_v35  ;;  %v3058_v62 = vadd.f32 %v3057_v57, %v3056_v27  ;;  %v4357_v54 = vadd.f32 %v2991_v5, %v4161_v25  ;;  %v2994_v12 = vadd.f32 %v2993_v48, %v2992_v29 }
 0x18f   : > { %v4360_v24 = vadd.f32 %v3058_v62, %v4269_v58  ;;  %v4363_v15 = vadd.f32 %v2994_v12, %v4165_v59 }
 0x191   : > { %v3059_v42 = vpop.f32.mrb[76].mxu0  ;;  %v2995_v11 = vpop.f32.mrb[76].mxu1 }
 0x192   : > { %v3060_v8 = vpop.f32.mrb[77].mxu0  ;;  %v2996_v35 = vpop.f32.mrb[77].mxu1 }
 0x193   : > { %v3061_v7 = vadd.f32 %v3060_v8, %v3059_v42  ;;  %v3062_v47 = vpop.f32.mrb[78].mxu0  ;;  %v2997_v39 = vadd.f32 %v2996_v35, %v2995_v11  ;;  %v2998_v25 = vpop.f32.mrb[78].mxu1 }
 0x194   : > { %v3063_v9 = vpop.f32.mrb[79].mxu0  ;;  %v2999_v22 = vpop.f32.mrb[79].mxu1 }
 0x195   : > { %v4366_v41 = vadd.f32 %v3061_v7, %v4276_v21  ;;  %v3064_v18 = vadd.f32 %v3063_v9, %v3062_v47  ;;  %v4369_v58 = vadd.f32 %v2997_v39, %v4173_v45  ;;  %v3000_v38 = vadd.f32 %v2999_v22, %v2998_v25 }
 0x197   : > { %v4372_v59 = vadd.f32 %v3064_v18, %v4279_v40  ;;  %v4375_v49 = vadd.f32 %v3000_v38, %v4178_v28 }
 0x199   : > { %v3065_v14 = vpop.f32.mrb[80].mxu0  ;;  %v3129_v0 = vpop.f32.mrb[80].mxu1 }
 0x19a   : > { %v3066_v50 = vpop.f32.mrb[81].mxu0  ;;  %v3130_v21 = vpop.f32.mrb[81].mxu1 }
 0x19b   : > { %v3067_v34 = vadd.f32 %v3066_v50, %v3065_v14  ;;  %v3068_v52 = vpop.f32.mrb[82].mxu0  ;;  %v3131_v37 = vadd.f32 %v3130_v21, %v3129_v0  ;;  %v3132_v45 = vpop.f32.mrb[82].mxu1 }
 0x19c   : > { %v3069_v26 = vpop.f32.mrb[83].mxu0  ;;  %v3133_v61 = vpop.f32.mrb[83].mxu1 }
 0x19d   : > { %v4378_v56 = vadd.f32 %v3067_v34, %v4285_v33  ;;  %v3070_v27 = vadd.f32 %v3069_v26, %v3068_v52  ;;  %v3134_v57 = vadd.f32 %v3133_v61, %v3132_v45  ;;  %v4384_v28 = vadd.f32 %v3131_v37, %v4282_v43 }
 0x19f   : > { %v4381_v40 = vadd.f32 %v3070_v27, %v4291_v2  ;;  %v4387_v29 = vadd.f32 %v3134_v57, %v4288_v55 }
 0x1a1   : > { %v3071_v5 = vpop.f32.mrb[84].mxu0  ;;  %v3135_v48 = vpop.f32.mrb[84].mxu1 }
 0x1a2   : > { %v3072_v62 = vpop.f32.mrb[85].mxu0  ;;  %v3136_v42 = vpop.f32.mrb[85].mxu1 }
 0x1a3   : > { %v3073_v12 = vadd.f32 %v3072_v62, %v3071_v5  ;;  %v3074_v33 = vpop.f32.mrb[86].mxu0  ;;  %v3137_v7 = vadd.f32 %v3136_v42, %v3135_v48  ;;  %v3138_v2 = vpop.f32.mrb[86].mxu1 }
 0x1a4   : > { %v3075_v8 = vpop.f32.mrb[87].mxu0  ;;  %v3139_v35 = vpop.f32.mrb[87].mxu1 }
 0x1a5   : > { %v4390_v11 = vadd.f32 %v3073_v12, %v4297_v44  ;;  %v3076_v47 = vadd.f32 %v3075_v8, %v3074_v33  ;;  %v3140_v9 = vadd.f32 %v3139_v35, %v3138_v2  ;;  %v4396_v55 = vadd.f32 %v3137_v7, %v4294_v3 }
 0x1a7   : > { %v4393_v43 = vadd.f32 %v3076_v47, %v4303_v63  ;;  %v4399_v25 = vadd.f32 %v3140_v9, %v4300_v6 }
 0x1a9   : > { %v3077_v39 = vpop.f32.mrb[88].mxu0  ;;  %v3141_v22 = vpop.f32.mrb[88].mxu1 }
 0x1aa   : > { %v3078_v18 = vpop.f32.mrb[89].mxu0  ;;  %v3142_v14 = vpop.f32.mrb[89].mxu1 }
 0x1ab   : > { %v3079_v38 = vadd.f32 %v3078_v18, %v3077_v39  ;;  %v3080_v44 = vpop.f32.mrb[90].mxu0  ;;  %v3143_v34 = vadd.f32 %v3142_v14, %v3141_v22  ;;  %v3144_v63 = vpop.f32.mrb[90].mxu1 }
 0x1ac   : > { %v3081_v50 = vpop.f32.mrb[91].mxu0  ;;  %v3145_v21 = vpop.f32.mrb[91].mxu1 }
 0x1ad   : > { %v4402_v0 = vadd.f32 %v3079_v38, %v4309_v31  ;;  %v3082_v52 = vadd.f32 %v3081_v50, %v3080_v44  ;;  %v3146_v26 = vadd.f32 %v3145_v21, %v3144_v63  ;;  %v4408_v6 = vadd.f32 %v3143_v34, %v4306_v16 }
 0x1af   : > { %v4405_v3 = vadd.f32 %v3082_v52, %v4315_v60  ;;  %v4411_v45 = vadd.f32 %v3146_v26, %v4312_v20 }
 0x1b1   : > { %v3083_v37 = vpop.f32.mrb[92].mxu0  ;;  %v3147_v61 = vpop.f32.mrb[92].mxu1 }
 0x1b2   : > { %v3084_v27 = vpop.f32.mrb[93].mxu0  ;;  %v3148_v5 = vpop.f32.mrb[93].mxu1 }
 0x1b3   : > { %v3085_v57 = vadd.f32 %v3084_v27, %v3083_v37  ;;  %v3086_v31 = vpop.f32.mrb[94].mxu0  ;;  %v3149_v12 = vadd.f32 %v3148_v5, %v3147_v61  ;;  %v3150_v60 = vpop.f32.mrb[94].mxu1 }
 0x1b4   : > { %v3087_v62 = vpop.f32.mrb[95].mxu0  ;;  %v3151_v42 = vpop.f32.mrb[95].mxu1 }
 0x1b5   : > { %v4414_v48 = vadd.f32 %v3085_v57, %v4321_v30  ;;  %v3088_v33 = vadd.f32 %v3087_v62, %v3086_v31  ;;  %v3152_v8 = vadd.f32 %v3151_v42, %v3150_v60  ;;  %v4420_v20 = vadd.f32 %v3149_v12, %v4318_v4 }
 0x1b7   : > { %v4417_v16 = vadd.f32 %v3088_v33, %v4327_v1  ;;  %v4423_v2 = vadd.f32 %v3152_v8, %v4324_v13 }
 0x1b9   : > { %v3089_v7 = vpop.f32.mrb[96].mxu0  ;;  %v3153_v35 = vpop.f32.mrb[96].mxu1 }
 0x1ba   : > { %v3090_v47 = vpop.f32.mrb[97].mxu0  ;;  %v3154_v39 = vpop.f32.mrb[97].mxu1 }
 0x1bb   : > { %v3091_v9 = vadd.f32 %v3090_v47, %v3089_v7  ;;  %v3092_v30 = vpop.f32.mrb[98].mxu0  ;;  %v3155_v38 = vadd.f32 %v3154_v39, %v3153_v35  ;;  %v3156_v1 = vpop.f32.mrb[98].mxu1 }
 0x1bc   : > { %v3093_v18 = vpop.f32.mrb[99].mxu0  ;;  %v3157_v14 = vpop.f32.mrb[99].mxu1 }
 0x1bd   : > { %v4426_v22 = vadd.f32 %v3091_v9, %v4333_v19  ;;  %v3094_v44 = vadd.f32 %v3093_v18, %v3092_v30  ;;  %v3158_v50 = vadd.f32 %v3157_v14, %v3156_v1  ;;  %v4432_v13 = vadd.f32 %v3155_v38, %v4330_v53 }
 0x1bf   : > { %v4429_v4 = vadd.f32 %v3094_v44, %v4339_v32  ;;  %v4435_v63 = vadd.f32 %v3158_v50, %v4336_v23 }
 0x1c1   : > { %v3095_v34 = vpop.f32.mrb[100].mxu0  ;;  %v3159_v21 = vpop.f32.mrb[100].mxu1 }
 0x1c2   : > { %v3096_v52 = vpop.f32.mrb[101].mxu0  ;;  %v3160_v37 = vpop.f32.mrb[101].mxu1 }
 0x1c3   : > { %v3097_v26 = vadd.f32 %v3096_v52, %v3095_v34  ;;  %v3098_v19 = vpop.f32.mrb[102].mxu0  ;;  %v3161_v57 = vadd.f32 %v3160_v37, %v3159_v21  ;;  %v3162_v32 = vpop.f32.mrb[102].mxu1 }
 0x1c4   : > { %v3099_v27 = vpop.f32.mrb[103].mxu0  ;;  %v3163_v5 = vpop.f32.mrb[103].mxu1 }
 0x1c5   : > { %v4438_v61 = vadd.f32 %v3097_v26, %v4345_v36  ;;  %v3100_v31 = vadd.f32 %v3099_v27, %v3098_v19  ;;  %v3164_v62 = vadd.f32 %v3163_v5, %v3162_v32  ;;  %v4444_v23 = vadd.f32 %v3161_v57, %v4342_v51 }
 0x1c7   : > { %v4441_v53 = vadd.f32 %v3100_v31, %v4351_v10  ;;  %v4447_v60 = vadd.f32 %v3164_v62, %v4348_v46 }
 0x1c9   : > { %v3101_v12 = vpop.f32.mrb[104].mxu0  ;;  %v3165_v42 = vpop.f32.mrb[104].mxu1 }
 0x1ca   : > { %v3102_v33 = vpop.f32.mrb[105].mxu0  ;;  %v3166_v7 = vpop.f32.mrb[105].mxu1 }
 0x1cb   : > { %v3103_v8 = vadd.f32 %v3102_v33, %v3101_v12  ;;  %v3104_v36 = vpop.f32.mrb[106].mxu0  ;;  %v3167_v9 = vadd.f32 %v3166_v7, %v3165_v42  ;;  %v3168_v10 = vpop.f32.mrb[106].mxu1 }
 0x1cc   : > { %v3105_v47 = vpop.f32.mrb[107].mxu0  ;;  %v3169_v39 = vpop.f32.mrb[107].mxu1 }
 0x1cd   : > { %v4450_v35 = vadd.f32 %v3103_v8, %v4357_v54  ;;  %v3106_v30 = vadd.f32 %v3105_v47, %v3104_v36  ;;  %v3170_v18 = vadd.f32 %v3169_v39, %v3168_v10  ;;  %v4456_v46 = vadd.f32 %v3167_v9, %v4354_v17 }
 0x1cf   : > { %v4453_v51 = vadd.f32 %v3106_v30, %v4363_v15  ;;  %v4459_v1 = vadd.f32 %v3170_v18, %v4360_v24 }
 0x1d1   : > { %v3107_v38 = vpop.f32.mrb[108].mxu0  ;;  %v3171_v14 = vpop.f32.mrb[108].mxu1 }
 0x1d2   : > { %v3108_v44 = vpop.f32.mrb[109].mxu0  ;;  %v3172_v34 = vpop.f32.mrb[109].mxu1 }
 0x1d3   : > { %v3109_v50 = vadd.f32 %v3108_v44, %v3107_v38  ;;  %v3110_v54 = vpop.f32.mrb[110].mxu0  ;;  %v3173_v15 = vadd.f32 %v3172_v34, %v3171_v14  ;;  %v3174_v26 = vpop.f32.mrb[110].mxu1 }
 0x1d4   : > { %v3111_v52 = vpop.f32.mrb[111].mxu0  ;;  %v3175_v37 = vpop.f32.mrb[111].mxu1 }
 0x1d5   : > { %v4462_v21 = vadd.f32 %v3109_v50, %v4369_v58  ;;  %v3112_v19 = vadd.f32 %v3111_v52, %v3110_v54  ;;  %v3176_v27 = vadd.f32 %v3175_v37, %v3174_v26  ;;  %v4468_v24 = vadd.f32 %v3173_v15, %v4366_v41 }
 0x1d7   : > { %v4465_v17 = vadd.f32 %v3112_v19, %v4375_v49  ;;  %v4471_v32 = vadd.f32 %v3176_v27, %v4372_v59 }
 0x1d9   : > { %v3267_v57 = vpop.f32.mrb[112].mxu0  ;;  %v3177_v58 = vpop.f32.mrb[112].mxu1 }
 0x1da   : > { %v2042_v31 = vadd.f32 %v3267_v57, %v4396_v55  ;;  %v2033_v5 = vpop.f32.mrb[113].mxu0  ;;  %v3178_v33 = vpop.f32.mrb[113].mxu1 }
 0x1db   : > { %v2034_v62 = vadd.f32 %v2033_v5, %v4384_v28  ;;  %v3268_v12 = vpop.f32.mrb[114].mxu0  ;;  %v3179_v8 = vadd.f32 %v3178_v33, %v3177_v58  ;;  %v3180_v36 = vpop.f32.mrb[114].mxu1 }
 0x1dc   : > { %v2045_v49 = vadd.f32 %v3268_v12, %v4399_v25  ;;  %v2036_v42 = vpop.f32.mrb[115].mxu0  ;;  %v3181_v7 = vpop.f32.mrb[115].mxu1  ;;  %v2360_v30 = vmul.f32 %v2042_v31, %v2042_v31 }
 0x1dd   : > { %v2037_v41 = vadd.f32 %v2036_v42, %v4387_v29  ;;  %v2358_v59 = vmul.f32 %v2034_v62, %v2034_v62  ;;  %v3182_v28 = vadd.f32 %v3181_v7, %v3180_v36  ;;  %v4485_v25 = vadd.f32 %v3179_v8, %v4378_v56 }
 0x1de   : > { %v2690_v55 = vpack.c.bf16 %v2045_v49, %v2042_v31  ;;  %v2361_v50 = vmul.f32 %v2045_v49, %v2045_v49 }
 0x1df   : > { %v2685_v47 = vpack.c.bf16 %v2037_v41, %v2034_v62  ;;  %v2320_v9 = vadd.f32 %v2037_v41, %v2034_v62  ;;  %v2359_v10 = vmul.f32 %v2037_v41, %v2037_v41  ;;  %v4489_v44 = vadd.f32 %v3182_v28, %v4381_v40 }
 0x1e0   : > { %2762 = vst [vmem:[%s4480_s28 + $0x8] sm:$0xff] %v2690_v55  }
 0x1e1   : > { %2686 = vst [vmem:[%s4480_s28] sm:$0xff] %v2685_v47   ;;  %v2321_v39 = vadd.f32 %v2320_v9, %v2042_v31  ;;  %v2390_v18 = vadd.f32 %v2359_v10, %v2358_v59  ;;  %v3271_v38 = vpop.f32.mrb[116].mxu0  ;;  %v3183_v34 = vpop.f32.mrb[116].mxu1 }
 0x1e2   : > { %v2058_v29 = vadd.f32 %v3271_v38, %v4420_v20  ;;  %v2049_v14 = vpop.f32.mrb[117].mxu0  ;;  %v3184_v26 = vpop.f32.mrb[117].mxu1 }
 0x1e3   : > { %v2391_v54 = vadd.f32 %v2390_v18, %v2360_v30  ;;  %v2050_v52 = vadd.f32 %v2049_v14, %v4408_v6  ;;  %v2322_v15 = vadd.f32 %v2321_v39, %v2045_v49  ;;  %v3272_v56 = vpop.f32.mrb[118].mxu0  ;;  %v3185_v27 = vadd.f32 %v3184_v26, %v3183_v34  ;;  %v3186_v5 = vpop.f32.mrb[118].mxu1 }
 0x1e4   : > { %v2061_v19 = vadd.f32 %v3272_v56, %v4423_v2  ;;  %v2052_v37 = vpop.f32.mrb[119].mxu0  ;;  %v3187_v58 = vpop.f32.mrb[119].mxu1  ;;  %v2364_v41 = vmul.f32 %v2058_v29, %v2058_v29 }
 0x1e5   : > { %v2323_v57 = vadd.f32 %v2322_v15, %v2050_v52  ;;  %v2362_v31 = vmul.f32 %v2050_v52, %v2050_v52  ;;  %v2392_v40 = vadd.f32 %v2391_v54, %v2361_v50  ;;  %v2053_v62 = vadd.f32 %v2052_v37, %v4411_v45 }
 0x1e6   : > { %v2700_v20 = vpack.c.bf16 %v2061_v19, %v2058_v29  ;;  %v3188_v33 = vadd.f32 %v3187_v58, %v3186_v5  ;;  %v4496_v6 = vadd.f32 %v3185_v27, %v4390_v11  ;;  %v2365_v9 = vmul.f32 %v2061_v19, %v2061_v19 }
 0x1e7   : > { %v2393_v12 = vadd.f32 %v2392_v40, %v2362_v31  ;;  %v2695_v49 = vpack.c.bf16 %v2053_v62, %v2050_v52  ;;  %v2324_v42 = vadd.f32 %v2323_v57, %v2053_v62  ;;  %v2363_v2 = vmul.f32 %v2053_v62, %v2053_v62 }
 0x1e8   : > { %2764 = vst [vmem:[%s4480_s28 + $0x18] sm:$0xff] %v2700_v20   ;;  %v4500_v36 = vadd.f32 %v3188_v33, %v4393_v43 }
 0x1e9   : > { %v3275_v8 = vpop.f32.mrb[120].mxu0  ;;  %2763 = vst [vmem:[%s4480_s28 + $0x10] sm:$0xff] %v2695_v49   ;;  %v2325_v59 = vadd.f32 %v2324_v42, %v2058_v29  ;;  %v2394_v55 = vadd.f32 %v2393_v12, %v2363_v2  ;;  %v3189_v28 = vpop.f32.mrb[120].mxu1 }
 0x1ea   : > { %v2074_v7 = vadd.f32 %v3275_v8, %v4444_v23  ;;  %v2065_v45 = vpop.f32.mrb[121].mxu0  ;;  %v3190_v30 = vpop.f32.mrb[121].mxu1 }
 0x1eb   : > { %v2066_v47 = vadd.f32 %v2065_v45, %v4432_v13  ;;  %v3276_v11 = vpop.f32.mrb[122].mxu0  ;;  %v2395_v10 = vadd.f32 %v2394_v55, %v2364_v41  ;;  %v2326_v39 = vadd.f32 %v2325_v59, %v2061_v19  ;;  %v3191_v38 = vadd.f32 %v3190_v30, %v3189_v28  ;;  %v3192_v29 = vpop.f32.mrb[122].mxu1 }
 0x1ec   : > { %v2077_v18 = vadd.f32 %v3276_v11, %v4447_v60  ;;  %v2068_v43 = vpop.f32.mrb[123].mxu0  ;;  %v3193_v52 = vpop.f32.mrb[123].mxu1  ;;  %v2368_v57 = vmul.f32 %v2074_v7, %v2074_v7 }
 0x1ed   : > { %v2366_v14 = vmul.f32 %v2066_v47, %v2066_v47  ;;  %v2069_v50 = vadd.f32 %v2068_v43, %v4435_v63  ;;  %v2327_v23 = vadd.f32 %v2326_v39, %v2066_v47  ;;  %v2396_v54 = vadd.f32 %v2395_v10, %v2365_v9 }
 0x1ee   : > { %v2710_v34 = vpack.c.bf16 %v2077_v18, %v2074_v7  ;;  %v3194_v13 = vadd.f32 %v3193_v52, %v3192_v29  ;;  %v4508_v26 = vadd.f32 %v3191_v38, %v4402_v0  ;;  %v2369_v0 = vmul.f32 %v2077_v18, %v2077_v18 }
 0x1ef   : > { %v2705_v15 = vpack.c.bf16 %v2069_v50, %v2066_v47  ;;  %v2367_v56 = vmul.f32 %v2069_v50, %v2069_v50  ;;  %v2397_v19 = vadd.f32 %v2396_v54, %v2366_v14  ;;  %v2328_v60 = vadd.f32 %v2327_v23, %v2069_v50 }
 0x1f0   : > { %2766 = vst [vmem:[%s4480_s28 + $0x28] sm:$0xff] %v2710_v34   ;;  %v4513_v27 = vadd.f32 %v3194_v13, %v4405_v3 }
 0x1f1   : > { %2765 = vst [vmem:[%s4480_s28 + $0x20] sm:$0xff] %v2705_v15   ;;  %v3279_v37 = vpop.f32.mrb[124].mxu0  ;;  %v2329_v63 = vadd.f32 %v2328_v60, %v2074_v7  ;;  %v2398_v31 = vadd.f32 %v2397_v19, %v2367_v56  ;;  %v3195_v20 = vpop.f32.mrb[124].mxu1 }
 0x1f2   : > { %v2090_v40 = vadd.f32 %v3279_v37, %v4468_v24  ;;  %v2081_v5 = vpop.f32.mrb[125].mxu0  ;;  %v3196_v33 = vpop.f32.mrb[125].mxu1 }
 0x1f3   : > { %v2082_v58 = vadd.f32 %v2081_v5, %v4456_v46  ;;  %v3280_v62 = vpop.f32.mrb[126].mxu0  ;;  %v2399_v12 = vadd.f32 %v2398_v31, %v2368_v57  ;;  %v2330_v49 = vadd.f32 %v2329_v63, %v2077_v18  ;;  %v3197_v3 = vadd.f32 %v3196_v33, %v3195_v20  ;;  %v3198_v41 = vpop.f32.mrb[126].mxu1 }
 0x1f4   : > { %v2093_v42 = vadd.f32 %v3280_v62, %v4471_v32  ;;  %v2084_v2 = vpop.f32.mrb[127].mxu0  ;;  %v3199_v45 = vpop.f32.mrb[127].mxu1  ;;  %v2372_v39 = vmul.f32 %v2090_v40, %v2090_v40 }
 0x1f5   : > { %v2370_v8 = vmul.f32 %v2082_v58, %v2082_v58  ;;  %v2085_v59 = vadd.f32 %v2084_v2, %v4459_v1  ;;  %v2331_v24 = vadd.f32 %v2330_v49, %v2082_v58  ;;  %v2400_v55 = vadd.f32 %v2399_v12, %v2369_v0 }
 0x1f6   : > { %v2720_v7 = vpack.c.bf16 %v2093_v42, %v2090_v40  ;;  %v3200_v46 = vadd.f32 %v3199_v45, %v3198_v41  ;;  %v1961_v11 = vadd.f32 %v3197_v3, %v4414_v48  ;;  %v2373_v23 = vmul.f32 %v2093_v42, %v2093_v42 }
 0x1f7   : > { %v2715_v28 = vpack.c.bf16 %v2085_v59, %v2082_v58  ;;  %v2371_v47 = vmul.f32 %v2085_v59, %v2085_v59  ;;  %v2401_v9 = vadd.f32 %v2400_v55, %v2370_v8  ;;  %v2332_v10 = vadd.f32 %v2331_v24, %v2085_v59 }
 0x1f8   : > { %2768 = vst [vmem:[%s4480_s28 + $0x38] sm:$0xff] %v2720_v7   ;;  %v1964_v30 = vadd.f32 %v3200_v46, %v4417_v16 }
 0x1f9   : > { %2767 = vst [vmem:[%s4480_s28 + $0x30] sm:$0xff] %v2715_v28   ;;  %v3283_v32 = vpop.f32.mrb[128].mxu0  ;;  %v2333_v18 = vadd.f32 %v2332_v10, %v2090_v40  ;;  %v2402_v43 = vadd.f32 %v2401_v9, %v2371_v47  ;;  %v3201_v14 = vpop.f32.mrb[128].mxu1 }
 0x1fa   : > { %v2106_v1 = vadd.f32 %v3283_v32, %v4496_v6  ;;  %v2097_v38 = vpop.f32.mrb[129].mxu0  ;;  %v3202_v48 = vpop.f32.mrb[129].mxu1 }
 0x1fb   : > { %v2098_v29 = vadd.f32 %v2097_v38, %v4485_v25  ;;  %v3284_v50 = vpop.f32.mrb[130].mxu0  ;;  %v2403_v54 = vadd.f32 %v2402_v43, %v2372_v39  ;;  %v2334_v34 = vadd.f32 %v2333_v18, %v2093_v42  ;;  %v3203_v16 = vadd.f32 %v3202_v48, %v3201_v14  ;;  %v3204_v56 = vpop.f32.mrb[130].mxu1 }
 0x1fc   : > { %v2109_v52 = vadd.f32 %v3284_v50, %v4500_v36  ;;  %v2100_v13 = vpop.f32.mrb[131].mxu0  ;;  %v3205_v57 = vpop.f32.mrb[131].mxu1  ;;  %v2376_v62 = vmul.f32 %v2106_v1, %v2106_v1 }
 0x1fd   : > { %v2374_v15 = vmul.f32 %v2098_v29, %v2098_v29  ;;  %v2101_v19 = vadd.f32 %v2100_v13, %v4489_v44  ;;  %v2335_v6 = vadd.f32 %v2334_v34, %v2098_v29  ;;  %v2404_v60 = vadd.f32 %v2403_v54, %v2373_v23 }
 0x1fe   : > { %v2730_v37 = vpack.c.bf16 %v2109_v52, %v2106_v1  ;;  %v3206_v25 = vadd.f32 %v3205_v57, %v3204_v56  ;;  %v1969_v40 = vadd.f32 %v3203_v16, %v4426_v22  ;;  %v2377_v3 = vmul.f32 %v2109_v52, %v2109_v52 }
 0x1ff   : > { %v2725_v63 = vpack.c.bf16 %v2101_v19, %v2098_v29  ;;  %v2375_v31 = vmul.f32 %v2101_v19, %v2101_v19  ;;  %v2405_v5 = vadd.f32 %v2404_v60, %v2374_v15  ;;  %v2336_v20 = vadd.f32 %v2335_v6, %v2101_v19 }
 0x200   : > { %2770 = vst [vmem:[%s4480_s28 + $0x48] sm:$0xff] %v2730_v37   ;;  %v1972_v58 = vadd.f32 %v3206_v25, %v4429_v4 }
 0x201   : > { %2769 = vst [vmem:[%s4480_s28 + $0x40] sm:$0xff] %v2725_v63   ;;  %v3287_v36 = vpop.f32.mrb[132].mxu0  ;;  %v2337_v0 = vadd.f32 %v2336_v20, %v2106_v1  ;;  %v2406_v12 = vadd.f32 %v2405_v5, %v2375_v31  ;;  %v3207_v49 = vpop.f32.mrb[132].mxu1 }
 0x202   : > { %v2122_v44 = vadd.f32 %v3287_v36, %v1961_v11  ;;  %v2113_v33 = vpop.f32.mrb[133].mxu0  ;;  %v3208_v41 = vpop.f32.mrb[133].mxu1 }
 0x203   : > { %v2114_v42 = vadd.f32 %v2113_v33, %v4508_v26  ;;  %v3288_v2 = vpop.f32.mrb[134].mxu0  ;;  %v2407_v8 = vadd.f32 %v2406_v12, %v2376_v62  ;;  %v2338_v22 = vadd.f32 %v2337_v0, %v2109_v52  ;;  %v3209_v55 = vadd.f32 %v3208_v41, %v3207_v49  ;;  %v3210_v4 = vpop.f32.mrb[134].mxu1 }
 0x204   : > { %v2125_v59 = vadd.f32 %v3288_v2, %v1964_v30  ;;  %v2116_v24 = vpop.f32.mrb[135].mxu0  ;;  %v3211_v11 = vpop.f32.mrb[135].mxu1  ;;  %v2380_v1 = vmul.f32 %v2122_v44, %v2122_v44 }
 0x205   : > { %v2378_v7 = vmul.f32 %v2114_v42, %v2114_v42  ;;  %v2117_v45 = vadd.f32 %v2116_v24, %v4513_v27  ;;  %v2339_v46 = vadd.f32 %v2338_v22, %v2114_v42  ;;  %v2408_v28 = vadd.f32 %v2407_v8, %v2377_v3 }
 0x206   : > { %v2740_v47 = vpack.c.bf16 %v2125_v59, %v2122_v44  ;;  %v3212_v9 = vadd.f32 %v3211_v11, %v3210_v4  ;;  %v1977_v32 = vadd.f32 %v3209_v55, %v4438_v61  ;;  %v2381_v48 = vmul.f32 %v2125_v59, %v2125_v59 }
 0x207   : > { %v2735_v26 = vpack.c.bf16 %v2117_v45, %v2114_v42  ;;  %v2379_v10 = vmul.f32 %v2117_v45, %v2117_v45  ;;  %v2409_v39 = vadd.f32 %v2408_v28, %v2378_v7  ;;  %v2340_v18 = vadd.f32 %v2339_v46, %v2117_v45 }
 0x208   : > { %2772 = vst [vmem:[%s4480_s28 + $0x58] sm:$0xff] %v2740_v47   ;;  %v1980_v43 = vadd.f32 %v3212_v9, %v4441_v53 }
 0x209   : > { %2771 = vst [vmem:[%s4480_s28 + $0x50] sm:$0xff] %v2735_v26   ;;  %v3291_v30 = vpop.f32.mrb[136].mxu0  ;;  %v2341_v38 = vadd.f32 %v2340_v18, %v2122_v44  ;;  %v2410_v14 = vadd.f32 %v2409_v39, %v2379_v10  ;;  %v3213_v50 = vpop.f32.mrb[136].mxu1 }
 0x20a   : > { %v2138_v27 = vadd.f32 %v3291_v30, %v1977_v32  ;;  %v2129_v29 = vpop.f32.mrb[137].mxu0  ;;  %v3214_v52 = vpop.f32.mrb[137].mxu1 }
 0x20b   : > { %v2130_v23 = vadd.f32 %v2129_v29, %v1969_v40  ;;  %v3292_v54 = vpop.f32.mrb[138].mxu0  ;;  %v2411_v34 = vadd.f32 %v2410_v14, %v2380_v1  ;;  %v2342_v13 = vadd.f32 %v2341_v38, %v2125_v59  ;;  %v3215_v15 = vadd.f32 %v3214_v52, %v3213_v50  ;;  %v3216_v19 = vpop.f32.mrb[138].mxu1 }
 0x20c   : > { %v2141_v61 = vadd.f32 %v3292_v54, %v1980_v43  ;;  %v2132_v16 = vpop.f32.mrb[139].mxu0  ;;  %v3217_v57 = vpop.f32.mrb[139].mxu1  ;;  %v2384_v0 = vmul.f32 %v2138_v27, %v2138_v27 }
 0x20d   : > { %v2382_v56 = vmul.f32 %v2130_v23, %v2130_v23  ;;  %v2133_v53 = vadd.f32 %v2132_v16, %v1972_v58  ;;  %v2343_v6 = vadd.f32 %v2342_v13, %v2130_v23  ;;  %v2412_v60 = vadd.f32 %v2411_v34, %v2381_v48 }
 0x20e   : > { %v2750_v37 = vpack.c.bf16 %v2141_v61, %v2138_v27  ;;  %v3218_v25 = vadd.f32 %v3217_v57, %v3216_v19  ;;  %v1985_v40 = vadd.f32 %v3215_v15, %v4450_v35  ;;  %v2385_v2 = vmul.f32 %v2141_v61, %v2141_v61 }
 0x20f   : > { %v2745_v63 = vpack.c.bf16 %v2133_v53, %v2130_v23  ;;  %v2383_v31 = vmul.f32 %v2133_v53, %v2133_v53  ;;  %v2413_v5 = vadd.f32 %v2412_v60, %v2382_v56  ;;  %v2344_v20 = vadd.f32 %v2343_v6, %v2133_v53 }
 0x210   : > { %2774 = vst [vmem:[%s4480_s28 + $0x68] sm:$0xff] %v2750_v37   ;;  %v1988_v62 = vadd.f32 %v3218_v25, %v4453_v51 }
 0x211   : > { %2773 = vst [vmem:[%s4480_s28 + $0x60] sm:$0xff] %v2745_v63   ;;  %v3295_v36 = vpop.f32.mrb[140].mxu0  ;;  %v2345_v12 = vadd.f32 %v2344_v20, %v2138_v27  ;;  %v2414_v44 = vadd.f32 %v2413_v5, %v2383_v31  ;;  %v3219_v33 = vpop.f32.mrb[140].mxu1 }
 0x212   : > { %v2145_v58 = vpop.f32.mrb[141].mxu0  ;;  %v3220_v8 = vpop.f32.mrb[141].mxu1 }
 0x213   : > { %v2146_v49 = vadd.f32 %v2145_v58, %v1985_v40  ;;  %v3296_v42 = vpop.f32.mrb[142].mxu0  ;;  %v2415_v3 = vadd.f32 %v2414_v44, %v2384_v0  ;;  %v2346_v41 = vadd.f32 %v2345_v12, %v2141_v61  ;;  %v3221_v35 = vadd.f32 %v3220_v8, %v3219_v33  ;;  %v3222_v24 = vpop.f32.mrb[142].mxu1 }
 0x214   : > { %v2148_v22 = vpop.f32.mrb[143].mxu0  ;;  %v3223_v51 = vpop.f32.mrb[143].mxu1 }
 0x215   : > { %v2386_v59 = vmul.f32 %v2146_v49, %v2146_v49  ;;  %v2149_v55 = vadd.f32 %v2148_v22, %v1988_v62  ;;  %v2347_v7 = vadd.f32 %v2346_v41, %v2146_v49  ;;  %v2416_v4 = vadd.f32 %v2415_v3, %v2385_v2 }
 0x216   : > { %v1993_v45 = vadd.f32 %v3221_v35, %v4462_v21  ;;  %v3224_v46 = vadd.f32 %v3223_v51, %v3222_v24 }
 0x217   : > { %v2755_v28 = vpack.c.bf16 %v2149_v55, %v2146_v49  ;;  %v2387_v47 = vmul.f32 %v2149_v55, %v2149_v55  ;;  %v2417_v11 = vadd.f32 %v2416_v4, %v2386_v59  ;;  %v2348_v9 = vadd.f32 %v2347_v7, %v2149_v55 }
 0x218   : > { %v2154_v26 = vadd.f32 %v3295_v36, %v1993_v45  ;;  %v1996_v10 = vadd.f32 %v3224_v46, %v4465_v17 }
 0x219   : > { %2775 = vst [vmem:[%s4480_s28 + $0x70] sm:$0xff] %v2755_v28   ;;  %v2418_v32 = vadd.f32 %v2417_v11, %v2387_v47 }
 0x21a   : > { %v2388_v39 = vmul.f32 %v2154_v26, %v2154_v26  ;;  %v2157_v18 = vadd.f32 %v3296_v42, %v1996_v10  ;;  %v2349_v30 = vadd.f32 %v2348_v9, %v2154_v26 }
 0x21c   : > { %v2760_v43 = vpack.c.bf16 %v2157_v18, %v2154_v26  ;;  %v2389_v1 = vmul.f32 %v2157_v18, %v2157_v18  ;;  %v2350_v38 = vadd.f32 %v2349_v30, %v2157_v18  ;;  %v2419_v21 = vadd.f32 %v2418_v32, %v2388_v39 }
 0x21e   : > { %2776 = vst [vmem:[%s4480_s28 + $0x78] sm:$0xff] %v2760_v43   ;;  %v2351_v14 = vrot.slane %v2350_v38, 4  ;;  %v2420_v27 = vadd.f32 %v2419_v21, %v2389_v1 }
 0x220   : > { %v2352_v29 = vadd.f32 %v2351_v14, %v2350_v38  ;;  %v2421_v50 = vrot.slane %v2420_v27, 4 }
 0x222   : > { %v2353_v23 = vrot.slane %v2352_v29, 2  ;;  %v2422_v54 = vadd.f32 %v2421_v50, %v2420_v27 }
 0x224   : > { %v2354_v48 = vadd.f32 %v2353_v23, %v2352_v29  ;;  %v2423_v17 = vrot.slane %v2422_v54, 2 }
 0x226   : > { %v2355_v34 = vrot.slane %v2354_v48, 1  ;;  %v2424_v52 = vadd.f32 %v2423_v17, %v2422_v54 }
 0x228   : > { %v2356_v13 = vadd.f32 %v2355_v34, %v2354_v48  ;;  %v2425_v61 = vrot.slane %v2424_v52, 1 }
 0x22a   : > { %2357 = vst [vmem:[%s211_s5] sm:$0x1] %v2356_v13  ;;  %v2426_v16 = vadd.f32 %v2425_v61, %v2424_v52 }
 0x22c   : > { %2427 = vst [vmem:[%s214_s8] sm:$0x1] %v2426_v16 }
 0x22d PF: > { %s15_s15 = sadd.s32 1, %s3400_s15  }
 0x22e   : > { %p12_p4 = scmp.ge.s32.totalorder %s15_s15, 4  }
 0x230   :  { %14 = sbr.rel (!%p12_p4) target bundleno = 1 (0x1), region = 82 }

// kernel: residual_forward.4
= control target key start
LH: loop header
LB: loop body
LE: loop exit
PB: predicated region body
PF: predicated region fallthrough
CT: control target
= control target key end

     0   :  { %s3430_s21 = smov 0   ;;  %s4638_s0 = inlined_call_operand.vmem [shape: bf16[2,16,16,128], index: 0, kind: input, shape index: {}]   ;;  %s4639_s1 = inlined_call_operand.vmem [shape: f32[1,128], index: 1, kind: input, shape index: {}]   ;;  %s4640_s2 = inlined_call_operand.vmem [shape: f32[1,128], index: 2, kind: input, shape index: {}]   ;;  %s4641_s3 = inlined_call_operand.vmem [shape: bf16[1152,128], index: 3, kind: input, shape index: {}]   ;;  %s4642_s4 = inlined_call_operand.vmem [shape: f32[2,16,16,128], index: 4, kind: output, shape index: {0}]   ;;  %s4643_s5 = inlined_call_operand.vmem [shape: f32[2,1,128], index: 5, kind: output, shape index: {1}]   ;;  %s4644_s6 = inlined_call_operand.vmem [shape: f32[2,1,128], index: 6, kind: output, shape index: {2}]  }
   0x1 LB: > { %s2601_s22 = sadd.s32 4294967295, %s3392_s21   ;;  %p2605_p0 = scmp.ge.s32.totalorder %s3392_s21, 1  ;;  %s3392_s21 = sphi %s3430_s21, %s17_s21  }
   0x2   : > { %p217_p1 = scmp.lt.s32.totalorder %s3392_s21, 3 }
   0x4   : > { %p218_p2 = pnand %p2605_p0, %p217_p1 }
   0x5   : > { %v3312_v0 = vld [vmem:[%s4641_s3 + $0x40] sm:$0xff] (!%p218_p2)   ;;  %v3314_v2 = vld [vmem:[%s4641_s3 + $0x48] sm:$0xff] (!%p218_p2)   ;;  %p253_p3 = scmp.lt.s32.totalorder (!%p218_p2), %s2601_s22, 1  ;;  %v3316_v4 = vld [vmem:[%s4641_s3 + $0x50] sm:$0xff] (!%p218_p2)   ;;  %v3394_v9 = vmov (!%p218_p2), 0   ;;  %vm613_vm0 = vcmask (!%p218_p2), 1040384  }
   0x6   : > { %221 = sbr.rel (%p218_p2) target bundleno = 566 (0x236), region = 36  ;;  %v3313_v1 = vld [vmem:[%s4641_s3] sm:$0xff] (!%p218_p2)   ;;  %2767 = vmatprep.subr.bf16.mxu0 (!%p218_p2), %v3312_v0  ;;  %3287 = vmatprep.subr.bf16.mxu1 (!%p218_p2), %v3312_v0  ;;  %v3315_v3 = vld [vmem:[%s4641_s3 + $0x8] sm:$0xff] (!%p218_p2)   ;;  %v3317_v5 = vld [vmem:[%s4641_s3 + $0x10] sm:$0xff] (!%p218_p2)   ;;  %v463_v10 = vrot.slane (!%p218_p2), %v3394_v9, 7  ;;  %vm891_vm4 = vcmask (!%p218_p2), 1046528  }
   0x7   : > { %2768 = vmatpush3.bf16.msra.mxu0 (!%p218_p2), %v3313_v1  ;;  %3295 = vmatpush3.bf16.msra.mxu1 (!%p218_p2), %v3313_v1  ;;  %v3318_v6 = vld [vmem:[%s4641_s3 + $0x58] sm:$0xff] (!%p218_p2)   ;;  %v3320_v8 = vld [vmem:[%s4641_s3 + $0x60] sm:$0xff] (!%p218_p2)   ;;  %v3322_v12 = vld [vmem:[%s4641_s3 + $0x68] sm:$0xff] (!%p218_p2)   ;;  %vm614_vm1 = vsmask.f32 (!%p218_p2), 256 }
   0x8   : > { %2769 = vmatprep.subr.bf16.mxu0 (!%p218_p2), %v3314_v2  ;;  %3288 = vmatprep.subr.bf16.mxu1 (!%p218_p2), %v3314_v2  ;;  %v3319_v7 = vld [vmem:[%s4641_s3 + $0x18] sm:$0xff] (!%p218_p2)   ;;  %v3321_v11 = vld [vmem:[%s4641_s3 + $0x20] sm:$0xff] (!%p218_p2)   ;;  %vm3480_vm2 = vmand (!%p218_p2), %vm613_vm0, %vm614_vm1  ;;  %vm650_vm3 = vsmask.f32 (!%p218_p2), 7424 }
   0x9   : > { %v3487_v17 = vld [vmem:[%s4639_s1] ss:$0 sm:$0xff] (!%p218_p2)  ;;  %v3496_v19 = vsel (!%p218_p2), %vm3480_vm2, 0, %v463_v10  ;;  %v3500_v20 = vsel (!%p218_p2), %vm3480_vm2, %v463_v10, 0  ;;  %v3323_v21 = vld [vmem:[%s4641_s3 + $0x28] sm:$0xff] (!%p218_p2)   ;;  %v3324_v25 = vld [vmem:[%s4641_s3 + $0x70] sm:$0xff] (!%p218_p2)  }
   0xa   : > { %v3492_v18 = vld [vmem:[%s4640_s2] ss:$0 sm:$0xff] (!%p218_p2)  ;;  %v652_v22 = vshrl.u32 (!%p218_p2), %v3496_v19, 16  ;;  %v654_v23 = vshll.u32 (!%p218_p2), %v3496_v19, 16  ;;  %v659_v24 = vshll.u32 (!%p218_p2), %v3500_v20, 16  ;;  %v3325_v32 = vld [vmem:[%s4641_s3 + $0x30] sm:$0xff] (!%p218_p2)  }
   0xb   : > { %2770 = vmatpush3.bf16.msra.mxu0 (!%p218_p2), %v3315_v3  ;;  %3296 = vmatpush3.bf16.msra.mxu1 (!%p218_p2), %v3315_v3  ;;  %v3326_v34 = vld [vmem:[%s4641_s3 + $0x78] sm:$0xff] (!%p218_p2)   ;;  %v3328_v50 = vld [vmem:[%s4641_s3 + $0xc0] sm:$0xff] (!%p218_p2)  }
   0xc   : > { %2771 = vmatprep.subr.bf16.mxu0 (!%p218_p2), %v3316_v4  ;;  %3289 = vmatprep.subr.bf16.mxu1 (!%p218_p2), %v3316_v4  ;;  %v656_v28 = vrot.slane (!%p218_p2), %v654_v23, 1  ;;  %v661_v29 = vrot.slane (!%p218_p2), %v659_v24, 1  ;;  %v3327_v45 = vld [vmem:[%s4641_s3 + $0x38] sm:$0xff] (!%p218_p2)   ;;  %v3329_v51 = vld [vmem:[%s4641_s3 + $0x140] sm:$0xff] (!%p218_p2)   ;;  %v3337_v4 = vld [vmem:[%s4641_s3 + $0x148] sm:$0xff] (!%p218_p2)  }
   0xd   : > { %s4648_s22 = smov (!%p253_p3, %s2601_s22), 1  ;;  %v3331_v59 = vld [vmem:[%s4641_s3 + $0x100] sm:$0xff]  }
   0xe   : > { %s2686_s13 = sshll.u32 %s4648_s22, 7  ;;  %v657_v33 = vor.u32 %v656_v28, %v652_v22  ;;  %s2687_s30 = sshll.u32 %s4648_s22, 8 }
   0xf   : > { %2772 = vmatpush3.bf16.msra.mxu0 %v3317_v5  ;;  %3297 = vmatpush3.bf16.msra.mxu1 %v3317_v5  ;;  %s3471_s20 = scalar_lea.vmem %s4638_s0, %s2686_s13  ;;  %s4540_s9 = scalar_lea.vmem %s4642_s4, %s2687_s30 }
  0x10   : > { %2773 = vmatprep.subr.bf16.mxu0 %v3318_v6  ;;  %3290 = vmatprep.subr.bf16.mxu1 %v3318_v6  ;;  %v2762_v13 = vld [vmem:[%s3471_s20 + $0x58] sm:$0xff]   ;;  %v2689_v37 = vld [vmem:[%s3471_s20] sm:$0xff]   ;;  %v3523_v38 = vsel %vm650_vm3, %v657_v33, %v661_v29  ;;  %v2752_v62 = vld [vmem:[%s3471_s20 + $0x8] sm:$0xff]   ;;  %s265_s12 = scalar_lea.vmem %s4643_s5, %s4648_s22  ;;  %s268_s15 = scalar_lea.vmem %s4644_s6, %s4648_s22 }
  0x11   : > { %v2734_v15 = vunpack.c.l.bf16 %v2762_v13  ;;  %v2735_v16 = vunpack.c.h.bf16 %v2762_v13  ;;  %v2690_v39 = vunpack.c.l.bf16 %v2689_v37  ;;  %v2691_v40 = vunpack.c.h.bf16 %v2689_v37  ;;  %v2763_v41 = vld [vmem:[%s3471_s20 + $0x60] sm:$0xff]   ;;  %1583 = vmatprep.mubr.bf16.mxu0 %v3523_v38  ;;  %v2764_v63 = vld [vmem:[%s3471_s20 + $0x68] sm:$0xff]  }
  0x12   : > { %v2738_v43 = vunpack.c.l.bf16 %v2763_v41  ;;  %v2739_v44 = vunpack.c.h.bf16 %v2763_v41  ;;  %v2743_v13 = vunpack.c.h.bf16 %v2764_v63 }
  0x13   : > { %2774 = vmatpush3.bf16.msra.mxu0 %v3319_v7  ;;  %3298 = vmatpush3.bf16.msra.mxu1 %v3319_v7  ;;  %v363_v26 = vsub.f32 %v2734_v15, %v3487_v17  ;;  %v364_v27 = vsub.f32 %v2735_v16, %v3487_v17  ;;  %v341_v46 = vsub.f32 %v2690_v39, %v3487_v17  ;;  %v2694_v7 = vunpack.c.l.bf16 %v2752_v62 }
  0x14   : > { %2775 = vmatprep.subr.bf16.mxu0 %v3320_v8  ;;  %3291 = vmatprep.subr.bf16.mxu1 %v3320_v8  ;;  %v342_v47 = vsub.f32 %v2691_v40, %v3487_v17  ;;  %v365_v52 = vsub.f32 %v2738_v43, %v3487_v17  ;;  %v366_v53 = vsub.f32 %v2739_v44, %v3487_v17  ;;  %v2695_v8 = vunpack.c.h.bf16 %v2752_v62  ;;  %v3332_v43 = vld [vmem:[%s4641_s3 + $0xc8] sm:$0xff]  }
  0x15   : > { %v402_v30 = vmul.f32 %v3492_v18, %v363_v26  ;;  %v403_v31 = vmul.f32 %v3492_v18, %v364_v27  ;;  %v380_v54 = vmul.f32 %v3492_v18, %v341_v46  ;;  %v343_v26 = vsub.f32 %v2694_v7, %v3487_v17 }
  0x16   : > { %v381_v55 = vmul.f32 %v3492_v18, %v342_v47  ;;  %v404_v57 = vmul.f32 %v3492_v18, %v365_v52  ;;  %v405_v58 = vmul.f32 %v3492_v18, %v366_v53  ;;  %v344_v29 = vsub.f32 %v2695_v8, %v3487_v17  ;;  %v3347_v52 = vld [vmem:[%s4641_s3 + $0x110] sm:$0xff]  }
  0x17   : > { %2776 = vmatpush3.bf16.msra.mxu0 %v3321_v11  ;;  %3299 = vmatpush3.bf16.msra.mxu1 %v3321_v11  ;;  %v434_v35 = vmax.f32 %v402_v30, 0.0  ;;  %v435_v36 = vmax.f32 %v403_v31, 0.0  ;;  %v412_v60 = vmax.f32 %v380_v54, 0.0  ;;  %v3339_v11 = vld [vmem:[%s4641_s3 + $0x108] sm:$0xff]   ;;  %v2753_v31 = vld [vmem:[%s3471_s20 + $0x10] sm:$0xff]  }
  0x18   : > { %2777 = vmatprep.subr.bf16.mxu0 %v3322_v12  ;;  %3292 = vmatprep.subr.bf16.mxu1 %v3322_v12  ;;  %v413_v61 = vmax.f32 %v381_v55, 0.0  ;;  %v436_v2 = vmax.f32 %v404_v57, 0.0  ;;  %v437_v3 = vmax.f32 %v405_v58, 0.0  ;;  %v2742_v12 = vunpack.c.l.bf16 %v2764_v63  ;;  %v3333_v57 = vld [vmem:[%s4641_s3 + $0x88] sm:$0xff]  }
  0x19   : > { %v455_v42 = vpack.c.bf16 %v435_v36, %v434_v35  ;;  %v368_v35 = vsub.f32 %v2743_v13, %v3487_v17  ;;  %v2698_v36 = vunpack.c.l.bf16 %v2753_v31  ;;  %v383_v41 = vmul.f32 %v3492_v18, %v344_v29  ;;  %v2754_v29 = vld [vmem:[%s3471_s20 + $0x18] sm:$0xff]  }
  0x1a   : > { %v444_v6 = vpack.c.bf16 %v413_v61, %v412_v60  ;;  %v456_v10 = vpack.c.bf16 %v437_v3, %v436_v2  ;;  %v367_v30 = vsub.f32 %v2742_v12, %v3487_v17  ;;  %v2699_v2 = vunpack.c.h.bf16 %v2753_v31  ;;  %v2765_v3 = vld [vmem:[%s3471_s20 + $0x70] sm:$0xff]  }
  0x1b   : > { %2778 = vmatpush3.bf16.msra.mxu0 %v3323_v21  ;;  %3300 = vmatpush3.bf16.msra.mxu1 %v3323_v21  ;;  %v545_v48 = vshrl.u32 %v455_v42, 16  ;;  %v548_v49 = vshll.u32 %v455_v42, 16  ;;  %v3345_v42 = vld [vmem:[%s4641_s3 + $0x150] sm:$0xff]   ;;  %v345_v8 = vsub.f32 %v2698_v36, %v3487_v17 }
  0x1c   : > { %2779 = vmatprep.subr.bf16.mxu0 %v3324_v25  ;;  %3293 = vmatprep.subr.bf16.mxu1 %v3324_v25  ;;  %v468_v22 = vshrl.u32 %v444_v6, 16  ;;  %v471_v23 = vshll.u32 %v444_v6, 16  ;;  %v552_v24 = vshrl.u32 %v456_v10, 16  ;;  %v555_v25 = vshll.u32 %v456_v10, 16 }
  0x1d   : > { %v547_v56 = vrot.slane %v545_v48, 7  ;;  %v406_v63 = vmul.f32 %v3492_v18, %v367_v30 }
  0x1e   : > { %v470_v28 = vrot.slane %v468_v22, 7  ;;  %v554_v33 = vrot.slane %v552_v24, 7  ;;  %v2746_v24 = vunpack.c.l.bf16 %v2765_v3 }
  0x1f   : > { %2780 = vmatpush3.bf16.msra.mxu0 %v3325_v32  ;;  %3301 = vmatpush3.bf16.msra.mxu1 %v3325_v32  ;;  %v550_v0 = vor.u32 %v548_v49, %v547_v56  ;;  %v3551_v1 = vsel %vm3480_vm2, %v547_v56, 0  ;;  %v3330_v32 = vld [vmem:[%s4641_s3 + $0x80] sm:$0xff]   ;;  %v438_v12 = vmax.f32 %v406_v63, 0.0 }
  0x20   : > { %2781 = vmatprep.subr.bf16.mxu0 %v3326_v34  ;;  %3294 = vmatprep.subr.bf16.mxu1 %v3326_v34  ;;  %v803_v5 = vshll.u32 %v3551_v1, 16  ;;  %v382_v34 = vmul.f32 %v3492_v18, %v343_v26  ;;  %v473_v39 = vor.u32 %v471_v23, %v470_v28  ;;  %v3578_v40 = vsel %vm3480_vm2, %v470_v28, 0 }
  0x21   : > { %v3559_v9 = vsel %vm3480_vm2, 0, %v550_v0  ;;  %v671_v44 = vshll.u32 %v3578_v40, 16  ;;  %v3590_v46 = vsel %vm3480_vm2, %v554_v33, 0  ;;  %v407_v0 = vmul.f32 %v3492_v18, %v368_v35  ;;  %v3353_v35 = vld [vmem:[%s4641_s3 + $0x118] sm:$0xff]  }
  0x22   : > { %v796_v15 = vshrl.u32 %v3559_v9, 16  ;;  %v798_v16 = vshll.u32 %v3559_v9, 16  ;;  %v805_v21 = vrot.slane %v803_v5, 1  ;;  %v414_v47 = vmax.f32 %v382_v34, 0.0  ;;  %v3334_v5 = vld [vmem:[%s4641_s3 + $0xd0] sm:$0xff]   ;;  %v3352_v34 = vld [vmem:[%s4641_s3 + $0x158] sm:$0xff]  }
  0x23   : > { %2782 = vmatpush3.bf16.msra.mxu0 %v3327_v45  ;;  %3302 = vmatpush3.bf16.msra.mxu1 %v3327_v45  ;;  %v557_v45 = vor.u32 %v555_v25, %v554_v33  ;;  %v3597_v49 = vsel %vm3480_vm2, 0, %v473_v39  ;;  %v673_v55 = vrot.slane %v671_v44, 1  ;;  %v439_v13 = vmax.f32 %v407_v0, 0.0  ;;  %v3340_v44 = vld [vmem:[%s4641_s3 + $0xe0] sm:$0xff]  }
  0x24   : > { %2879 = vmatprep.subr.bf16.mxu1 %v3328_v50  ;;  %2991 = vmatprep.subr.bf16.mxu0 %v3329_v51  ;;  %v800_v27 = vrot.slane %v798_v16, 1  ;;  %v815_v50 = vshll.u32 %v3590_v46, 16  ;;  %v415_v51 = vmax.f32 %v383_v41, 0.0  ;;  %v664_v53 = vshrl.u32 %v3597_v49, 16  ;;  %v3341_v0 = vld [vmem:[%s4641_s3 + $0xa0] sm:$0xff]  }
  0x25   : > { %v666_v54 = vshll.u32 %v3597_v49, 16  ;;  %v3608_v56 = vsel %vm3480_vm2, 0, %v557_v45  ;;  %v384_v23 = vmul.f32 %v3492_v18, %v345_v8  ;;  %v457_v26 = vpack.c.bf16 %v439_v13, %v438_v12 }
  0x26   : > { %1584 = vmatmul.mubr.bf16.vlgmr.msra.gmra.mrb[0].mxu0 %v3496_v19  ;;  %v801_v37 = vor.u32 %v800_v27, %v796_v15  ;;  %v808_v58 = vshrl.u32 %v3608_v56, 16  ;;  %v817_v60 = vrot.slane %v815_v50, 1  ;;  %v445_v61 = vpack.c.bf16 %v415_v51, %v414_v47 }
  0x27   : > { %2992 = vmatpush3.bf16.msra.mxu0 %v3331_v59  ;;  %v810_v59 = vshll.u32 %v3608_v56, 16  ;;  %v668_v62 = vrot.slane %v666_v54, 1  ;;  %v346_v15 = vsub.f32 %v2699_v2, %v3487_v17  ;;  %v2747_v28 = vunpack.c.h.bf16 %v2765_v3  ;;  %v2755_v3 = vld [vmem:[%s3471_s20 + $0x20] sm:$0xff]  }
  0x28   : > { %2993 = vmatprep.subr.bf16.mxu0 %v3337_v4  ;;  %v3593_v48 = vsel %vm650_vm3, %v801_v37, %v805_v21  ;;  %v475_v6 = vshrl.u32 %v445_v61, 16  ;;  %v478_v7 = vshll.u32 %v445_v61, 16  ;;  %v3336_v21 = vld [vmem:[%s4641_s3 + $0xd8] sm:$0xff]   ;;  %v416_v33 = vmax.f32 %v384_v23, 0.0 }
  0x29   : > { %1679 = vmatprep.mubr.bf16.mxu1 %v3593_v48  ;;  %v812_v4 = vrot.slane %v810_v59, 1  ;;  %v669_v10 = vor.u32 %v668_v62, %v664_v53  ;;  %v385_v27 = vmul.f32 %v3492_v18, %v346_v15  ;;  %v559_v37 = vshrl.u32 %v457_v26, 16 }
  0x2a   : > { %1680 = vmatmul.mubr.bf16.vlgmr.msra.gmra.mrb[0].mxu1 %v3559_v9  ;;  %v477_v22 = vrot.slane %v475_v6, 7  ;;  %v562_v39 = vshll.u32 %v457_v26, 16  ;;  %v369_v45 = vsub.f32 %v2746_v24, %v3487_v17  ;;  %v370_v47 = vsub.f32 %v2747_v28, %v3487_v17  ;;  %v3342_v6 = vld [vmem:[%s4641_s3 + $0xe8] sm:$0xff]  }
  0x2b   : > { %2994 = vmatpush3.bf16.msra.mxu0 %v3339_v11  ;;  %2880 = vmatpush3.bf16.msra.mxu1 %v3330_v32  ;;  %v3335_v11 = vld [vmem:[%s4641_s3 + $0x90] sm:$0xff]   ;;  %v813_v16 = vor.u32 %v812_v4, %v808_v58  ;;  %v3632_v25 = vsel %vm650_vm3, %v669_v10, %v673_v55  ;;  %v417_v41 = vmax.f32 %v385_v27, 0.0  ;;  %v2702_v50 = vunpack.c.l.bf16 %v2754_v29  ;;  %v3356_v4 = vld [vmem:[%s4641_s3 + $0x120] sm:$0xff]   ;;  %v3343_v26 = vld [vmem:[%s4641_s3 + $0xa8] sm:$0xff]  }
  0x2c   : > { %2995 = vmatprep.subr.bf16.mxu0 %v3345_v42  ;;  %2881 = vmatprep.subr.bf16.mxu1 %v3332_v43  ;;  %v480_v31 = vor.u32 %v478_v7, %v477_v22  ;;  %v3642_v32 = vsel %vm3480_vm2, %v477_v22, 0  ;;  %v3338_v42 = vld [vmem:[%s4641_s3 + $0x98] sm:$0xff]   ;;  %v561_v54 = vrot.slane %v559_v37, 7  ;;  %v409_v58 = vmul.f32 %v3492_v18, %v370_v47  ;;  %v3359_v37 = vld [vmem:[%s4641_s3 + $0x128] sm:$0xff]  }
  0x2d   : > { %1591 = vmatprep.mubr.bf16.mxu0 %v3632_v25  ;;  %v3638_v30 = vsel %vm650_vm3, %v813_v16, %v817_v60  ;;  %v683_v36 = vshll.u32 %v3642_v32, 16  ;;  %v446_v55 = vpack.c.bf16 %v417_v41, %v416_v33  ;;  %v2703_v59 = vunpack.c.h.bf16 %v2754_v29  ;;  %v3354_v60 = vld [vmem:[%s4641_s3 + $0x160] sm:$0xff]  }
  0x2e   : > { %1687 = vmatprep.mubr.bf16.mxu1 %v3638_v30  ;;  %1592 = vmatmul.mubr.bf16.gmra.mrb[4].mxu0 %v3597_v49  ;;  %v3659_v43 = vsel %vm3480_vm2, 0, %v480_v31  ;;  %v564_v62 = vor.u32 %v562_v39, %v561_v54  ;;  %v3675_v63 = vsel %vm3480_vm2, %v561_v54, 0  ;;  %v347_v2 = vsub.f32 %v2702_v50, %v3487_v17  ;;  %v3344_v50 = vld [vmem:[%s4641_s3 + $0xf0] sm:$0xff]  }
  0x2f   : > { %2996 = vmatpush3.bf16.msra.mxu0 %v3347_v52  ;;  %2882 = vmatpush3.bf16.msra.mxu1 %v3333_v57  ;;  %v676_v51 = vshrl.u32 %v3659_v43, 16  ;;  %v678_v52 = vshll.u32 %v3659_v43, 16  ;;  %v685_v53 = vrot.slane %v683_v36, 1  ;;  %v408_v57 = vmul.f32 %v3492_v18, %v369_v45  ;;  %v3358_v36 = vld [vmem:[%s4641_s3 + $0x168] sm:$0xff]  }
  0x30   : > { %2883 = vmatprep.subr.bf16.mxu1 %v3334_v5  ;;  %2997 = vmatprep.subr.bf16.mxu0 %v3352_v34  ;;  %v827_v5 = vshll.u32 %v3675_v63, 16  ;;  %v482_v7 = vshrl.u32 %v446_v55, 16  ;;  %v485_v8 = vshll.u32 %v446_v55, 16  ;;  %v3691_v12 = vsel %vm3480_vm2, 0, %v564_v62 }
  0x31   : > { %v680_v61 = vrot.slane %v678_v52, 1  ;;  %v440_v10 = vmax.f32 %v408_v57, 0.0  ;;  %v441_v13 = vmax.f32 %v409_v58, 0.0  ;;  %v348_v15 = vsub.f32 %v2703_v59, %v3487_v17 }
  0x32   : > { %1688 = vmatmul.mubr.bf16.gmra.mrb[4].mxu1 %v3608_v56  ;;  %v820_v16 = vshrl.u32 %v3691_v12, 16  ;;  %v829_v22 = vrot.slane %v827_v5, 1  ;;  %v484_v23 = vrot.slane %v482_v7, 7  ;;  %v386_v28 = vmul.f32 %v3492_v18, %v347_v2  ;;  %v3348_v5 = vld [vmem:[%s4641_s3 + $0xf8] sm:$0xff]  }
  0x33   : > { %2884 = vmatpush3.bf16.msra.mxu1 %v3335_v11  ;;  %2998 = vmatpush3.bf16.msra.mxu0 %v3353_v35  ;;  %v681_v11 = vor.u32 %v680_v61, %v676_v51  ;;  %v458_v27 = vpack.c.bf16 %v441_v13, %v440_v10  ;;  %v387_v29 = vmul.f32 %v3492_v18, %v348_v15  ;;  %v2706_v35 = vunpack.c.l.bf16 %v2755_v3  ;;  %v3363_v13 = vld [vmem:[%s4641_s3 + $0x130] sm:$0xff]  }
  0x34   : > { %2885 = vmatprep.subr.bf16.mxu1 %v3336_v21  ;;  %2999 = vmatprep.subr.bf16.mxu0 %v3354_v60  ;;  %v822_v21 = vshll.u32 %v3691_v12, 16  ;;  %v487_v33 = vor.u32 %v485_v8, %v484_v23  ;;  %v3707_v34 = vsel %vm3480_vm2, %v484_v23, 0  ;;  %v2707_v52 = vunpack.c.h.bf16 %v2755_v3 }
  0x35   : > { %v3697_v24 = vsel %vm650_vm3, %v681_v11, %v685_v53  ;;  %v695_v39 = vshll.u32 %v3707_v34, 16  ;;  %v566_v41 = vshrl.u32 %v458_v27, 16  ;;  %v419_v51 = vmax.f32 %v387_v29, 0.0 }
  0x36   : > { %1599 = vmatprep.mubr.bf16.mxu0 %v3697_v24  ;;  %v824_v31 = vrot.slane %v822_v21, 1  ;;  %v3719_v47 = vsel %vm3480_vm2, 0, %v487_v33  ;;  %v893_v53 = vrot.slane %v3500_v20, 1  ;;  %v349_v60 = vsub.f32 %v2706_v35, %v3487_v17  ;;  %v3350_v33 = vld [vmem:[%s4641_s3 + $0x1c0] sm:$0xff]  }
  0x37   : > { %2886 = vmatpush3.bf16.msra.mxu1 %v3338_v42  ;;  %3000 = vmatpush3.bf16.msra.mxu0 %v3356_v4  ;;  %v569_v42 = vshll.u32 %v458_v27, 16  ;;  %v688_v54 = vshrl.u32 %v3719_v47, 16  ;;  %v690_v55 = vshll.u32 %v3719_v47, 16  ;;  %v568_v57 = vrot.slane %v566_v41, 7  ;;  %v3346_v4 = vld [vmem:[%s4641_s3 + $0xb0] sm:$0xff]   ;;  %v3349_v27 = vld [vmem:[%s4641_s3 + $0xb8] sm:$0xff]  }
  0x38   : > { %2887 = vmatprep.subr.bf16.mxu1 %v3340_v44  ;;  %1600 = vmatmul.mubr.bf16.gmra.mrb[8].mxu0 %v3659_v43  ;;  %v418_v44 = vmax.f32 %v386_v28, 0.0  ;;  %v825_v45 = vor.u32 %v824_v31, %v820_v16  ;;  %v350_v61 = vsub.f32 %v2707_v52, %v3487_v17  ;;  %v388_v11 = vmul.f32 %v3492_v18, %v349_v60  ;;  %v3366_v52 = vld [vmem:[%s4641_s3 + $0x178] sm:$0xff]  }
  0x39   : > { %3001 = vmatprep.subr.bf16.mxu0 %v3358_v36  ;;  %v692_v62 = vrot.slane %v690_v55, 1  ;;  %v571_v2 = vor.u32 %v569_v42, %v568_v57  ;;  %v3735_v3 = vsel %vm3480_vm2, %v568_v57, 0 }
  0x3a   : > { %v3728_v58 = vsel %vm650_vm3, %v825_v45, %v829_v22  ;;  %v447_v59 = vpack.c.bf16 %v419_v51, %v418_v44  ;;  %v839_v7 = vshll.u32 %v3735_v3, 16  ;;  %v389_v21 = vmul.f32 %v3492_v18, %v350_v61  ;;  %v2756_v22 = vld [vmem:[%s3471_s20 + $0x28] sm:$0xff]  }
  0x3b   : > { %2888 = vmatpush3.bf16.msra.mxu1 %v3341_v0  ;;  %3002 = vmatpush3.bf16.msra.mxu0 %v3359_v37  ;;  %v697_v0 = vrot.slane %v695_v39, 1  ;;  %v693_v15 = vor.u32 %v692_v62, %v688_v54  ;;  %v3754_v16 = vsel %vm3480_vm2, 0, %v571_v2  ;;  %v420_v35 = vmax.f32 %v388_v11, 0.0 }
  0x3c   : > { %2889 = vmatprep.subr.bf16.mxu1 %v3342_v6  ;;  %1695 = vmatprep.mubr.bf16.mxu1 %v3728_v58  ;;  %v3362_v6 = vld [vmem:[%s4641_s3 + $0x170] sm:$0xff]   ;;  %v489_v8 = vshrl.u32 %v447_v59, 16  ;;  %v492_v10 = vshll.u32 %v447_v59, 16  ;;  %v832_v23 = vshrl.u32 %v3754_v16, 16  ;;  %v841_v31 = vrot.slane %v839_v7, 1  ;;  %v3367_v7 = vld [vmem:[%s4641_s3 + $0x138] sm:$0xff]  }
  0x3d   : > { %1696 = vmatmul.mubr.bf16.gmra.mrb[8].mxu1 %v3691_v12  ;;  %3003 = vmatprep.subr.bf16.mxu0 %v3362_v6  ;;  %v3764_v29 = vsel %vm650_vm3, %v693_v15, %v697_v0  ;;  %v421_v36 = vmax.f32 %v389_v21, 0.0  ;;  %v2710_v42 = vunpack.c.l.bf16 %v2756_v22  ;;  %v892_v45 = vrot.slane %v3496_v19, 1  ;;  %v2757_v59 = vld [vmem:[%s3471_s20 + $0x30] sm:$0xff]  }
  0x3e   : > { %v491_v28 = vrot.slane %v489_v8, 7  ;;  %1607 = vmatprep.mubr.bf16.mxu0 %v3764_v29  ;;  %v2711_v51 = vunpack.c.h.bf16 %v2756_v22  ;;  %v2714_v11 = vunpack.c.l.bf16 %v2757_v59  ;;  %v2715_v22 = vunpack.c.h.bf16 %v2757_v59 }
  0x3f   : > { %2890 = vmatpush3.bf16.msra.mxu1 %v3343_v26  ;;  %v834_v26 = vshll.u32 %v3754_v16, 16  ;;  %3004 = vmatpush3.bf16.msra.mxu0 %v3363_v13  ;;  %v351_v57 = vsub.f32 %v2710_v42, %v3487_v17  ;;  %v3801_v13 = vsel %vm891_vm4, %v892_v45, %v893_v53 }
  0x40   : > { %2891 = vmatprep.subr.bf16.mxu1 %v3344_v50  ;;  %v494_v39 = vor.u32 %v492_v10, %v491_v28  ;;  %v3772_v41 = vsel %vm3480_vm2, %v491_v28, 0  ;;  %1608 = vmatmul.mubr.bf16.gmra.mrb[12].mxu0 %v3719_v47  ;;  %v448_v50 = vpack.c.bf16 %v421_v36, %v420_v35  ;;  %v353_v53 = vsub.f32 %v2714_v11, %v3487_v17 }
  0x41   : > { %v836_v37 = vrot.slane %v834_v26, 1  ;;  %v707_v44 = vshll.u32 %v3772_v41, 16  ;;  %3005 = vmatprep.subr.bf16.mxu0 %v3366_v52  ;;  %v390_v6 = vmul.f32 %v3492_v18, %v351_v57  ;;  %v3808_v26 = vld [vmem:[%s4641_s3 + $0x200] sm:$0xff]   ;;  %v354_v36 = vsub.f32 %v2715_v22, %v3487_v17 }
  0x42   : > { %v3782_v55 = vsel %vm3480_vm2, 0, %v494_v39  ;;  %v496_v0 = vshrl.u32 %v448_v50, 16  ;;  %v3351_v39 = vld [vmem:[%s4641_s3 + $0x180] sm:$0xff]  }
  0x43   : > { %2892 = vmatpush3.bf16.msra.mxu1 %v3346_v4  ;;  %v837_v54 = vor.u32 %v836_v37, %v832_v23  ;;  %v700_v60 = vshrl.u32 %v3782_v55, 16  ;;  %v702_v61 = vshll.u32 %v3782_v55, 16  ;;  %v709_v62 = vrot.slane %v707_v44, 1  ;;  %v2758_v23 = vld [vmem:[%s3471_s20 + $0x38] sm:$0xff]   ;;  %3006 = vmatpush3.bf16.msra.mxu0 %v3367_v7 }
  0x44   : > { %2893 = vmatprep.subr.bf16.mxu1 %v3348_v5  ;;  %v499_v4 = vshll.u32 %v448_v50, 16  ;;  %v352_v5 = vsub.f32 %v2711_v51, %v3487_v17  ;;  %v498_v10 = vrot.slane %v496_v0, 7  ;;  %v422_v21 = vmax.f32 %v390_v6, 0.0  ;;  %3239 = vmatprep.subr.bf16.mxu0 %v3808_v26 }
  0x45   : > { %v3789_v2 = vsel %vm650_vm3, %v837_v54, %v841_v31  ;;  %v704_v8 = vrot.slane %v702_v61, 1  ;;  %v392_v44 = vmul.f32 %v3492_v18, %v353_v53  ;;  %v2718_v45 = vunpack.c.l.bf16 %v2758_v23  ;;  %v2759_v54 = vld [vmem:[%s3471_s20 + $0x40] sm:$0xff]  }
  0x46   : > { %1703 = vmatprep.mubr.bf16.mxu1 %v3789_v2  ;;  %v391_v15 = vmul.f32 %v3492_v18, %v352_v5  ;;  %v501_v28 = vor.u32 %v499_v4, %v498_v10  ;;  %v3813_v20 = vsel %vm3480_vm2, %v498_v10, 0  ;;  %v896_v51 = vrot.slane %v3578_v40, 1  ;;  %v3355_v5 = vld [vmem:[%s4641_s3 + $0x1c8] sm:$0xff]  }
  0x47   : > { %2894 = vmatpush3.bf16.msra.mxu1 %v3349_v27  ;;  %v705_v27 = vor.u32 %v704_v8, %v700_v60  ;;  %v719_v31 = vshll.u32 %v3813_v20, 16  ;;  %v393_v59 = vmul.f32 %v3492_v18, %v354_v36  ;;  %v424_v60 = vmax.f32 %v392_v44, 0.0  ;;  %v3357_v40 = vld [vmem:[%s4641_s3 + $0x188] sm:$0xff]  }
  0x48   : > { %3103 = vmatprep.subr.bf16.mxu1 %v3350_v33  ;;  %1704 = vmatmul.mubr.bf16.gmra.mrb[12].mxu1 %v3754_v16  ;;  %v895_v33 = vrot.slane %v3597_v49, 1  ;;  %v423_v35 = vmax.f32 %v391_v15, 0.0  ;;  %v3828_v42 = vsel %vm3480_vm2, 0, %v501_v28  ;;  %v2719_v61 = vunpack.c.h.bf16 %v2758_v23 }
  0x49   : > { %1744 = vmatprep.mubr.bf16.mxu1 %v3597_v49  ;;  %v3821_v37 = vsel %vm650_vm3, %v705_v27, %v709_v62  ;;  %v712_v49 = vshrl.u32 %v3828_v42, 16  ;;  %v714_v50 = vshll.u32 %v3828_v42, 16  ;;  %v721_v57 = vrot.slane %v719_v31, 1 }
  0x4a   : > { %1615 = vmatprep.mubr.bf16.mxu0 %v3821_v37  ;;  %v449_v52 = vpack.c.bf16 %v423_v35, %v422_v21  ;;  %v355_v6 = vsub.f32 %v2718_v45, %v3487_v17  ;;  %v425_v7 = vmax.f32 %v393_v59, 0.0  ;;  %v356_v8 = vsub.f32 %v2719_v61, %v3487_v17  ;;  %v3360_v21 = vld [vmem:[%s4641_s3 + $0x1d0] sm:$0xff]   ;;  %v2760_v59 = vld [vmem:[%s3471_s20 + $0x48] sm:$0xff]  }
  0x4b   : > { %1616 = vmatmul.mubr.bf16.gmra.mrb[16].mxu0 %v3782_v55  ;;  %v716_v62 = vrot.slane %v714_v50, 1  ;;  %v2722_v22 = vunpack.c.l.bf16 %v2759_v54  ;;  %v3853_v23 = vsel %vm891_vm4, %v895_v33, %v896_v51  ;;  %v2723_v53 = vunpack.c.h.bf16 %v2759_v54 }
  0x4c   : > { %v503_v0 = vshrl.u32 %v449_v52, 16  ;;  %v506_v4 = vshll.u32 %v449_v52, 16  ;;  %v394_v15 = vmul.f32 %v3492_v18, %v355_v6  ;;  %v450_v27 = vpack.c.bf16 %v425_v7, %v424_v60  ;;  %v3361_v52 = vld [vmem:[%s4641_s3 + $0x190] sm:$0xff]  }
  0x4d   : > { %v717_v10 = vor.u32 %v716_v62, %v712_v49  ;;  %v395_v28 = vmul.f32 %v3492_v18, %v356_v8  ;;  %v898_v51 = vrot.slane %v3659_v43, 1  ;;  %v357_v54 = vsub.f32 %v2722_v22, %v3487_v17 }
  0x4e   : > { %v505_v11 = vrot.slane %v503_v0, 7  ;;  %v510_v44 = vshrl.u32 %v450_v27, 16  ;;  %v513_v45 = vshll.u32 %v450_v27, 16  ;;  %v899_v62 = vrot.slane %v3642_v32, 1 }
  0x4f   : > { %v3857_v31 = vsel %vm650_vm3, %v717_v10, %v721_v57  ;;  %v427_v49 = vmax.f32 %v395_v28, 0.0  ;;  %v358_v57 = vsub.f32 %v2723_v53, %v3487_v17  ;;  %v396_v6 = vmul.f32 %v3492_v18, %v357_v54  ;;  %v3364_v17 = vld [vmem:[%s4641_s3 + $0x1d8] sm:$0xff]  }
  0x50   : > { %1745 = vmatmul.mubr.bf16.vlgmr.msra.gmra.mrb[16].mxu1 %v3801_v13  ;;  %v508_v35 = vor.u32 %v506_v4, %v505_v11  ;;  %v3861_v36 = vsel %vm3480_vm2, %v505_v11, 0  ;;  %1623 = vmatprep.mubr.bf16.mxu0 %v3857_v31  ;;  %v512_v0 = vrot.slane %v510_v44, 7  ;;  %v2726_v32 = vunpack.c.l.bf16 %v2760_v59 }
  0x51   : > { %3104 = vmatpush3.bf16.msra.mxu1 %v3351_v39  ;;  %1752 = vmatprep.mubr.bf16.mxu1 %v3659_v43  ;;  %v426_v39 = vmax.f32 %v394_v15, 0.0  ;;  %v731_v33 = vshll.u32 %v3861_v36, 16  ;;  %v397_v7 = vmul.f32 %v3492_v18, %v358_v57  ;;  %v428_v22 = vmax.f32 %v396_v6, 0.0 }
  0x52   : > { %3105 = vmatprep.subr.bf16.mxu1 %v3355_v5  ;;  %v3867_v50 = vsel %vm3480_vm2, 0, %v508_v35  ;;  %v515_v10 = vor.u32 %v513_v45, %v512_v0  ;;  %v3887_v11 = vsel %vm3480_vm2, %v512_v0, 0  ;;  %v3900_v35 = vsel %vm891_vm4, %v898_v51, %v899_v62  ;;  %v3368_v45 = vld [vmem:[%s4641_s3 + $0x1e0] sm:$0xff]  }
  0x53   : > { %1624 = vmatmul.mubr.bf16.gmra.mrb[20].mxu0 %v3828_v42  ;;  %v724_v60 = vshrl.u32 %v3867_v50, 16  ;;  %v726_v61 = vshll.u32 %v3867_v50, 16  ;;  %v733_v4 = vrot.slane %v731_v33, 1  ;;  %v451_v5 = vpack.c.bf16 %v427_v49, %v426_v39  ;;  %v3913_v51 = vld [vmem:[%s4639_s1] ss:$0 sm:$0xff] }
  0x54   : > { %v743_v15 = vshll.u32 %v3887_v11, 16  ;;  %v3897_v28 = vsel %vm3480_vm2, 0, %v515_v10  ;;  %v429_v53 = vmax.f32 %v397_v7, 0.0  ;;  %v2727_v57 = vunpack.c.h.bf16 %v2760_v59  ;;  %v3932_v10 = vld [vmem:[%s4640_s2] ss:$0 sm:$0xff] }
  0x55   : > { %3106 = vmatpush3.bf16.msra.mxu1 %v3357_v40  ;;  %v728_v8 = vrot.slane %v726_v61, 1  ;;  %v3365_v40 = vld [vmem:[%s4641_s3 + $0x198] sm:$0xff]   ;;  %v517_v18 = vshrl.u32 %v451_v5, 16  ;;  %v736_v39 = vshrl.u32 %v3897_v28, 16  ;;  %v738_v33 = vshll.u32 %v3897_v28, 16 }
  0x56   : > { %3107 = vmatprep.subr.bf16.mxu1 %v3360_v21  ;;  %v520_v21 = vshll.u32 %v451_v5, 16  ;;  %v452_v54 = vpack.c.bf16 %v429_v53, %v428_v22  ;;  %v745_v61 = vrot.slane %v743_v15, 1  ;;  %v360_v6 = vsub.f32 %v2727_v57, %v3913_v51  ;;  %v2761_v15 = vld [vmem:[%s3471_s20 + $0x50] sm:$0xff]   ;;  %v3371_v53 = vld [vmem:[%s4641_s3 + $0x1e8] sm:$0xff]  }
  0x57   : > { %v729_v27 = vor.u32 %v728_v8, %v724_v60  ;;  %v519_v44 = vrot.slane %v517_v18, 7  ;;  %v740_v60 = vrot.slane %v738_v33, 1  ;;  %v902_v18 = vrot.slane %v3707_v34, 1 }
  0x58   : > { %1753 = vmatmul.mubr.bf16.gmra.mrb[20].mxu1 %v3853_v23  ;;  %v527_v5 = vshll.u32 %v452_v54, 16 }
  0x59   : > { %1760 = vmatprep.mubr.bf16.mxu1 %v3719_v47  ;;  %3108 = vmatpush3.bf16.msra.mxu1 %v3361_v52  ;;  %v3908_v49 = vsel %vm650_vm3, %v729_v27, %v733_v4  ;;  %v359_v52 = vsub.f32 %v2726_v32, %v3913_v51  ;;  %v522_v62 = vor.u32 %v520_v21, %v519_v44  ;;  %v3919_v0 = vsel %vm3480_vm2, %v519_v44, 0 }
  0x5a   : > { %3109 = vmatprep.subr.bf16.mxu1 %v3364_v17  ;;  %1631 = vmatprep.mubr.bf16.mxu0 %v3908_v49  ;;  %v755_v59 = vshll.u32 %v3919_v0, 16  ;;  %v524_v4 = vshrl.u32 %v452_v54, 16  ;;  %v741_v7 = vor.u32 %v740_v60, %v736_v39  ;;  %v901_v17 = vrot.slane %v3719_v47, 1 }
  0x5b   : > { %1632 = vmatmul.mubr.bf16.gmra.mrb[24].mxu0 %v3867_v50  ;;  %v3927_v8 = vsel %vm3480_vm2, 0, %v522_v62  ;;  %v398_v32 = vmul.f32 %v3932_v10, %v359_v52  ;;  %v399_v44 = vmul.f32 %v3932_v10, %v360_v6  ;;  %v2730_v52 = vunpack.c.l.bf16 %v2761_v15 }
  0x5c   : > { %v748_v21 = vshrl.u32 %v3927_v8, 16  ;;  %v750_v22 = vshll.u32 %v3927_v8, 16  ;;  %v526_v27 = vrot.slane %v524_v4, 7  ;;  %v3947_v39 = vsel %vm650_vm3, %v741_v7, %v745_v61  ;;  %v3373_v61 = vld [vmem:[%s4641_s3 + $0x1a8] sm:$0xff]   ;;  %v3374_v7 = vld [vmem:[%s4641_s3 + $0x1f0] sm:$0xff]  }
  0x5d   : > { %3110 = vmatpush3.bf16.msra.mxu1 %v3365_v40  ;;  %v3370_v40 = vld [vmem:[%s4641_s3 + $0x1a0] sm:$0xff]   ;;  %v757_v33 = vrot.slane %v755_v59, 1  ;;  %1639 = vmatprep.mubr.bf16.mxu0 %v3947_v39  ;;  %v431_v60 = vmax.f32 %v399_v44, 0.0  ;;  %v2731_v62 = vunpack.c.h.bf16 %v2761_v15 }
  0x5e   : > { %3111 = vmatprep.subr.bf16.mxu1 %v3368_v45  ;;  %v430_v45 = vmax.f32 %v398_v32, 0.0  ;;  %v752_v34 = vrot.slane %v750_v22, 1  ;;  %v529_v54 = vor.u32 %v527_v5, %v526_v27  ;;  %v3954_v57 = vsel %vm3480_vm2, %v526_v27, 0 }
  0x5f   : > { %v767_v6 = vshll.u32 %v3954_v57, 16  ;;  %v361_v5 = vsub.f32 %v2730_v52, %v3913_v51  ;;  %v362_v27 = vsub.f32 %v2731_v62, %v3913_v51 }
  0x60   : > { %1761 = vmatmul.mubr.bf16.gmra.mrb[24].mxu1 %v3900_v35  ;;  %v753_v59 = vor.u32 %v752_v34, %v748_v21  ;;  %v3961_v4 = vsel %vm3480_vm2, 0, %v529_v54  ;;  %v3972_v21 = vsel %vm891_vm4, %v901_v17, %v902_v18 }
  0x61   : > { %1768 = vmatprep.mubr.bf16.mxu1 %v3782_v55  ;;  %3112 = vmatpush3.bf16.msra.mxu1 %v3370_v40  ;;  %v760_v32 = vshrl.u32 %v3961_v4, 16  ;;  %v762_v15 = vshll.u32 %v3961_v4, 16  ;;  %v453_v40 = vpack.c.bf16 %v431_v60, %v430_v45  ;;  %v3376_v45 = vld [vmem:[%s4641_s3 + $0x1b0] sm:$0xff]   ;;  %v769_v52 = vrot.slane %v767_v6, 1 }
  0x62   : > { %3113 = vmatprep.subr.bf16.mxu1 %v3371_v53  ;;  %v3975_v22 = vsel %vm650_vm3, %v753_v59, %v757_v33  ;;  %v400_v53 = vmul.f32 %v3932_v10, %v361_v5  ;;  %v401_v17 = vmul.f32 %v3932_v10, %v362_v27  ;;  %v3377_v33 = vld [vmem:[%s4641_s3 + $0x1f8] sm:$0xff]   ;;  %v905_v59 = vrot.slane %v3772_v41, 1 }
  0x63   : > { %1640 = vmatmul.mubr.bf16.gmra.mrb[28].mxu0 %v3897_v28  ;;  %v764_v44 = vrot.slane %v762_v15, 1  ;;  %v531_v34 = vshrl.u32 %v453_v40, 16  ;;  %v534_v54 = vshll.u32 %v453_v40, 16 }
  0x64   : > { %1647 = vmatprep.mubr.bf16.mxu0 %v3975_v22  ;;  %v432_v18 = vmax.f32 %v400_v53, 0.0  ;;  %v433_v5 = vmax.f32 %v401_v17, 0.0 }
  0x65   : > { %3114 = vmatpush3.bf16.msra.mxu1 %v3373_v61  ;;  %v765_v60 = vor.u32 %v764_v44, %v760_v32  ;;  %v533_v62 = vrot.slane %v531_v34, 7  ;;  %v904_v61 = vrot.slane %v3782_v55, 1 }
  0x66   : > { %3115 = vmatprep.subr.bf16.mxu1 %v3374_v7  ;;  %v3379_v7 = vld [vmem:[%s4641_s3 + $0x1b8] sm:$0xff]   ;;  %v454_v27 = vpack.c.bf16 %v433_v5, %v432_v18 }
  0x67   : > { %v536_v6 = vor.u32 %v534_v54, %v533_v62  ;;  %v3993_v15 = vsel %vm3480_vm2, %v533_v62, 0  ;;  %v3999_v32 = vsel %vm650_vm3, %v765_v60, %v769_v52  ;;  %v4008_v53 = vsel %vm891_vm4, %v904_v61, %v905_v59 }
  0x68   : > { %1769 = vmatmul.mubr.bf16.gmra.mrb[28].mxu1 %v3972_v21  ;;  %v779_v40 = vshll.u32 %v3993_v15, 16  ;;  %v538_v54 = vshrl.u32 %v454_v27, 16  ;;  %v908_v60 = vrot.slane %v3813_v20, 1 }
  0x69   : > { %1776 = vmatprep.mubr.bf16.mxu1 %v3828_v42  ;;  %3116 = vmatpush3.bf16.msra.mxu1 %v3376_v45  ;;  %v4004_v41 = vsel %vm3480_vm2, 0, %v536_v6  ;;  %v541_v45 = vshll.u32 %v454_v27, 16 }
  0x6a   : > { %3117 = vmatprep.subr.bf16.mxu1 %v3377_v33  ;;  %v772_v44 = vshrl.u32 %v4004_v41, 16  ;;  %v774_v34 = vshll.u32 %v4004_v41, 16  ;;  %v781_v17 = vrot.slane %v779_v40, 1  ;;  %v540_v18 = vrot.slane %v538_v54, 7 }
  0x6b   : > { %1648 = vmatmul.mubr.bf16.gmra.mrb[32].mxu0 %v3927_v8  ;;  %v907_v33 = vrot.slane %v3828_v42, 1 }
  0x6c   : > { %1655 = vmatprep.mubr.bf16.mxu0 %v3999_v32  ;;  %v776_v52 = vrot.slane %v774_v34, 1  ;;  %v543_v61 = vor.u32 %v541_v45, %v540_v18  ;;  %v4019_v59 = vsel %vm3480_vm2, %v540_v18, 0  ;;  %v910_v45 = vrot.slane %v3867_v50, 1 }
  0x6d   : > { %3118 = vmatpush3.bf16.msra.mxu1 %v3379_v7  ;;  %v791_v7 = vshll.u32 %v4019_v59, 16  ;;  %v4033_v20 = vsel %vm891_vm4, %v907_v33, %v908_v60  ;;  %v913_v33 = vrot.slane %v3897_v28, 1  ;;  %v914_v60 = vrot.slane %v3887_v11, 1 }
  0x6e   : > { %v777_v62 = vor.u32 %v776_v52, %v772_v44  ;;  %v4026_v6 = vsel %vm3480_vm2, 0, %v543_v61  ;;  %v911_v52 = vrot.slane %v3861_v36, 1  ;;  %v917_v61 = vrot.slane %v3919_v0, 1 }
  0x6f   : > { %v784_v40 = vshrl.u32 %v4026_v6, 16  ;;  %v786_v27 = vshll.u32 %v4026_v6, 16  ;;  %v793_v34 = vrot.slane %v791_v7, 1  ;;  %v4054_v36 = vsel %vm891_vm4, %v913_v33, %v914_v60  ;;  %v3372_v7 = vld [vmem:[%s4641_s3 + $0x208] sm:$0xff]  }
  0x70   : > { %1777 = vmatmul.mubr.bf16.gmra.mrb[32].mxu1 %v4008_v53  ;;  %v4022_v5 = vsel %vm650_vm3, %v777_v62, %v781_v17  ;;  %v4045_v18 = vsel %vm891_vm4, %v910_v45, %v911_v52  ;;  %v916_v62 = vrot.slane %v3927_v8, 1  ;;  %v919_v0 = vrot.slane %v3961_v4, 1 }
  0x71   : > { %1784 = vmatprep.mubr.bf16.mxu1 %v3867_v50  ;;  %v788_v44 = vrot.slane %v786_v27, 1  ;;  %v3380_v27 = vld [vmem:[%s4641_s3 + $0x220] sm:$0xff]   ;;  %v925_v60 = vrot.slane %v4026_v6, 1 }
  0x72   : > { %v4065_v11 = vsel %vm891_vm4, %v916_v62, %v917_v61  ;;  %v926_v62 = vrot.slane %v4019_v59, 1 }
  0x73   : > { %1656 = vmatmul.mubr.bf16.gmra.mrb[36].mxu0 %v3961_v4  ;;  %v789_v54 = vor.u32 %v788_v44, %v784_v40  ;;  %v920_v40 = vrot.slane %v3954_v57, 1  ;;  %v922_v57 = vrot.slane %v4004_v41, 1  ;;  %v923_v44 = vrot.slane %v3993_v15, 1  ;;  %v3382_v15 = vld [vmem:[%s4641_s3 + $0x230] sm:$0xff]  }
  0x74   : > { %1663 = vmatprep.mubr.bf16.mxu0 %v4022_v5 }
  0x75   : > { %v4041_v17 = vsel %vm650_vm3, %v789_v54, %v793_v34  ;;  %v2766_v34 = vld [vmem:[%s3471_s20 + $0x78] sm:$0xff]   ;;  %v3381_v54 = vld [vmem:[%s4641_s3 + $0x228] sm:$0xff]   ;;  %v4097_v45 = vsel %vm891_vm4, %v922_v57, %v923_v44 }
  0x76   : > { %v2750_v52 = vunpack.c.l.bf16 %v2766_v34  ;;  %v2751_v33 = vunpack.c.h.bf16 %v2766_v34  ;;  %v931_v34 = vrot.slane %v3608_v56, 1 }
  0x78   : > { %1785 = vmatmul.mubr.bf16.gmra.mrb[36].mxu1 %v4033_v20  ;;  %v371_v61 = vsub.f32 %v2750_v52, %v3913_v51 }
  0x79   : > { %1792 = vmatprep.mubr.bf16.mxu1 %v3897_v28 }
  0x7b   : > { %1664 = vmatmul.mubr.bf16.gmra.mrb[40].mxu0 %v4004_v41 }
  0x7c   : > { %1671 = vmatprep.mubr.bf16.mxu0 %v4041_v17 }
  0x80   : > { %1793 = vmatmul.mubr.bf16.gmra.mrb[40].mxu1 %v4045_v18 }
  0x81   : > { %1800 = vmatprep.mubr.bf16.mxu1 %v3927_v8 }
  0x83   : > { %1672 = vmatmul.mubr.bf16.gmra.mrb[44].mxu0 %v4026_v6 }
  0x84   : > { %1905 = vmatprep.mubr.bf16.mxu0 %v3853_v23  ;;  %v3375_v23 = vld [vmem:[%s4641_s3 + $0x210] sm:$0xff]  }
  0x88   : > { %1801 = vmatmul.mubr.bf16.gmra.mrb[44].mxu1 %v4054_v36 }
  0x89   : > { %1808 = vmatprep.mubr.bf16.mxu1 %v3961_v4 }
  0x8b   : > { %1906 = vmatmul.mubr.bf16.vlgmr.msra.gmra.mrb[48].mxu0 %v3632_v25  ;;  %v3378_v25 = vld [vmem:[%s4641_s3 + $0x218] sm:$0xff]  }
  0x8c   : > { %3240 = vmatpush3.bf16.msra.mxu0 %v3808_v26  ;;  %1913 = vmatprep.mubr.bf16.mxu0 %v3900_v35  ;;  %v4081_v26 = vsel %vm891_vm4, %v919_v0, %v920_v40  ;;  %v4114_v0 = vsel %vm891_vm4, %v925_v60, %v926_v62  ;;  %v410_v40 = vmul.f32 %v3932_v10, %v371_v61  ;;  %v934_v60 = vrot.slane %v3691_v12, 1 }
  0x8d   : > { %3241 = vmatprep.subr.bf16.mxu0 %v3372_v7  ;;  %v935_v62 = vrot.slane %v3675_v63, 1  ;;  %v938_v63 = vrot.slane %v3735_v3, 1 }
  0x90   : > { %1809 = vmatmul.mubr.bf16.gmra.mrb[48].mxu1 %v4065_v11  ;;  %3242 = vmatpush3.bf16.msra.mxu0 %v3372_v7  ;;  %v372_v7 = vsub.f32 %v2751_v33, %v3913_v51  ;;  %v928_v51 = vrot.slane %v3559_v9, 1 }
  0x91   : > { %1816 = vmatprep.mubr.bf16.mxu1 %v4004_v41  ;;  %3243 = vmatprep.subr.bf16.mxu0 %v3375_v23 }
  0x92   : > { %v411_v59 = vmul.f32 %v3932_v10, %v372_v7 }
  0x93   : > { %1914 = vmatmul.mubr.bf16.gmra.mrb[52].mxu0 %v3697_v24 }
  0x94   : > { %1921 = vmatprep.mubr.bf16.mxu0 %v3972_v21  ;;  %3244 = vmatpush3.bf16.msra.mxu0 %v3375_v23  ;;  %v3383_v23 = vld [vmem:[%s4641_s3 + $0x238] sm:$0xff]   ;;  %v443_v57 = vmax.f32 %v411_v59, 0.0 }
  0x95   : > { %3245 = vmatprep.subr.bf16.mxu0 %v3378_v25 }
  0x98   : > { %1817 = vmatmul.mubr.bf16.gmra.mrb[52].mxu1 %v4081_v26  ;;  %3246 = vmatpush3.bf16.msra.mxu0 %v3378_v25  ;;  %v929_v25 = vrot.slane %v3551_v1, 1 }
  0x99   : > { %1824 = vmatprep.mubr.bf16.mxu1 %v4026_v6  ;;  %3247 = vmatprep.subr.bf16.mxu0 %v3380_v27 }
  0x9a   : > { %v4125_v44 = vsel %vm891_vm4, %v928_v51, %v929_v25 }
  0x9b   : > { %1922 = vmatmul.mubr.bf16.gmra.mrb[56].mxu0 %v3764_v29 }
  0x9c   : > { %1929 = vmatprep.mubr.bf16.mxu0 %v4008_v53  ;;  %3248 = vmatpush3.bf16.msra.mxu0 %v3380_v27  ;;  %v442_v27 = vmax.f32 %v410_v40, 0.0 }
  0x9d   : > { %3249 = vmatprep.subr.bf16.mxu0 %v3381_v54 }
  0x9e   : > { %v459_v10 = vpack.c.bf16 %v443_v57, %v442_v27 }
  0xa0   : > { %1825 = vmatmul.mubr.bf16.gmra.mrb[56].mxu1 %v4097_v45  ;;  %3250 = vmatpush3.bf16.msra.mxu0 %v3381_v54  ;;  %v932_v54 = vrot.slane %v3590_v46, 1  ;;  %v573_v1 = vshrl.u32 %v459_v10, 16  ;;  %v4143_v46 = vsel %vm891_vm4, %v934_v60, %v935_v62 }
  0xa1   : > { %1832 = vmatprep.mubr.bf16.mxu1 %v3559_v9  ;;  %3251 = vmatprep.subr.bf16.mxu0 %v3382_v15 }
  0xa2   : > { %v4134_v52 = vsel %vm891_vm4, %v931_v34, %v932_v54  ;;  %v575_v33 = vrot.slane %v573_v1, 7 }
  0xa3   : > { %1930 = vmatmul.mubr.bf16.gmra.mrb[60].mxu0 %v3821_v37 }
  0xa4   : > { %1937 = vmatprep.mubr.bf16.mxu0 %v4033_v20  ;;  %3252 = vmatpush3.bf16.msra.mxu0 %v3382_v15  ;;  %v576_v15 = vshll.u32 %v459_v10, 16 }
  0xa5   : > { %3253 = vmatprep.subr.bf16.mxu0 %v3383_v23 }
  0xa6   : > { %v578_v61 = vor.u32 %v576_v15, %v575_v33 }
  0xa8   : > { %1833 = vmatmul.mubr.bf16.gmra.mrb[60].mxu1 %v4114_v0  ;;  %3254 = vmatpush3.bf16.msra.mxu0 %v3383_v23  ;;  %v4148_v7 = vsel %vm3480_vm2, 0, %v578_v61  ;;  %v937_v23 = vrot.slane %v3754_v16, 1 }
  0xa9   : > { %1840 = vmatprep.mubr.bf16.mxu1 %v3608_v56 }
  0xaa   : > { %v4156_v40 = vsel %vm891_vm4, %v937_v23, %v938_v63 }
  0xab   : > { %1938 = vmatmul.mubr.bf16.gmra.mrb[64].mxu0 %v3857_v31 }
  0xac   : > { %1945 = vmatprep.mubr.bf16.mxu0 %v4045_v18 }
  0xb0   : > { %1841 = vmatmul.mubr.bf16.gmra.mrb[64].mxu1 %v4125_v44 }
  0xb1   : > { %1848 = vmatprep.mubr.bf16.mxu1 %v3691_v12 }
  0xb3   : > { %1946 = vmatmul.mubr.bf16.gmra.mrb[68].mxu0 %v3908_v49 }
  0xb4   : > { %1953 = vmatprep.mubr.bf16.mxu0 %v4054_v36 }
  0xb8   : > { %1849 = vmatmul.mubr.bf16.gmra.mrb[68].mxu1 %v4134_v52 }
  0xb9   : > { %1856 = vmatprep.mubr.bf16.mxu1 %v3754_v16 }
  0xbb   : > { %1954 = vmatmul.mubr.bf16.gmra.mrb[72].mxu0 %v3947_v39 }
  0xbc   : > { %1961 = vmatprep.mubr.bf16.mxu0 %v4065_v11 }
  0xc0   : > { %1857 = vmatmul.mubr.bf16.gmra.mrb[72].mxu1 %v4143_v46 }
  0xc1   : > { %1864 = vmatprep.mubr.bf16.mxu1 %v4148_v7 }
  0xc3   : > { %1962 = vmatmul.mubr.bf16.gmra.mrb[76].mxu0 %v3975_v22 }
  0xc4   : > { %1969 = vmatprep.mubr.bf16.mxu0 %v4081_v26 }
  0xc8   : > { %1865 = vmatmul.mubr.bf16.gmra.mrb[76].mxu1 %v4156_v40 }
  0xc9   : > { %2066 = vmatprep.mubr.bf16.mxu1 %v3697_v24 }
  0xcb   : > { %1970 = vmatmul.mubr.bf16.gmra.mrb[80].mxu0 %v3999_v32 }
  0xcc   : > { %1977 = vmatprep.mubr.bf16.mxu0 %v4097_v45 }
  0xd0   : > { %2067 = vmatmul.mubr.bf16.vlgmr.msra.gmra.mrb[80].mxu1 %v3659_v43 }
  0xd1   : > { %2074 = vmatprep.mubr.bf16.mxu1 %v3764_v29  ;;  %v649_v29 = vsel %vm3480_vm2, %v575_v33, 0 }
  0xd3   : > { %1978 = vmatmul.mubr.bf16.gmra.mrb[84].mxu0 %v4022_v5 }
  0xd4   : > { %1985 = vmatprep.mubr.bf16.mxu0 %v4114_v0 }
  0xd8   : > { %2075 = vmatmul.mubr.bf16.gmra.mrb[84].mxu1 %v3719_v47 }
  0xd9   : > { %2082 = vmatprep.mubr.bf16.mxu1 %v3821_v37 }
  0xdb   : > { %1986 = vmatmul.mubr.bf16.gmra.mrb[88].mxu0 %v4041_v17 }
  0xdc   : > { %1993 = vmatprep.mubr.bf16.mxu0 %v4125_v44 }
  0xe0   : > { %2083 = vmatmul.mubr.bf16.gmra.mrb[88].mxu1 %v3782_v55 }
  0xe1   : > { %2090 = vmatprep.mubr.bf16.mxu1 %v3857_v31  ;;  %v971_v31 = vrot.slane %v4148_v7, 1 }
  0xe3   : > { %1994 = vmatmul.mubr.bf16.gmra.mrb[92].mxu0 %v3593_v48 }
  0xe4   : > { %2001 = vmatprep.mubr.bf16.mxu0 %v4134_v52 }
  0xe8   : > { %2091 = vmatmul.mubr.bf16.gmra.mrb[92].mxu1 %v3828_v42  ;;  %v959_v42 = vshll.u32 %v4148_v7, 16 }
  0xe9   : > { %2098 = vmatprep.mubr.bf16.mxu1 %v3908_v49  ;;  %v957_v49 = vshrl.u32 %v4148_v7, 16 }
  0xea   : > { %v961_v14 = vrot.slane %v959_v42, 1 }
  0xeb   : > { %2002 = vmatmul.mubr.bf16.gmra.mrb[96].mxu0 %v3638_v30 }
  0xec   : > { %2009 = vmatprep.mubr.bf16.mxu0 %v4143_v46 }
  0xf0   : > { %2099 = vmatmul.mubr.bf16.gmra.mrb[96].mxu1 %v3867_v50  ;;  %v972_v50 = vrot.slane %v649_v29, 1 }
  0xf1   : > { %2106 = vmatprep.mubr.bf16.mxu1 %v3947_v39  ;;  %v964_v39 = vshll.u32 %v649_v29, 16 }
  0xf2   : > { %v4196_v51 = vsel %vm891_vm4, %v971_v31, %v972_v50 }
  0xf3   : > { %2010 = vmatmul.mubr.bf16.gmra.mrb[100].mxu0 %v3728_v58  ;;  %v966_v34 = vrot.slane %v964_v39, 1 }
  0xf4   : > { %2017 = vmatprep.mubr.bf16.mxu0 %v4156_v40 }
  0xf8   : > { %2107 = vmatmul.mubr.bf16.gmra.mrb[100].mxu1 %v3897_v28  ;;  %v962_v28 = vor.u32 %v961_v14, %v957_v49 }
  0xf9   : > { %v2783_v43 = vpop.f32.mrb[0].mxu0  ;;  %2114 = vmatprep.mubr.bf16.mxu1 %v3975_v22 }
  0xfa   : > { %v2784_v24 = vpop.f32.mrb[1].mxu0  ;;  %v4207_v54 = vsel %vm650_vm3, %v962_v28, %v966_v34 }
  0xfb   : > { %v4182_v47 = vadd.f32 %v2784_v24, %v2783_v43  ;;  %v2786_v3 = vpop.f32.mrb[2].mxu0  ;;  %2018 = vmatmul.mubr.bf16.gmra.mrb[104].mxu0 %v3789_v2 }
  0xfc   : > { %v2787_v55 = vpop.f32.mrb[3].mxu0  ;;  %2025 = vmatprep.mubr.bf16.mxu0 %v4196_v51 }
  0xfd   : > { %v4188_v37 = vadd.f32 %v2787_v55, %v2786_v3  ;;  %v2855_v59 = vpop.f32.mrb[0].mxu1 }
  0xfe   : > { %v2856_v25 = vpop.f32.mrb[1].mxu1 }
  0xff   : > { %v4199_v27 = vadd.f32 %v2856_v25, %v2855_v59  ;;  %v2858_v57 = vpop.f32.mrb[2].mxu1 }
 0x100   : > { %v2859_v10 = vpop.f32.mrb[3].mxu1  ;;  %2115 = vmatmul.mubr.bf16.gmra.mrb[104].mxu1 %v3927_v8 }
 0x101   : > { %v4202_v22 = vadd.f32 %v2859_v10, %v2858_v57  ;;  %2122 = vmatprep.mubr.bf16.mxu1 %v3999_v32  ;;  %v2789_v1 = vpop.f32.mrb[4].mxu0 }
 0x102   : > { %v2790_v15 = vpop.f32.mrb[5].mxu0 }
 0x103   : > { %v4209_v60 = vadd.f32 %v2790_v15, %v2789_v1  ;;  %v2792_v61 = vpop.f32.mrb[6].mxu0  ;;  %2026 = vmatmul.mubr.bf16.gmra.mrb[108].mxu0 %v4207_v54 }
 0x104   : > { %v2793_v43 = vpop.f32.mrb[7].mxu0  ;;  %3255 = vmatprep.mubr.bf16.mxu0 %v3900_v35 }
 0x105   : > { %v2861_v33 = vpop.f32.mrb[4].mxu1  ;;  %v4214_v24 = vadd.f32 %v2793_v43, %v2792_v61 }
 0x106   : > { %v2862_v62 = vpop.f32.mrb[5].mxu1 }
 0x107   : > { %v4212_v23 = vadd.f32 %v2862_v62, %v2861_v33  ;;  %v2864_v63 = vpop.f32.mrb[6].mxu1 }
 0x108   : > { %v2865_v8 = vpop.f32.mrb[7].mxu1  ;;  %2123 = vmatmul.mubr.bf16.gmra.mrb[108].mxu1 %v3961_v4 }
 0x109   : > { %v4217_v32 = vadd.f32 %v2865_v8, %v2864_v63  ;;  %2130 = vmatprep.mubr.bf16.mxu1 %v4022_v5 }
 0x10b   : > { %v2795_v3 = vpop.f32.mrb[8].mxu0  ;;  %3256 = vmatmul.mubr.bf16.vlgmr.msra.gmra.mrb[112].mxu0 %v3972_v21 }
 0x10c   : > { %v2796_v29 = vpop.f32.mrb[9].mxu0  ;;  %3259 = vmatprep.mubr.bf16.mxu0 %v4008_v53 }
 0x10d   : > { %v4222_v55 = vadd.f32 %v2796_v29, %v2795_v3  ;;  %v2798_v42 = vpop.f32.mrb[10].mxu0 }
 0x10e   : > { %v2799_v31 = vpop.f32.mrb[11].mxu0 }
 0x10f   : > { %v4226_v50 = vadd.f32 %v2799_v31, %v2798_v42 }
 0x110   : > { %2131 = vmatmul.mubr.bf16.gmra.mrb[112].mxu1 %v4004_v41  ;;  %v2867_v35 = vpop.f32.mrb[8].mxu1 }
 0x111   : > { %2138 = vmatprep.mubr.bf16.mxu1 %v4041_v17  ;;  %v2868_v4 = vpop.f32.mrb[9].mxu1 }
 0x112   : > { %v4229_v49 = vadd.f32 %v2868_v4, %v2867_v35  ;;  %v2870_v5 = vpop.f32.mrb[10].mxu1 }
 0x113   : > { %v2871_v14 = vpop.f32.mrb[11].mxu1  ;;  %3260 = vmatmul.mubr.bf16.gmra.mrb[116].mxu0 %v4033_v20  ;;  %v2801_v39 = vpop.f32.mrb[12].mxu0 }
 0x114   : > { %v4231_v21 = vadd.f32 %v2871_v14, %v2870_v5  ;;  %3263 = vmatprep.mubr.bf16.mxu0 %v4045_v18  ;;  %v2802_v53 = vpop.f32.mrb[13].mxu0 }
 0x115   : > { %v4236_v41 = vadd.f32 %v2802_v53, %v2801_v39  ;;  %v2804_v59 = vpop.f32.mrb[14].mxu0 }
 0x116   : > { %v2805_v25 = vpop.f32.mrb[15].mxu0 }
 0x117   : > { %v4239_v17 = vadd.f32 %v2805_v25, %v2804_v59 }
 0x118   : > { %2139 = vmatmul.mubr.bf16.gmra.mrb[116].mxu1 %v4026_v6 }
 0x119   : > { %2146 = vmatprep.mubr.bf16.mxu1 %v3593_v48 }
 0x11b   : > { %v2873_v57 = vpop.f32.mrb[12].mxu1  ;;  %3264 = vmatmul.mubr.bf16.gmra.mrb[120].mxu0 %v4054_v36 }
 0x11c   : > { %v2874_v10 = vpop.f32.mrb[13].mxu1  ;;  %3267 = vmatprep.mubr.bf16.mxu0 %v4065_v11 }
 0x11d   : > { %v4241_v28 = vadd.f32 %v2874_v10, %v2873_v57  ;;  %v2876_v34 = vpop.f32.mrb[14].mxu1 }
 0x11e   : > { %v2877_v20 = vpop.f32.mrb[15].mxu1  ;;  %v2807_v6 = vpop.f32.mrb[16].mxu0 }
 0x11f   : > { %v4245_v18 = vadd.f32 %v2877_v20, %v2876_v34  ;;  %v2808_v1 = vpop.f32.mrb[17].mxu0 }
 0x120   : > { %2147 = vmatmul.mubr.bf16.gmra.mrb[120].mxu1 %v3559_v9  ;;  %v4249_v48 = vadd.f32 %v2808_v1, %v2807_v6  ;;  %v2810_v33 = vpop.f32.mrb[18].mxu0 }
 0x121   : > { %2154 = vmatprep.mubr.bf16.mxu1 %v3638_v30  ;;  %v2811_v62 = vpop.f32.mrb[19].mxu0 }
 0x122   : > { %v4251_v63 = vadd.f32 %v2811_v62, %v2810_v33 }
 0x123   : > { %v2895_v15 = vpop.f32.mrb[16].mxu1  ;;  %3268 = vmatmul.mubr.bf16.gmra.mrb[124].mxu0 %v4081_v26 }
 0x124   : > { %v2896_v61 = vpop.f32.mrb[17].mxu1  ;;  %3271 = vmatprep.mubr.bf16.mxu0 %v4097_v45 }
 0x125   : > { %v2897_v36 = vadd.f32 %v2896_v61, %v2895_v15  ;;  %v2898_v43 = vpop.f32.mrb[18].mxu1 }
 0x126   : > { %v2899_v11 = vpop.f32.mrb[19].mxu1  ;;  %v2813_v30 = vpop.f32.mrb[20].mxu0 }
 0x127   : > { %v4256_v9 = vadd.f32 %v2897_v36, %v4182_v47  ;;  %v2900_v8 = vadd.f32 %v2899_v11, %v2898_v43  ;;  %v2814_v29 = vpop.f32.mrb[21].mxu0 }
 0x128   : > { %2155 = vmatmul.mubr.bf16.gmra.mrb[124].mxu1 %v3608_v56  ;;  %v4263_v42 = vadd.f32 %v2814_v29, %v2813_v30  ;;  %v2816_v31 = vpop.f32.mrb[22].mxu0 }
 0x129   : > { %v4260_v3 = vadd.f32 %v2900_v8, %v4188_v37  ;;  %2162 = vmatprep.mubr.bf16.mxu1 %v3728_v58  ;;  %v2817_v35 = vpop.f32.mrb[23].mxu0 }
 0x12a   : > { %v4265_v45 = vadd.f32 %v2817_v35, %v2816_v31 }
 0x12b   : > { %v2901_v26 = vpop.f32.mrb[20].mxu1  ;;  %3272 = vmatmul.mubr.bf16.gmra.mrb[128].mxu0 %v4114_v0 }
 0x12c   : > { %v2902_v4 = vpop.f32.mrb[21].mxu1  ;;  %3275 = vmatprep.mubr.bf16.mxu0 %v4125_v44 }
 0x12d   : > { %v2903_v47 = vadd.f32 %v2902_v4, %v2901_v26  ;;  %v2904_v5 = vpop.f32.mrb[22].mxu1 }
 0x12e   : > { %v2905_v56 = vpop.f32.mrb[23].mxu1  ;;  %v2819_v58 = vpop.f32.mrb[24].mxu0 }
 0x12f   : > { %v4270_v37 = vadd.f32 %v2903_v47, %v4209_v60  ;;  %v2906_v14 = vadd.f32 %v2905_v56, %v2904_v5  ;;  %v2820_v53 = vpop.f32.mrb[25].mxu0 }
 0x130   : > { %2163 = vmatmul.mubr.bf16.gmra.mrb[128].mxu1 %v3691_v12  ;;  %v4277_v59 = vadd.f32 %v2820_v53, %v2819_v58  ;;  %v2822_v25 = vpop.f32.mrb[26].mxu0 }
 0x131   : > { %v4274_v39 = vadd.f32 %v2906_v14, %v4214_v24  ;;  %2170 = vmatprep.mubr.bf16.mxu1 %v3789_v2  ;;  %v2823_v57 = vpop.f32.mrb[27].mxu0 }
 0x132   : > { %v4279_v44 = vadd.f32 %v2823_v57, %v2822_v25 }
 0x133   : > { %v2907_v0 = vpop.f32.mrb[24].mxu1  ;;  %3276 = vmatmul.mubr.bf16.gmra.mrb[132].mxu0 %v4134_v52 }
 0x134   : > { %v2908_v10 = vpop.f32.mrb[25].mxu1  ;;  %3279 = vmatprep.mubr.bf16.mxu0 %v4143_v46 }
 0x135   : > { %v2909_v60 = vadd.f32 %v2908_v10, %v2907_v0  ;;  %v2910_v34 = vpop.f32.mrb[26].mxu1 }
 0x136   : > { %v2911_v12 = vpop.f32.mrb[27].mxu1  ;;  %v2825_v2 = vpop.f32.mrb[28].mxu0 }
 0x137   : > { %v4284_v24 = vadd.f32 %v2909_v60, %v4222_v55  ;;  %v2912_v20 = vadd.f32 %v2911_v12, %v2910_v34  ;;  %v2826_v1 = vpop.f32.mrb[29].mxu0 }
 0x138   : > { %2171 = vmatmul.mubr.bf16.gmra.mrb[132].mxu1 %v3754_v16  ;;  %v4291_v33 = vadd.f32 %v2826_v1, %v2825_v2  ;;  %v2828_v15 = vpop.f32.mrb[30].mxu0 }
 0x139   : > { %v4288_v6 = vadd.f32 %v2912_v20, %v4226_v50  ;;  %2178 = vmatprep.mubr.bf16.mxu1 %v4207_v54  ;;  %v2829_v62 = vpop.f32.mrb[31].mxu0 }
 0x13a   : > { %v4293_v46 = vadd.f32 %v2829_v62, %v2828_v15 }
 0x13b   : > { %v2913_v52 = vpop.f32.mrb[28].mxu1  ;;  %3280 = vmatmul.mubr.bf16.gmra.mrb[136].mxu0 %v4156_v40 }
 0x13c   : > { %v2914_v61 = vpop.f32.mrb[29].mxu1  ;;  %3283 = vmatprep.mubr.bf16.mxu0 %v4196_v51 }
 0x13d   : > { %v2915_v55 = vadd.f32 %v2914_v61, %v2913_v52  ;;  %v2916_v36 = vpop.f32.mrb[30].mxu1 }
 0x13e   : > { %v2917_v16 = vpop.f32.mrb[31].mxu1  ;;  %v2831_v54 = vpop.f32.mrb[32].mxu0 }
 0x13f   : > { %v4298_v50 = vadd.f32 %v2915_v55, %v4236_v41  ;;  %v2918_v43 = vadd.f32 %v2917_v16, %v2916_v36  ;;  %v2832_v8 = vpop.f32.mrb[33].mxu0 }
 0x140   : > { %2179 = vmatmul.mubr.bf16.gmra.mrb[136].mxu1 %v4148_v7  ;;  %v4305_v30 = vadd.f32 %v2832_v8, %v2831_v54  ;;  %v2834_v29 = vpop.f32.mrb[34].mxu0 }
 0x141   : > { %v4302_v11 = vadd.f32 %v2918_v43, %v4239_v17  ;;  %2186 = vmatprep.mubr.bf16.mxu1 %v3523_v38  ;;  %v2835_v31 = vpop.f32.mrb[35].mxu0 }
 0x142   : > { %v4307_v51 = vadd.f32 %v2835_v31, %v2834_v29 }
 0x143   : > { %v2919_v40 = vpop.f32.mrb[32].mxu1  ;;  %3284 = vmatmul.mubr.bf16.gmra.mrb[140].mxu0 %v3801_v13 }
 0x144   : > { %v2920_v26 = vpop.f32.mrb[33].mxu1 }
 0x145   : > { %v2921_v41 = vadd.f32 %v2920_v26, %v2919_v40  ;;  %v2922_v35 = vpop.f32.mrb[34].mxu1 }
 0x146   : > { %v2923_v7 = vpop.f32.mrb[35].mxu1  ;;  %v2837_v38 = vpop.f32.mrb[36].mxu0 }
 0x147   : > { %v4311_v4 = vadd.f32 %v2921_v41, %v4249_v48  ;;  %v2924_v17 = vadd.f32 %v2923_v7, %v2922_v35  ;;  %v2838_v5 = vpop.f32.mrb[37].mxu0 }
 0x148   : > { %2187 = vmatmul.mubr.bf16.gmra.mrb[140].mxu1 %v3496_v19  ;;  %v4317_v56 = vadd.f32 %v2838_v5, %v2837_v38  ;;  %v2840_v14 = vpop.f32.mrb[38].mxu0 }
 0x149   : > { %v4315_v47 = vadd.f32 %v2924_v17, %v4251_v63  ;;  %v2841_v53 = vpop.f32.mrb[39].mxu0 }
 0x14a   : > { %v4319_v0 = vadd.f32 %v2841_v53, %v2840_v14 }
 0x14b   : > { %v2925_v58 = vpop.f32.mrb[36].mxu1 }
 0x14c   : > { %v2926_v25 = vpop.f32.mrb[37].mxu1 }
 0x14d   : > { %v2927_v13 = vadd.f32 %v2926_v25, %v2925_v58  ;;  %v2928_v57 = vpop.f32.mrb[38].mxu1 }
 0x14e   : > { %v2929_v48 = vpop.f32.mrb[39].mxu1  ;;  %v2843_v60 = vpop.f32.mrb[40].mxu0 }
 0x14f   : > { %v4322_v10 = vadd.f32 %v2927_v13, %v4263_v42  ;;  %v2930_v19 = vadd.f32 %v2929_v48, %v2928_v57  ;;  %v2844_v34 = vpop.f32.mrb[41].mxu0 }
 0x150   : > { %v4327_v12 = vadd.f32 %v2844_v34, %v2843_v60  ;;  %v2846_v20 = vpop.f32.mrb[42].mxu0 }
 0x151   : > { %v4325_v63 = vadd.f32 %v2930_v19, %v4265_v45  ;;  %v2847_v1 = vpop.f32.mrb[43].mxu0 }
 0x152   : > { %v4329_v52 = vadd.f32 %v2847_v1, %v2846_v20 }
 0x153   : > { %v2931_v2 = vpop.f32.mrb[40].mxu1 }
 0x154   : > { %v2932_v15 = vpop.f32.mrb[41].mxu1 }
 0x155   : > { %v2933_v62 = vadd.f32 %v2932_v15, %v2931_v2  ;;  %v2934_v61 = vpop.f32.mrb[42].mxu1 }
 0x156   : > { %v2935_v55 = vpop.f32.mrb[43].mxu1  ;;  %v2849_v16 = vpop.f32.mrb[44].mxu0 }
 0x157   : > { %v4332_v42 = vadd.f32 %v2933_v62, %v4277_v59  ;;  %v2936_v36 = vadd.f32 %v2935_v55, %v2934_v61  ;;  %v2850_v43 = vpop.f32.mrb[45].mxu0 }
 0x158   : > { %v4337_v54 = vadd.f32 %v2850_v43, %v2849_v16  ;;  %v2852_v8 = vpop.f32.mrb[46].mxu0 }
 0x159   : > { %v4335_v45 = vadd.f32 %v2936_v36, %v4279_v44  ;;  %v2853_v40 = vpop.f32.mrb[47].mxu0 }
 0x15a   : > { %v4339_v26 = vadd.f32 %v2853_v40, %v2852_v8 }
 0x15b   : > { %v2937_v29 = vpop.f32.mrb[44].mxu1 }
 0x15c   : > { %v2938_v31 = vpop.f32.mrb[45].mxu1 }
 0x15d   : > { %v2939_v41 = vadd.f32 %v2938_v31, %v2937_v29  ;;  %v2940_v35 = vpop.f32.mrb[46].mxu1 }
 0x15e   : > { %v2941_v7 = vpop.f32.mrb[47].mxu1  ;;  %v3007_v38 = vpop.f32.mrb[48].mxu0 }
 0x15f   : > { %v4342_v59 = vadd.f32 %v2939_v41, %v4291_v33  ;;  %v2942_v17 = vadd.f32 %v2941_v7, %v2940_v35  ;;  %v3008_v5 = vpop.f32.mrb[49].mxu0 }
 0x160   : > { %v3009_v14 = vadd.f32 %v3008_v5, %v3007_v38  ;;  %v3010_v58 = vpop.f32.mrb[50].mxu0 }
 0x161   : > { %v4345_v44 = vadd.f32 %v2942_v17, %v4293_v46  ;;  %v3011_v25 = vpop.f32.mrb[51].mxu0 }
 0x162   : > { %v4348_v57 = vadd.f32 %v3009_v14, %v4256_v9  ;;  %v3012_v48 = vadd.f32 %v3011_v25, %v3010_v58 }
 0x163   : > { %v2943_v53 = vpop.f32.mrb[48].mxu1 }
 0x164   : > { %v2944_v13 = vpop.f32.mrb[49].mxu1  ;;  %v4351_v33 = vadd.f32 %v3012_v48, %v4260_v3 }
 0x165   : > { %v2945_v19 = vadd.f32 %v2944_v13, %v2943_v53  ;;  %v2946_v60 = vpop.f32.mrb[50].mxu1 }
 0x166   : > { %v2947_v34 = vpop.f32.mrb[51].mxu1  ;;  %v3013_v2 = vpop.f32.mrb[52].mxu0 }
 0x167   : > { %v4354_v20 = vadd.f32 %v2945_v19, %v4305_v30  ;;  %v2948_v46 = vadd.f32 %v2947_v34, %v2946_v60  ;;  %v3014_v15 = vpop.f32.mrb[53].mxu0 }
 0x168   : > { %v3015_v62 = vadd.f32 %v3014_v15, %v3013_v2  ;;  %v3016_v61 = vpop.f32.mrb[54].mxu0 }
 0x169   : > { %v4357_v1 = vadd.f32 %v2948_v46, %v4307_v51  ;;  %v3017_v55 = vpop.f32.mrb[55].mxu0 }
 0x16a   : > { %v4360_v16 = vadd.f32 %v3015_v62, %v4270_v37  ;;  %v3018_v43 = vadd.f32 %v3017_v55, %v3016_v61 }
 0x16b   : > { %v2949_v9 = vpop.f32.mrb[52].mxu1 }
 0x16c   : > { %v2950_v36 = vpop.f32.mrb[53].mxu1  ;;  %v4363_v30 = vadd.f32 %v3018_v43, %v4274_v39 }
 0x16d   : > { %v2951_v3 = vadd.f32 %v2950_v36, %v2949_v9  ;;  %v2952_v8 = vpop.f32.mrb[54].mxu1 }
 0x16e   : > { %v2953_v29 = vpop.f32.mrb[55].mxu1  ;;  %v3019_v31 = vpop.f32.mrb[56].mxu0 }
 0x16f   : > { %v4366_v40 = vadd.f32 %v2951_v3, %v4317_v56  ;;  %v2954_v51 = vadd.f32 %v2953_v29, %v2952_v8  ;;  %v3020_v35 = vpop.f32.mrb[57].mxu0 }
 0x170   : > { %v3021_v7 = vadd.f32 %v3020_v35, %v3019_v31  ;;  %v3022_v17 = vpop.f32.mrb[58].mxu0 }
 0x171   : > { %v4369_v41 = vadd.f32 %v2954_v51, %v4319_v0  ;;  %v3023_v38 = vpop.f32.mrb[59].mxu0 }
 0x172   : > { %v4372_v14 = vadd.f32 %v3021_v7, %v4284_v24  ;;  %v3024_v58 = vadd.f32 %v3023_v38, %v3022_v17 }
 0x173   : > { %v2955_v37 = vpop.f32.mrb[56].mxu1 }
 0x174   : > { %v2956_v5 = vpop.f32.mrb[57].mxu1  ;;  %v4375_v56 = vadd.f32 %v3024_v58, %v4288_v6 }
 0x175   : > { %v2957_v39 = vadd.f32 %v2956_v5, %v2955_v37  ;;  %v2958_v53 = vpop.f32.mrb[58].mxu1 }
 0x176   : > { %v2959_v25 = vpop.f32.mrb[59].mxu1  ;;  %v3025_v48 = vpop.f32.mrb[60].mxu0 }
 0x177   : > { %v4378_v13 = vadd.f32 %v2957_v39, %v4327_v12  ;;  %v2960_v0 = vadd.f32 %v2959_v25, %v2958_v53  ;;  %v3026_v60 = vpop.f32.mrb[61].mxu0 }
 0x178   : > { %v3027_v34 = vadd.f32 %v3026_v60, %v3025_v48  ;;  %v3028_v46 = vpop.f32.mrb[62].mxu0 }
 0x179   : > { %v4381_v19 = vadd.f32 %v2960_v0, %v4329_v52  ;;  %v3029_v2 = vpop.f32.mrb[63].mxu0 }
 0x17a   : > { %v4384_v62 = vadd.f32 %v3027_v34, %v4298_v50  ;;  %v3030_v61 = vadd.f32 %v3029_v2, %v3028_v46 }
 0x17b   : > { %v2961_v24 = vpop.f32.mrb[60].mxu1 }
 0x17c   : > { %v2962_v15 = vpop.f32.mrb[61].mxu1  ;;  %v4387_v12 = vadd.f32 %v3030_v61, %v4302_v11 }
 0x17d   : > { %v2963_v6 = vadd.f32 %v2962_v15, %v2961_v24  ;;  %v2964_v9 = vpop.f32.mrb[62].mxu1 }
 0x17e   : > { %v2965_v55 = vpop.f32.mrb[63].mxu1  ;;  %v3031_v43 = vpop.f32.mrb[64].mxu0 }
 0x17f   : > { %v4390_v36 = vadd.f32 %v2963_v6, %v4337_v54  ;;  %v2966_v52 = vadd.f32 %v2965_v55, %v2964_v9  ;;  %v3032_v8 = vpop.f32.mrb[65].mxu0 }
 0x180   : > { %v3033_v29 = vadd.f32 %v3032_v8, %v3031_v43  ;;  %v3034_v51 = vpop.f32.mrb[66].mxu0 }
 0x181   : > { %v4393_v3 = vadd.f32 %v2966_v52, %v4339_v26  ;;  %v3035_v31 = vpop.f32.mrb[67].mxu0 }
 0x182   : > { %v4396_v7 = vadd.f32 %v3033_v29, %v4311_v4  ;;  %v3036_v17 = vadd.f32 %v3035_v31, %v3034_v51 }
 0x183   : > { %v2967_v50 = vpop.f32.mrb[64].mxu1 }
 0x184   : > { %v2968_v35 = vpop.f32.mrb[65].mxu1  ;;  %v4399_v54 = vadd.f32 %v3036_v17, %v4315_v47 }
 0x185   : > { %v2969_v11 = vadd.f32 %v2968_v35, %v2967_v50  ;;  %v2970_v37 = vpop.f32.mrb[66].mxu1 }
 0x186   : > { %v2971_v38 = vpop.f32.mrb[67].mxu1  ;;  %v3037_v58 = vpop.f32.mrb[68].mxu0 }
 0x187   : > { %v4402_v5 = vadd.f32 %v2969_v11, %v4199_v27  ;;  %v2972_v26 = vadd.f32 %v2971_v38, %v2970_v37  ;;  %v3038_v53 = vpop.f32.mrb[69].mxu0 }
 0x188   : > { %v3039_v25 = vadd.f32 %v3038_v53, %v3037_v58  ;;  %v3040_v0 = vpop.f32.mrb[70].mxu0 }
 0x189   : > { %v4405_v39 = vadd.f32 %v2972_v26, %v4202_v22  ;;  %v3041_v48 = vpop.f32.mrb[71].mxu0 }
 0x18a   : > { %v4408_v34 = vadd.f32 %v3039_v25, %v4322_v10  ;;  %v3042_v46 = vadd.f32 %v3041_v48, %v3040_v0 }
 0x18b   : > { %v2973_v4 = vpop.f32.mrb[68].mxu1 }
 0x18c   : > { %v2974_v60 = vpop.f32.mrb[69].mxu1  ;;  %v4411_v27 = vadd.f32 %v3042_v46, %v4325_v63 }
 0x18d   : > { %v2975_v47 = vadd.f32 %v2974_v60, %v2973_v4  ;;  %v2976_v24 = vpop.f32.mrb[70].mxu1 }
 0x18e   : > { %v2977_v2 = vpop.f32.mrb[71].mxu1  ;;  %v3043_v61 = vpop.f32.mrb[72].mxu0 }
 0x18f   : > { %v4414_v15 = vadd.f32 %v2975_v47, %v4212_v23  ;;  %v2978_v22 = vadd.f32 %v2977_v2, %v2976_v24  ;;  %v3044_v9 = vpop.f32.mrb[73].mxu0 }
 0x190   : > { %v3045_v55 = vadd.f32 %v3044_v9, %v3043_v61  ;;  %v3046_v52 = vpop.f32.mrb[74].mxu0 }
 0x191   : > { %v4417_v6 = vadd.f32 %v2978_v22, %v4217_v32  ;;  %v3047_v43 = vpop.f32.mrb[75].mxu0 }
 0x192   : > { %v4420_v29 = vadd.f32 %v3045_v55, %v4332_v42  ;;  %v3048_v51 = vadd.f32 %v3047_v43, %v3046_v52 }
 0x193   : > { %v2979_v10 = vpop.f32.mrb[72].mxu1 }
 0x194   : > { %v2980_v8 = vpop.f32.mrb[73].mxu1  ;;  %v4423_v23 = vadd.f32 %v3048_v51, %v4335_v45 }
 0x195   : > { %v2981_v63 = vadd.f32 %v2980_v8, %v2979_v10  ;;  %v2982_v50 = vpop.f32.mrb[74].mxu1 }
 0x196   : > { %v2983_v31 = vpop.f32.mrb[75].mxu1  ;;  %v3049_v17 = vpop.f32.mrb[76].mxu0 }
 0x197   : > { %v4426_v35 = vadd.f32 %v2981_v63, %v4229_v49  ;;  %v2984_v32 = vadd.f32 %v2983_v31, %v2982_v50  ;;  %v3050_v37 = vpop.f32.mrb[77].mxu0 }
 0x198   : > { %v3051_v38 = vadd.f32 %v3050_v37, %v3049_v17  ;;  %v3052_v26 = vpop.f32.mrb[78].mxu0 }
 0x199   : > { %v4429_v11 = vadd.f32 %v2984_v32, %v4231_v21  ;;  %v3053_v58 = vpop.f32.mrb[79].mxu0 }
 0x19a   : > { %v4432_v25 = vadd.f32 %v3051_v38, %v4342_v59  ;;  %v3054_v0 = vadd.f32 %v3053_v58, %v3052_v26 }
 0x19b   : > { %v2985_v42 = vpop.f32.mrb[76].mxu1 }
 0x19c   : > { %v2986_v53 = vpop.f32.mrb[77].mxu1  ;;  %v4435_v49 = vadd.f32 %v3054_v0, %v4345_v44 }
 0x19d   : > { %v2987_v45 = vadd.f32 %v2986_v53, %v2985_v42  ;;  %v2988_v4 = vpop.f32.mrb[78].mxu1 }
 0x19e   : > { %v2989_v48 = vpop.f32.mrb[79].mxu1  ;;  %v3055_v46 = vpop.f32.mrb[80].mxu0 }
 0x19f   : > { %v4438_v60 = vadd.f32 %v2987_v45, %v4241_v28  ;;  %v2990_v21 = vadd.f32 %v2989_v48, %v2988_v4  ;;  %v3056_v24 = vpop.f32.mrb[81].mxu0 }
 0x1a0   : > { %v3057_v2 = vadd.f32 %v3056_v24, %v3055_v46  ;;  %v3058_v22 = vpop.f32.mrb[82].mxu0 }
 0x1a1   : > { %v4441_v47 = vadd.f32 %v2990_v21, %v4245_v18  ;;  %v3059_v61 = vpop.f32.mrb[83].mxu0 }
 0x1a2   : > { %v4444_v9 = vadd.f32 %v3057_v2, %v4354_v20  ;;  %v3060_v52 = vadd.f32 %v3059_v61, %v3058_v22 }
 0x1a3   : > { %v3119_v59 = vpop.f32.mrb[80].mxu1 }
 0x1a4   : > { %v3120_v55 = vpop.f32.mrb[81].mxu1  ;;  %v4447_v28 = vadd.f32 %v3060_v52, %v4357_v1 }
 0x1a5   : > { %v3121_v44 = vadd.f32 %v3120_v55, %v3119_v59  ;;  %v3122_v10 = vpop.f32.mrb[82].mxu1 }
 0x1a6   : > { %v3123_v43 = vpop.f32.mrb[83].mxu1  ;;  %v3061_v51 = vpop.f32.mrb[84].mxu0 }
 0x1a7   : > { %v3124_v8 = vadd.f32 %v3123_v43, %v3122_v10  ;;  %v4450_v18 = vadd.f32 %v3121_v44, %v4348_v57  ;;  %v3062_v63 = vpop.f32.mrb[85].mxu0 }
 0x1a8   : > { %v3063_v31 = vadd.f32 %v3062_v63, %v3061_v51  ;;  %v3064_v20 = vpop.f32.mrb[86].mxu0 }
 0x1a9   : > { %v4453_v50 = vadd.f32 %v3124_v8, %v4351_v33  ;;  %v3065_v17 = vpop.f32.mrb[87].mxu0 }
 0x1aa   : > { %v4456_v37 = vadd.f32 %v3063_v31, %v4366_v40  ;;  %v3066_v1 = vadd.f32 %v3065_v17, %v3064_v20 }
 0x1ab   : > { %v3125_v32 = vpop.f32.mrb[84].mxu1 }
 0x1ac   : > { %v3126_v38 = vpop.f32.mrb[85].mxu1  ;;  %v4459_v58 = vadd.f32 %v3066_v1, %v4369_v41 }
 0x1ad   : > { %v3127_v26 = vadd.f32 %v3126_v38, %v3125_v32  ;;  %v3128_v42 = vpop.f32.mrb[86].mxu1 }
 0x1ae   : > { %v3129_v57 = vpop.f32.mrb[87].mxu1  ;;  %v3067_v33 = vpop.f32.mrb[88].mxu0 }
 0x1af   : > { %v3130_v53 = vadd.f32 %v3129_v57, %v3128_v42  ;;  %v4462_v0 = vadd.f32 %v3127_v26, %v4360_v16  ;;  %v3068_v45 = vpop.f32.mrb[89].mxu0 }
 0x1b0   : > { %v3069_v48 = vadd.f32 %v3068_v45, %v3067_v33  ;;  %v3070_v40 = vpop.f32.mrb[90].mxu0 }
 0x1b1   : > { %v4465_v4 = vadd.f32 %v3130_v53, %v4363_v30  ;;  %v3071_v46 = vpop.f32.mrb[91].mxu0 }
 0x1b2   : > { %v4468_v24 = vadd.f32 %v3069_v48, %v4378_v13  ;;  %v3072_v41 = vadd.f32 %v3071_v46, %v3070_v40 }
 0x1b3   : > { %v3131_v21 = vpop.f32.mrb[88].mxu1 }
 0x1b4   : > { %v3132_v2 = vpop.f32.mrb[89].mxu1  ;;  %v4471_v61 = vadd.f32 %v3072_v41, %v4381_v19 }
 0x1b5   : > { %v3133_v22 = vadd.f32 %v3132_v2, %v3131_v21  ;;  %v3134_v59 = vpop.f32.mrb[90].mxu1 }
 0x1b6   : > { %v3135_v16 = vpop.f32.mrb[91].mxu1  ;;  %v3073_v30 = vpop.f32.mrb[92].mxu0 }
 0x1b7   : > { %v3136_v55 = vadd.f32 %v3135_v16, %v3134_v59  ;;  %v4474_v52 = vadd.f32 %v3133_v22, %v4372_v14  ;;  %v3074_v44 = vpop.f32.mrb[93].mxu0 }
 0x1b8   : > { %v3075_v43 = vadd.f32 %v3074_v44, %v3073_v30  ;;  %v3076_v13 = vpop.f32.mrb[94].mxu0 }
 0x1b9   : > { %v4477_v10 = vadd.f32 %v3136_v55, %v4375_v56  ;;  %v3077_v51 = vpop.f32.mrb[95].mxu0 }
 0x1ba   : > { %v4480_v63 = vadd.f32 %v3075_v43, %v4390_v36  ;;  %v3078_v19 = vadd.f32 %v3077_v51, %v3076_v13 }
 0x1bb   : > { %v3137_v8 = vpop.f32.mrb[92].mxu1 }
 0x1bc   : > { %v3138_v31 = vpop.f32.mrb[93].mxu1  ;;  %v4483_v17 = vadd.f32 %v3078_v19, %v4393_v3 }
 0x1bd   : > { %v3139_v20 = vadd.f32 %v3138_v31, %v3137_v8  ;;  %v3140_v32 = vpop.f32.mrb[94].mxu1 }
 0x1be   : > { %v3141_v14 = vpop.f32.mrb[95].mxu1  ;;  %v3079_v56 = vpop.f32.mrb[96].mxu0 }
 0x1bf   : > { %v3142_v38 = vadd.f32 %v3141_v14, %v3140_v32  ;;  %v4486_v1 = vadd.f32 %v3139_v20, %v4384_v62  ;;  %v3080_v26 = vpop.f32.mrb[97].mxu0 }
 0x1c0   : > { %v3081_v57 = vadd.f32 %v3080_v26, %v3079_v56  ;;  %v3082_v36 = vpop.f32.mrb[98].mxu0 }
 0x1c1   : > { %v4489_v42 = vadd.f32 %v3142_v38, %v4387_v12  ;;  %v3083_v33 = vpop.f32.mrb[99].mxu0 }
 0x1c2   : > { %v4492_v45 = vadd.f32 %v3081_v57, %v4402_v5  ;;  %v3084_v3 = vadd.f32 %v3083_v33, %v3082_v36 }
 0x1c3   : > { %v3143_v53 = vpop.f32.mrb[96].mxu1 }
 0x1c4   : > { %v3144_v48 = vpop.f32.mrb[97].mxu1  ;;  %v4495_v46 = vadd.f32 %v3084_v3, %v4405_v39 }
 0x1c5   : > { %v3145_v40 = vadd.f32 %v3144_v48, %v3143_v53  ;;  %v3146_v21 = vpop.f32.mrb[98].mxu1 }
 0x1c6   : > { %v3147_v62 = vpop.f32.mrb[99].mxu1  ;;  %v3085_v12 = vpop.f32.mrb[100].mxu0 }
 0x1c7   : > { %v3148_v2 = vadd.f32 %v3147_v62, %v3146_v21  ;;  %v4498_v41 = vadd.f32 %v3145_v40, %v4396_v7  ;;  %v3086_v22 = vpop.f32.mrb[101].mxu0 }
 0x1c8   : > { %v3087_v16 = vadd.f32 %v3086_v22, %v3085_v12  ;;  %v3088_v5 = vpop.f32.mrb[102].mxu0 }
 0x1c9   : > { %v4501_v59 = vadd.f32 %v3148_v2, %v4399_v54  ;;  %v3089_v30 = vpop.f32.mrb[103].mxu0 }
 0x1ca   : > { %v4504_v44 = vadd.f32 %v3087_v16, %v4414_v15  ;;  %v3090_v39 = vadd.f32 %v3089_v30, %v3088_v5 }
 0x1cb   : > { %v3149_v55 = vpop.f32.mrb[100].mxu1 }
 0x1cc   : > { %v3150_v43 = vpop.f32.mrb[101].mxu1  ;;  %v4507_v51 = vadd.f32 %v3090_v39, %v4417_v6 }
 0x1cd   : > { %v3151_v13 = vadd.f32 %v3150_v43, %v3149_v55  ;;  %v3152_v8 = vpop.f32.mrb[102].mxu1 }
 0x1ce   : > { %v3153_v7 = vpop.f32.mrb[103].mxu1  ;;  %v3091_v54 = vpop.f32.mrb[104].mxu0 }
 0x1cf   : > { %v3154_v31 = vadd.f32 %v3153_v7, %v3152_v8  ;;  %v4510_v19 = vadd.f32 %v3151_v13, %v4408_v34  ;;  %v3092_v20 = vpop.f32.mrb[105].mxu0 }
 0x1d0   : > { %v3093_v14 = vadd.f32 %v3092_v20, %v3091_v54  ;;  %v3094_v15 = vpop.f32.mrb[106].mxu0 }
 0x1d1   : > { %v4513_v32 = vadd.f32 %v3154_v31, %v4411_v27  ;;  %v3095_v56 = vpop.f32.mrb[107].mxu0 }
 0x1d2   : > { %v4516_v26 = vadd.f32 %v3093_v14, %v4426_v35  ;;  %v3096_v6 = vadd.f32 %v3095_v56, %v3094_v15 }
 0x1d3   : > { %v3155_v38 = vpop.f32.mrb[104].mxu1 }
 0x1d4   : > { %v3156_v57 = vpop.f32.mrb[105].mxu1  ;;  %v4519_v34 = vadd.f32 %v3096_v6, %v4429_v11 }
 0x1d5   : > { %v3157_v36 = vadd.f32 %v3156_v57, %v3155_v38  ;;  %v3158_v53 = vpop.f32.mrb[106].mxu1 }
 0x1d6   : > { %v3159_v33 = vpop.f32.mrb[107].mxu1  ;;  %v3097_v3 = vpop.f32.mrb[108].mxu0 }
 0x1d7   : > { %v3160_v48 = vadd.f32 %v3159_v33, %v3158_v53  ;;  %v4522_v27 = vadd.f32 %v3157_v36, %v4420_v29  ;;  %v3098_v40 = vpop.f32.mrb[109].mxu0 }
 0x1d8   : > { %v3099_v35 = vadd.f32 %v3098_v40, %v3097_v3  ;;  %v3100_v62 = vpop.f32.mrb[110].mxu0 }
 0x1d9   : > { %v4525_v21 = vadd.f32 %v3160_v48, %v4423_v23  ;;  %v3101_v12 = vpop.f32.mrb[111].mxu0 }
 0x1da   : > { %v4528_v22 = vadd.f32 %v3099_v35, %v4438_v60  ;;  %v3102_v11 = vadd.f32 %v3101_v12, %v3100_v62 }
 0x1db   : > { %v3161_v2 = vpop.f32.mrb[108].mxu1 }
 0x1dc   : > { %v3162_v16 = vpop.f32.mrb[109].mxu1  ;;  %v4532_v29 = vadd.f32 %v3102_v11, %v4441_v47 }
 0x1dd   : > { %v3163_v5 = vadd.f32 %v3162_v16, %v3161_v2  ;;  %v3164_v55 = vpop.f32.mrb[110].mxu1 }
 0x1de   : > { %v3165_v30 = vpop.f32.mrb[111].mxu1  ;;  %v3257_v60 = vpop.f32.mrb[112].mxu0 }
 0x1df   : > { %v3166_v43 = vadd.f32 %v3165_v30, %v3164_v55  ;;  %v4535_v23 = vadd.f32 %v3163_v5, %v4432_v25  ;;  %v2238_v39 = vadd.f32 %v3257_v60, %v4462_v0  ;;  %v2229_v13 = vpop.f32.mrb[113].mxu0 }
 0x1e0   : > { %v2230_v8 = vadd.f32 %v2229_v13, %v4450_v18  ;;  %v3258_v25 = vpop.f32.mrb[114].mxu0 }
 0x1e1   : > { %v4544_v47 = vadd.f32 %v3166_v43, %v4435_v49  ;;  %2358 = vst [vmem:[%s4540_s9 + $0x10] sm:$0xff] %v2238_v39  ;;  %v2241_v31 = vadd.f32 %v3258_v25, %v4465_v4  ;;  %v2232_v54 = vpop.f32.mrb[115].mxu0  ;;  %v2428_v36 = vmul.f32 %v2238_v39, %v2238_v39 }
 0x1e2   : > { %2356 = vst [vmem:[%s4540_s9] sm:$0xff] %v2230_v8  ;;  %v2233_v14 = vadd.f32 %v2232_v54, %v4453_v50  ;;  %v2426_v0 = vmul.f32 %v2230_v8, %v2230_v8 }
 0x1e3   : > { %v3167_v7 = vpop.f32.mrb[112].mxu1  ;;  %2359 = vst [vmem:[%s4540_s9 + $0x18] sm:$0xff] %v2241_v31  ;;  %v2429_v40 = vmul.f32 %v2241_v31, %v2241_v31 }
 0x1e4   : > { %v3168_v20 = vpop.f32.mrb[113].mxu1  ;;  %2357 = vst [vmem:[%s4540_s9 + $0x8] sm:$0xff] %v2233_v14  ;;  %v2388_v49 = vadd.f32 %v2233_v14, %v2230_v8  ;;  %v2427_v57 = vmul.f32 %v2233_v14, %v2233_v14 }
 0x1e5   : > { %v3169_v15 = vadd.f32 %v3168_v20, %v3167_v7  ;;  %v3170_v38 = vpop.f32.mrb[114].mxu1 }
 0x1e6   : > { %v3171_v56 = vpop.f32.mrb[115].mxu1  ;;  %v2389_v4 = vadd.f32 %v2388_v49, %v2238_v39  ;;  %v2458_v53 = vadd.f32 %v2427_v57, %v2426_v0  ;;  %v3261_v33 = vpop.f32.mrb[116].mxu0 }
 0x1e7   : > { %v3172_v18 = vadd.f32 %v3171_v56, %v3170_v38  ;;  %v4554_v6 = vadd.f32 %v3169_v15, %v4444_v9  ;;  %v2254_v50 = vadd.f32 %v3261_v33, %v4486_v1  ;;  %v2245_v48 = vpop.f32.mrb[117].mxu0 }
 0x1e8   : > { %v2459_v35 = vadd.f32 %v2458_v53, %v2428_v36  ;;  %v2246_v62 = vadd.f32 %v2245_v48, %v4474_v52  ;;  %v2390_v2 = vadd.f32 %v2389_v4, %v2241_v31  ;;  %v3262_v12 = vpop.f32.mrb[118].mxu0 }
 0x1e9   : > { %v4558_v3 = vadd.f32 %v3172_v18, %v4447_v28  ;;  %2362 = vst [vmem:[%s4540_s9 + $0x30] sm:$0xff] %v2254_v50  ;;  %v2257_v16 = vadd.f32 %v3262_v12, %v4489_v42  ;;  %v2248_v11 = vpop.f32.mrb[119].mxu0  ;;  %v2432_v7 = vmul.f32 %v2254_v50, %v2254_v50 }
 0x1ea   : > { %2360 = vst [vmem:[%s4540_s9 + $0x20] sm:$0xff] %v2246_v62  ;;  %v2391_v1 = vadd.f32 %v2390_v2, %v2246_v62  ;;  %v2430_v55 = vmul.f32 %v2246_v62, %v2246_v62  ;;  %v2460_v30 = vadd.f32 %v2459_v35, %v2429_v40  ;;  %v2249_v28 = vadd.f32 %v2248_v11, %v4477_v10 }
 0x1eb   : > { %v3173_v9 = vpop.f32.mrb[116].mxu1  ;;  %2363 = vst [vmem:[%s4540_s9 + $0x38] sm:$0xff] %v2257_v16  ;;  %v2433_v38 = vmul.f32 %v2257_v16, %v2257_v16 }
 0x1ec   : > { %v3174_v5 = vpop.f32.mrb[117].mxu1  ;;  %v2461_v39 = vadd.f32 %v2460_v30, %v2430_v55  ;;  %2361 = vst [vmem:[%s4540_s9 + $0x28] sm:$0xff] %v2249_v28  ;;  %v2392_v13 = vadd.f32 %v2391_v1, %v2249_v28  ;;  %v2431_v8 = vmul.f32 %v2249_v28, %v2249_v28 }
 0x1ed   : > { %v3175_v43 = vadd.f32 %v3174_v5, %v3173_v9  ;;  %v3176_v60 = vpop.f32.mrb[118].mxu1 }
 0x1ee   : > { %v3177_v52 = vpop.f32.mrb[119].mxu1  ;;  %v2393_v31 = vadd.f32 %v2392_v13, %v2254_v50  ;;  %v2462_v54 = vadd.f32 %v2461_v39, %v2431_v8  ;;  %v3265_v20 = vpop.f32.mrb[120].mxu0 }
 0x1ef   : > { %v3178_v25 = vadd.f32 %v3177_v52, %v3176_v60  ;;  %v4568_v42 = vadd.f32 %v3175_v43, %v4456_v37  ;;  %v2270_v10 = vadd.f32 %v3265_v20, %v4510_v19  ;;  %v2261_v14 = vpop.f32.mrb[121].mxu0 }
 0x1f0   : > { %v2463_v0 = vadd.f32 %v2462_v54, %v2432_v7  ;;  %v2262_v56 = vadd.f32 %v2261_v14, %v4498_v41  ;;  %v2394_v49 = vadd.f32 %v2393_v31, %v2257_v16  ;;  %v3266_v57 = vpop.f32.mrb[122].mxu0 }
 0x1f1   : > { %v4572_v15 = vadd.f32 %v3178_v25, %v4459_v58  ;;  %2366 = vst [vmem:[%s4540_s9 + $0x50] sm:$0xff] %v2270_v10  ;;  %v2273_v18 = vadd.f32 %v3266_v57, %v4513_v32  ;;  %v2264_v36 = vpop.f32.mrb[123].mxu0  ;;  %v2436_v12 = vmul.f32 %v2270_v10, %v2270_v10 }
 0x1f2   : > { %2364 = vst [vmem:[%s4540_s9 + $0x40] sm:$0xff] %v2262_v56  ;;  %v2395_v19 = vadd.f32 %v2394_v49, %v2262_v56  ;;  %v2434_v53 = vmul.f32 %v2262_v56, %v2262_v56  ;;  %v2464_v33 = vadd.f32 %v2463_v0, %v2433_v38  ;;  %v2265_v58 = vadd.f32 %v2264_v36, %v4501_v59 }
 0x1f3   : > { %v3179_v37 = vpop.f32.mrb[120].mxu1  ;;  %2367 = vst [vmem:[%s4540_s9 + $0x58] sm:$0xff] %v2273_v18  ;;  %v2437_v55 = vmul.f32 %v2273_v18, %v2273_v18 }
 0x1f4   : > { %v3180_v4 = vpop.f32.mrb[121].mxu1  ;;  %v2465_v40 = vadd.f32 %v2464_v33, %v2434_v53  ;;  %2365 = vst [vmem:[%s4540_s9 + $0x48] sm:$0xff] %v2265_v58  ;;  %v2396_v35 = vadd.f32 %v2395_v19, %v2265_v58  ;;  %v2435_v62 = vmul.f32 %v2265_v58, %v2265_v58 }
 0x1f5   : > { %v3181_v50 = vadd.f32 %v3180_v4, %v3179_v37  ;;  %v3182_v48 = vpop.f32.mrb[122].mxu1 }
 0x1f6   : > { %v3183_v41 = vpop.f32.mrb[123].mxu1  ;;  %v2397_v9 = vadd.f32 %v2396_v35, %v2270_v10  ;;  %v2466_v16 = vadd.f32 %v2465_v40, %v2435_v62  ;;  %v3269_v11 = vpop.f32.mrb[124].mxu0 }
 0x1f7   : > { %v3184_v2 = vadd.f32 %v3183_v41, %v3182_v48  ;;  %v4582_v32 = vadd.f32 %v3181_v50, %v4468_v24  ;;  %v2286_v59 = vadd.f32 %v3269_v11, %v4535_v23  ;;  %v2277_v5 = vpop.f32.mrb[125].mxu0 }
 0x1f8   : > { %v2467_v30 = vadd.f32 %v2466_v16, %v2436_v12  ;;  %v2278_v28 = vadd.f32 %v2277_v5, %v4522_v27  ;;  %v2398_v43 = vadd.f32 %v2397_v9, %v2273_v18  ;;  %v3270_v60 = vpop.f32.mrb[126].mxu0 }
 0x1f9   : > { %v4586_v1 = vadd.f32 %v3184_v2, %v4471_v61  ;;  %2370 = vst [vmem:[%s4540_s9 + $0x70] sm:$0xff] %v2286_v59  ;;  %v2289_v39 = vadd.f32 %v3270_v60, %v4544_v47  ;;  %v2280_v52 = vpop.f32.mrb[127].mxu0  ;;  %v2440_v38 = vmul.f32 %v2286_v59, %v2286_v59 }
 0x1fa   : > { %2368 = vst [vmem:[%s4540_s9 + $0x60] sm:$0xff] %v2278_v28  ;;  %v2399_v23 = vadd.f32 %v2398_v43, %v2278_v28  ;;  %v2438_v8 = vmul.f32 %v2278_v28, %v2278_v28  ;;  %v2468_v25 = vadd.f32 %v2467_v30, %v2437_v55  ;;  %v2281_v61 = vadd.f32 %v2280_v52, %v4525_v21 }
 0x1fb   : > { %v3185_v24 = vpop.f32.mrb[124].mxu1  ;;  %2371 = vst [vmem:[%s4540_s9 + $0x78] sm:$0xff] %v2289_v39  ;;  %v2441_v18 = vmul.f32 %v2289_v39, %v2289_v39 }
 0x1fc   : > { %v3186_v13 = vpop.f32.mrb[125].mxu1  ;;  %v2469_v54 = vadd.f32 %v2468_v25, %v2438_v8  ;;  %2369 = vst [vmem:[%s4540_s9 + $0x68] sm:$0xff] %v2281_v61  ;;  %v2400_v20 = vadd.f32 %v2399_v23, %v2281_v61  ;;  %v2439_v10 = vmul.f32 %v2281_v61, %v2281_v61 }
 0x1fd   : > { %v3187_v7 = vadd.f32 %v3186_v13, %v3185_v24  ;;  %v3188_v31 = vpop.f32.mrb[126].mxu1 }
 0x1fe   : > { %v3189_v27 = vpop.f32.mrb[127].mxu1  ;;  %v2401_v0 = vadd.f32 %v2400_v20, %v2286_v59  ;;  %v2470_v56 = vadd.f32 %v2469_v54, %v2439_v10  ;;  %v3273_v49 = vpop.f32.mrb[128].mxu0 }
 0x1ff   : > { %v3190_v14 = vadd.f32 %v3189_v27, %v3188_v31  ;;  %v2157_v47 = vadd.f32 %v3187_v7, %v4480_v63  ;;  %v2302_v57 = vadd.f32 %v3273_v49, %v4568_v42  ;;  %v2293_v21 = vpop.f32.mrb[129].mxu0 }
 0x200   : > { %v2471_v36 = vadd.f32 %v2470_v56, %v2440_v38  ;;  %v2294_v4 = vadd.f32 %v2293_v21, %v4554_v6  ;;  %v2402_v19 = vadd.f32 %v2401_v0, %v2289_v39  ;;  %v3274_v53 = vpop.f32.mrb[130].mxu0 }
 0x201   : > { %v2160_v37 = vadd.f32 %v3190_v14, %v4483_v17  ;;  %2374 = vst [vmem:[%s4540_s9 + $0x90] sm:$0xff] %v2302_v57  ;;  %v2305_v63 = vadd.f32 %v3274_v53, %v4572_v15  ;;  %v2296_v58 = vpop.f32.mrb[131].mxu0  ;;  %v2444_v16 = vmul.f32 %v2302_v57, %v2302_v57 }
 0x202   : > { %2372 = vst [vmem:[%s4540_s9 + $0x80] sm:$0xff] %v2294_v4  ;;  %v2403_v48 = vadd.f32 %v2402_v19, %v2294_v4  ;;  %v2442_v42 = vmul.f32 %v2294_v4, %v2294_v4  ;;  %v2472_v40 = vadd.f32 %v2471_v36, %v2441_v18  ;;  %v2297_v17 = vadd.f32 %v2296_v58, %v4558_v3 }
 0x203   : > { %v3191_v33 = vpop.f32.mrb[128].mxu1  ;;  %2375 = vst [vmem:[%s4540_s9 + $0x98] sm:$0xff] %v2305_v63  ;;  %v2445_v28 = vmul.f32 %v2305_v63, %v2305_v63 }
 0x204   : > { %v3192_v50 = vpop.f32.mrb[129].mxu1  ;;  %v2473_v62 = vadd.f32 %v2472_v40, %v2442_v42  ;;  %2373 = vst [vmem:[%s4540_s9 + $0x88] sm:$0xff] %v2297_v17  ;;  %v2404_v2 = vadd.f32 %v2403_v48, %v2297_v17  ;;  %v2443_v12 = vmul.f32 %v2297_v17, %v2297_v17 }
 0x205   : > { %v3193_v41 = vadd.f32 %v3192_v50, %v3191_v33  ;;  %v3194_v35 = vpop.f32.mrb[130].mxu1 }
 0x206   : > { %v3195_v6 = vpop.f32.mrb[131].mxu1  ;;  %v2405_v11 = vadd.f32 %v2404_v2, %v2302_v57  ;;  %v2474_v59 = vadd.f32 %v2473_v62, %v2443_v12  ;;  %v3277_v5 = vpop.f32.mrb[132].mxu0 }
 0x207   : > { %v3196_v9 = vadd.f32 %v3195_v6, %v3194_v35  ;;  %v2165_v15 = vadd.f32 %v3193_v41, %v4492_v45  ;;  %v2318_v55 = vadd.f32 %v3277_v5, %v2157_v47  ;;  %v2309_v30 = vpop.f32.mrb[133].mxu0 }
 0x208   : > { %v2475_v43 = vadd.f32 %v2474_v59, %v2444_v16  ;;  %v2310_v60 = vadd.f32 %v2309_v30, %v4582_v32  ;;  %v2406_v24 = vadd.f32 %v2405_v11, %v2305_v63  ;;  %v3278_v39 = vpop.f32.mrb[134].mxu0 }
 0x209   : > { %v2168_v3 = vadd.f32 %v3196_v9, %v4495_v46  ;;  %2378 = vst [vmem:[%s4540_s9 + $0xb0] sm:$0xff] %v2318_v55  ;;  %v2321_v45 = vadd.f32 %v3278_v39, %v2160_v37  ;;  %v2312_v13 = vpop.f32.mrb[135].mxu0  ;;  %v2448_v47 = vmul.f32 %v2318_v55, %v2318_v55 }
 0x20a   : > { %2376 = vst [vmem:[%s4540_s9 + $0xa0] sm:$0xff] %v2310_v60  ;;  %v2407_v8 = vadd.f32 %v2406_v24, %v2310_v60  ;;  %v2446_v25 = vmul.f32 %v2310_v60, %v2310_v60  ;;  %v2476_v61 = vadd.f32 %v2475_v43, %v2445_v28  ;;  %v2313_v7 = vadd.f32 %v2312_v13, %v4586_v1 }
 0x20b   : > { %v3197_v52 = vpop.f32.mrb[132].mxu1  ;;  %2379 = vst [vmem:[%s4540_s9 + $0xb8] sm:$0xff] %v2321_v45  ;;  %v2449_v21 = vmul.f32 %v2321_v45, %v2321_v45 }
 0x20c   : > { %v3198_v23 = vpop.f32.mrb[133].mxu1  ;;  %v2477_v54 = vadd.f32 %v2476_v61, %v2446_v25  ;;  %2377 = vst [vmem:[%s4540_s9 + $0xa8] sm:$0xff] %v2313_v7  ;;  %v2408_v32 = vadd.f32 %v2407_v8, %v2313_v7  ;;  %v2447_v20 = vmul.f32 %v2313_v7, %v2313_v7 }
 0x20d   : > { %v3199_v46 = vadd.f32 %v3198_v23, %v3197_v52  ;;  %v3200_v31 = vpop.f32.mrb[134].mxu1 }
 0x20e   : > { %v3201_v27 = vpop.f32.mrb[135].mxu1  ;;  %v2409_v38 = vadd.f32 %v2408_v32, %v2318_v55  ;;  %v2478_v0 = vadd.f32 %v2477_v54, %v2447_v20  ;;  %v3281_v56 = vpop.f32.mrb[136].mxu0 }
 0x20f   : > { %v3202_v10 = vadd.f32 %v3201_v27, %v3200_v31  ;;  %v2173_v14 = vadd.f32 %v3199_v46, %v4504_v44  ;;  %v2325_v57 = vpop.f32.mrb[137].mxu0 }
 0x210   : > { %v2479_v37 = vadd.f32 %v2478_v0, %v2448_v47  ;;  %v2326_v18 = vadd.f32 %v2325_v57, %v2165_v15  ;;  %v2410_v36 = vadd.f32 %v2409_v38, %v2321_v45  ;;  %v3282_v4 = vpop.f32.mrb[138].mxu0 }
 0x211   : > { %v2334_v49 = vadd.f32 %v3281_v56, %v2173_v14  ;;  %v2176_v1 = vadd.f32 %v3202_v10, %v4507_v51  ;;  %v2328_v44 = vpop.f32.mrb[139].mxu0 }
 0x212   : > { %2380 = vst [vmem:[%s4540_s9 + $0xc0] sm:$0xff] %v2326_v18  ;;  %v2411_v63 = vadd.f32 %v2410_v36, %v2326_v18  ;;  %v2450_v58 = vmul.f32 %v2326_v18, %v2326_v18  ;;  %v2480_v50 = vadd.f32 %v2479_v37, %v2449_v21  ;;  %v2329_v48 = vadd.f32 %v2328_v44, %v2168_v3 }
 0x213   : > { %v3203_v19 = vpop.f32.mrb[136].mxu1  ;;  %2382 = vst [vmem:[%s4540_s9 + $0xd0] sm:$0xff] %v2334_v49  ;;  %v2337_v53 = vadd.f32 %v3282_v4, %v2176_v1  ;;  %v2452_v2 = vmul.f32 %v2334_v49, %v2334_v49 }
 0x214   : > { %v3204_v33 = vpop.f32.mrb[137].mxu1  ;;  %v2481_v51 = vadd.f32 %v2480_v50, %v2450_v58  ;;  %2381 = vst [vmem:[%s4540_s9 + $0xc8] sm:$0xff] %v2329_v48  ;;  %v2412_v41 = vadd.f32 %v2411_v63, %v2329_v48  ;;  %v2451_v35 = vmul.f32 %v2329_v48, %v2329_v48 }
 0x215   : > { %v3205_v42 = vadd.f32 %v3204_v33, %v3203_v19  ;;  %v3206_v40 = vpop.f32.mrb[138].mxu1  ;;  %2383 = vst [vmem:[%s4540_s9 + $0xd8] sm:$0xff] %v2337_v53  ;;  %v2453_v59 = vmul.f32 %v2337_v53, %v2337_v53 }
 0x216   : > { %v3207_v17 = vpop.f32.mrb[139].mxu1  ;;  %v2413_v12 = vadd.f32 %v2412_v41, %v2334_v49  ;;  %v2482_v9 = vadd.f32 %v2481_v51, %v2451_v35  ;;  %v3285_v15 = vpop.f32.mrb[140].mxu0 }
 0x217   : > { %v3208_v62 = vadd.f32 %v3207_v17, %v3206_v40  ;;  %v2181_v6 = vadd.f32 %v3205_v42, %v4516_v26  ;;  %v2341_v16 = vpop.f32.mrb[141].mxu0 }
 0x218   : > { %v2483_v5 = vadd.f32 %v2482_v9, %v2452_v2  ;;  %v2414_v30 = vadd.f32 %v2413_v12, %v2337_v53  ;;  %v3286_v3 = vpop.f32.mrb[142].mxu0 }
 0x219   : > { %v2184_v11 = vadd.f32 %v3208_v62, %v4519_v34  ;;  %v2342_v55 = vadd.f32 %v2341_v16, %v2181_v6  ;;  %v2344_v43 = vpop.f32.mrb[143].mxu0 }
 0x21a   : > { %v2484_v39 = vadd.f32 %v2483_v5, %v2453_v59 }
 0x21b   : > { %v3209_v28 = vpop.f32.mrb[140].mxu1  ;;  %2384 = vst [vmem:[%s4540_s9 + $0xe0] sm:$0xff] %v2342_v55  ;;  %v2415_v24 = vadd.f32 %v2414_v30, %v2342_v55  ;;  %v2454_v26 = vmul.f32 %v2342_v55, %v2342_v55  ;;  %v2345_v52 = vadd.f32 %v2344_v43, %v2184_v11 }
 0x21c   : > { %v3210_v60 = vpop.f32.mrb[141].mxu1 }
 0x21d   : > { %v3211_v45 = vadd.f32 %v3210_v60, %v3209_v28  ;;  %v3212_v13 = vpop.f32.mrb[142].mxu1  ;;  %v2485_v23 = vadd.f32 %v2484_v39, %v2454_v26  ;;  %2385 = vst [vmem:[%s4540_s9 + $0xe8] sm:$0xff] %v2345_v52  ;;  %v2416_v8 = vadd.f32 %v2415_v24, %v2345_v52  ;;  %v2455_v25 = vmul.f32 %v2345_v52, %v2345_v52 }
 0x21e   : > { %v3213_v34 = vpop.f32.mrb[143].mxu1 }
 0x21f   : > { %v2189_v61 = vadd.f32 %v3211_v45, %v4528_v22  ;;  %v3214_v7 = vadd.f32 %v3213_v34, %v3212_v13  ;;  %v2486_v46 = vadd.f32 %v2485_v23, %v2455_v25 }
 0x221   : > { %v2350_v31 = vadd.f32 %v3285_v15, %v2189_v61  ;;  %v2192_v54 = vadd.f32 %v3214_v7, %v4532_v29 }
 0x223   : > { %2386 = vst [vmem:[%s4540_s9 + $0xf0] sm:$0xff] %v2350_v31  ;;  %v2456_v27 = vmul.f32 %v2350_v31, %v2350_v31  ;;  %v2353_v32 = vadd.f32 %v3286_v3, %v2192_v54  ;;  %v2417_v20 = vadd.f32 %v2416_v8, %v2350_v31 }
 0x225   : > { %2387 = vst [vmem:[%s4540_s9 + $0xf8] sm:$0xff] %v2353_v32  ;;  %v2457_v10 = vmul.f32 %v2353_v32, %v2353_v32  ;;  %v2418_v14 = vadd.f32 %v2417_v20, %v2353_v32  ;;  %v2487_v47 = vadd.f32 %v2486_v46, %v2456_v27 }
 0x227   : > { %v2419_v38 = vrot.slane %v2418_v14, 4  ;;  %v2488_v0 = vadd.f32 %v2487_v47, %v2457_v10 }
 0x229   : > { %v2420_v56 = vadd.f32 %v2419_v38, %v2418_v14  ;;  %v2489_v49 = vrot.slane %v2488_v0, 4 }
 0x22b   : > { %v2421_v22 = vrot.slane %v2420_v56, 2  ;;  %v2490_v57 = vadd.f32 %v2489_v49, %v2488_v0 }
 0x22d   : > { %v2422_v1 = vadd.f32 %v2421_v22, %v2420_v56  ;;  %v2491_v21 = vrot.slane %v2490_v57, 2 }
 0x22f   : > { %v2423_v37 = vrot.slane %v2422_v1, 1  ;;  %v2492_v29 = vadd.f32 %v2491_v21, %v2490_v57 }
 0x231   : > { %v2424_v18 = vadd.f32 %v2423_v37, %v2422_v1  ;;  %v2493_v36 = vrot.slane %v2492_v29, 1 }
 0x233   : > { %2425 = vst [vmem:[%s265_s12] sm:$0x1] %v2424_v18  ;;  %v2494_v4 = vadd.f32 %v2493_v36, %v2492_v29 }
 0x235   : > { %2495 = vst [vmem:[%s268_s15] sm:$0x1] %v2494_v4 }
 0x236 PF: > { %s17_s21 = sadd.s32 1, %s3392_s21  }
 0x237   : > { %p14_p4 = scmp.ge.s32.totalorder %s17_s21, 4  }
 0x239   :  { %16 = sbr.rel (!%p14_p4) target bundleno = 1 (0x1), region = 90 }

</bundles_post_ra>
